<compile_context>
chip_gen: v5e
topology: v5e:2x2
jax: 0.10.0
libtpu: 0.0.40
codegen_flags: <defaults>
</compile_context>

<pallas_src>
import math
import jax
import jax.numpy as jnp
from jax.experimental import pallas as pl

# ----------------------------- configuration --------------------------------
B = 2                 # batch
IN_CH = 1             # input channels
IMG = 16              # isotropic spatial size
PATCH = 8             # isotropic patch size
HIDDEN = 32           # hidden_size
MLP_DIM = 64          # mlp_dim
NUM_LAYERS = 2        # transformer blocks
NUM_HEADS = 4
DECONV_CH = 4         # deconv_chns
OUT_CH = 1            # out_channels
NUM_CLASSES = 7
CLS_PAD = 8           # class table padded to 8 rows (sublane tile)
EMBED_DIM = HIDDEN // 4
HEAD_DIM = HIDDEN // NUM_HEADS
GRID_SP = IMG // PATCH                 # patches per spatial dim
N_PATCH = GRID_SP ** 3                 # number of image tokens (8)
SEQ = N_PATCH + 3                      # + t_emb, c_emb, s_emb tokens (11)
SEQ_PAD = 16                           # padded token count (2 sublane tiles)
TOK = B * SEQ_PAD                      # stacked token rows in the kernel (32)
PATCH_DIM = IN_CH * PATCH ** 3         # flattened patch size (512)
P3 = PATCH ** 3
OUT_DIM = OUT_CH * P3                  # fused decoder output width (512, lane dense)
EPS = 1e-5                             # nn.LayerNorm default eps
ATTN_SCALE = HEAD_DIM ** -0.5


# ------------------------------- fused kernel -------------------------------
def _layernorm(x, g, b):
    mu = jnp.mean(x, axis=-1, keepdims=True)
    var = jnp.mean((x - mu) ** 2, axis=-1, keepdims=True)
    return (x - mu) * jax.lax.rsqrt(var + EPS) * g + b


def vit_fused_kernel(patches_ref, tsin_ref, cls_ref, shift_ref,
                     tw1_ref, tb1_ref, tw2_ref, tb2_ref,
                     cemb_ref,
                     sw1_ref, sb1_ref, sw2_ref, sb2_ref,
                     patch_w_ref, patch_b_ref, pos_ref,
                     ln1g_ref, ln1b_ref, wqkv_ref, wo_ref, bo_ref,
                     ln2g_ref, ln2b_ref, w1_ref, b1_ref, w2_ref, b2_ref,
                     normg_ref, normb_ref, decw_ref, decb_ref,
                     o_ref):
    """Whole ViTAutoEnc forward (both batch elements), tokens resident in VMEM."""
    f32, bf16 = jnp.float32, jnp.bfloat16

    # ---- patch embedding: Conv3d(kernel=stride=patch) as one bf16 matmul ----
    emb = (jnp.dot(patches_ref[...].astype(bf16), patch_w_ref[...],
                   preferred_element_type=f32)
           + patch_b_ref[...])                                    # (B*N_PATCH, H)

    # ---- conditioning embedders (in-kernel; both batches vectorized) ----
    # timestep MLP on the precomputed sinusoid
    th = jnp.dot(tsin_ref[...], tw1_ref[...], preferred_element_type=f32) + tb1_ref[...]
    th = th * jax.nn.sigmoid(th)                                  # SiLU
    t_rows = jnp.dot(th, tw2_ref[...], preferred_element_type=f32) + tb2_ref[...]
    # class embedding lookup as a one-hot matmul (no scalar gather needed)
    cls_iota = jax.lax.broadcasted_iota(jnp.int32, (1, CLS_PAD), 1).astype(f32)
    onehot = (cls_iota == cls_ref[...]).astype(f32)               # (B, CLS_PAD)
    c_rows = jnp.dot(onehot, cemb_ref[...], preferred_element_type=f32)
    # shift MLP (Linear(1, E) is a scalar broadcast)
    sh = shift_ref[...] * sw1_ref[...] + sb1_ref[...]             # (B, E)
    sh = sh * jax.nn.sigmoid(sh)
    s_rows = jnp.dot(sh, sw2_ref[...], preferred_element_type=f32) + sb2_ref[...]

    # ---- token assembly: [img(8) | t | c | s | pad(5)] per batch -> (32, H) ----
    pad = jnp.zeros((SEQ_PAD - SEQ, HIDDEN), f32)
    pos = pos_ref[...]
    blocks = []
    for b in range(B):
        blocks.append(jnp.concatenate(
            [emb[b * N_PATCH:(b + 1) * N_PATCH, :] + pos,
             t_rows[b:b + 1, :], c_rows[b:b + 1, :], s_rows[b:b + 1, :], pad],
            axis=0))
    x = jnp.concatenate(blocks, axis=0)                           # (TOK, H)

    # padded key columns (11..15) masked before every softmax
    key_valid = jax.lax.broadcasted_iota(jnp.int32, (1, SEQ_PAD), 1) < SEQ

    # ---- transformer blocks (statically unrolled) ----
    for l in range(NUM_LAYERS):
        # LayerNorm 1 + self-attention
        xn = _layernorm(x, ln1g_ref[l], ln1b_ref[l])
        xnb = xn.astype(bf16)

        scores, vs = [], []
        for h in range(NUM_HEADS):
            # head-major weight refs: free leading-axis indexing, no lane slices
            q = jnp.dot(xnb, wqkv_ref[(l * 3 + 0) * NUM_HEADS + h],
                        preferred_element_type=f32).astype(bf16)  # (TOK, HD)
            k = jnp.dot(xnb, wqkv_ref[(l * 3 + 1) * NUM_HEADS + h],
                        preferred_element_type=f32).astype(bf16)
            v = jnp.dot(xnb, wqkv_ref[(l * 3 + 2) * NUM_HEADS + h],
                        preferred_element_type=f32).astype(bf16)
            vs.append(v)
            for b in range(B):                                    # per-batch scores
                qb = q[b * SEQ_PAD:(b + 1) * SEQ_PAD, :]
                kb = k[b * SEQ_PAD:(b + 1) * SEQ_PAD, :]
                scores.append(jax.lax.dot_general(
                    qb, kb, (((1,), (1,)), ((), ())),
                    preferred_element_type=f32))                  # (S, S)

        # one softmax over all (head, batch) blocks stacked along sublanes
        s_all = jnp.concatenate(scores, axis=0)                   # (NH*B*S, S)
        s_all = jnp.where(key_valid, s_all, -1e30)
        s_all = s_all - jnp.max(s_all, axis=-1, keepdims=True)
        e = jnp.exp(s_all)
        p_all = (e * pl.reciprocal(jnp.sum(e, axis=-1, keepdims=True),
                                   approx=True)).astype(bf16)

        # per-head outputs accumulated straight into the output projection
        attn_blocks = []
        for b in range(B):
            acc = bo_ref[l]                                       # (1, H) broadcasts
            for h in range(NUM_HEADS):
                r0 = (h * B + b) * SEQ_PAD
                p_bh = p_all[r0:r0 + SEQ_PAD, :]                  # (S, S)
                v_bh = vs[h][b * SEQ_PAD:(b + 1) * SEQ_PAD, :]    # (S, HD)
                ho = jnp.dot(p_bh, v_bh, preferred_element_type=f32).astype(bf16)
                acc = acc + jnp.dot(ho, wo_ref[l * NUM_HEADS + h],
                                    preferred_element_type=f32)   # (S, H)
            attn_blocks.append(acc)
        x = x + jnp.concatenate(attn_blocks, axis=0)              # residual 1

        # LayerNorm 2 + MLP (Linear -> GELU(tanh) -> Linear)
        xn2 = _layernorm(x, ln2g_ref[l], ln2b_ref[l])
        hdn = jnp.dot(xn2.astype(bf16), w1_ref[l],
                      preferred_element_type=f32) + b1_ref[l]
        hdn = jax.nn.gelu(hdn, approximate=True)                  # tanh approx -> EUP
        x = x + (jnp.dot(hdn.astype(bf16), w2_ref[l],
                         preferred_element_type=f32) + b2_ref[l])  # residual 2

    # ---- decode: final LN + (ConvTranspose3d ∘ 1x1x1 conv) folded matmul ----
    img = jnp.concatenate(
        [x[b * SEQ_PAD:b * SEQ_PAD + N_PATCH, :] for b in range(B)], axis=0)
    imgn = _layernorm(img, normg_ref[...], normb_ref[...])
    o_ref[...] = (jnp.dot(imgn.astype(bf16), decw_ref[...],
                          preferred_element_type=f32)
                  + decb_ref[...])                                # (B*N_PATCH, 512)


# ------------------------------ call wrapper ---------------------------------
def vit_fused(patches, t_sin, cls_f, shift, p):
    args = (patches, t_sin, cls_f, shift,
            p["time_w1"], p["time_b1"], p["time_w2"], p["time_b2"],
            p["class_emb"],
            p["shift_w1"], p["shift_b1"], p["shift_w2"], p["shift_b2"],
            p["patch_w"], p["patch_b"], p["pos_emb"],
            p["ln1_g"], p["ln1_b"], p["wqkv"], p["wo"], p["bo"],
            p["ln2_g"], p["ln2_b"], p["w1"], p["b1"], p["w2"], p["b2"],
            p["norm_g"], p["norm_b"], p["dec_w"], p["dec_b"])
    # No grid: one kernel invocation, every operand resident whole in VMEM
    # (total working set ~0.2 MiB << VMEM on v5e/v6e/v7x).
    return pl.pallas_call(
        vit_fused_kernel,
        out_shape=jax.ShapeDtypeStruct((B * N_PATCH, OUT_DIM), jnp.float32),
    )(*args)


# ------------------------------ parameters -----------------------------------
def init_params(key):
    keys = iter(jax.random.split(key, 256))

    def nrm(shape, s=0.02):
        return jax.random.normal(next(keys), shape, jnp.float32) * s

    p = {}
    # patch embedding (conv weight reshaped [HIDDEN, IN_CH*p^3] -> transposed)
    p["patch_w"] = nrm((PATCH_DIM, HIDDEN)).astype(jnp.bfloat16)
    p["patch_b"] = nrm((1, HIDDEN))
    p["pos_emb"] = nrm((N_PATCH, HIDDEN))

    # conditioning embedders (now consumed inside the kernel)
    p["time_w1"] = nrm((EMBED_DIM, HIDDEN)); p["time_b1"] = nrm((1, HIDDEN))
    p["time_w2"] = nrm((HIDDEN, HIDDEN));    p["time_b2"] = nrm((1, HIDDEN))
    cls_tbl = nrm((NUM_CLASSES, HIDDEN))
    p["class_emb"] = jnp.zeros((CLS_PAD, HIDDEN), jnp.float32).at[:NUM_CLASSES].set(cls_tbl)
    p["shift_w1"] = nrm((1, EMBED_DIM));      p["shift_b1"] = nrm((1, EMBED_DIM))
    p["shift_w2"] = nrm((EMBED_DIM, HIDDEN)); p["shift_b2"] = nrm((1, HIDDEN))

    # per-layer weights; LoRA + attention scale folded, then head-major + bf16
    ln1_g, ln1_b, wqkv_hm, wo_hm, bo = [], [], [], [], []
    ln2_g, ln2_b, w1, b1, w2, b2 = [], [], [], [], [], []
    for _ in range(NUM_LAYERS):
        ln1_g.append(jnp.ones((1, HIDDEN), jnp.float32))
        ln1_b.append(jnp.zeros((1, HIDDEN), jnp.float32))
        # qkv: MergedLinear(H, 3H, r=32, enable_lora=[True, False, True]), no bias.
        r_qkv = 32
        w_base = nrm((HIDDEN, 3 * HIDDEN))
        aq, bq = nrm((HIDDEN, r_qkv)), nrm((r_qkv, HIDDEN))
        av, bv = nrm((HIDDEN, r_qkv)), nrm((r_qkv, HIDDEN))
        delta = jnp.concatenate(
            [aq @ bq, jnp.zeros((HIDDEN, HIDDEN), jnp.float32), av @ bv], axis=1) / r_qkv
        w_full = w_base + delta
        # fold attention scale into q columns: softmax((q*s)k^T)==softmax((qk^T)*s)
        w_full = w_full.at[:, :HIDDEN].multiply(ATTN_SCALE)
        # head-major: (3, NUM_HEADS, HIDDEN, HEAD_DIM); column c = qkv*H + h*HD + d
        wqkv_hm.append(w_full.reshape(HIDDEN, 3, NUM_HEADS, HEAD_DIM).transpose(1, 2, 0, 3))
        # out_proj: lora.Linear(H, H, r=16) with bias; head-major (NH, HD, H)
        r_o = 16
        wo_base = nrm((HIDDEN, HIDDEN))
        ao, bo_l = nrm((HIDDEN, r_o)), nrm((r_o, HIDDEN))
        wo_full = wo_base + (ao @ bo_l) / r_o
        wo_hm.append(wo_full.reshape(NUM_HEADS, HEAD_DIM, HIDDEN))
        bo.append(nrm((1, HIDDEN)))
        ln2_g.append(jnp.ones((1, HIDDEN), jnp.float32))
        ln2_b.append(jnp.zeros((1, HIDDEN), jnp.float32))
        w1.append(nrm((HIDDEN, MLP_DIM))); b1.append(nrm((1, MLP_DIM)))
        w2.append(nrm((MLP_DIM, HIDDEN))); b2.append(nrm((1, HIDDEN)))

    p["ln1_g"] = jnp.stack(ln1_g); p["ln1_b"] = jnp.stack(ln1_b)
    p["wqkv"] = (jnp.stack(wqkv_hm)
                 .reshape(NUM_LAYERS * 3 * NUM_HEADS, HIDDEN, HEAD_DIM)
                 .astype(jnp.bfloat16))
    p["wo"] = (jnp.stack(wo_hm)
               .reshape(NUM_LAYERS * NUM_HEADS, HEAD_DIM, HIDDEN)
               .astype(jnp.bfloat16))
    p["bo"] = jnp.stack(bo)
    p["ln2_g"] = jnp.stack(ln2_g); p["ln2_b"] = jnp.stack(ln2_b)
    p["w1"] = jnp.stack(w1).astype(jnp.bfloat16); p["b1"] = jnp.stack(b1)
    p["w2"] = jnp.stack(w2).astype(jnp.bfloat16); p["b2"] = jnp.stack(b2)

    p["norm_g"] = jnp.ones((1, HIDDEN), jnp.float32)
    p["norm_b"] = jnp.zeros((1, HIDDEN), jnp.float32)

    # conv3d_transpose (HIDDEN -> DECONV_CH, kernel=stride=PATCH) fused exactly
    # with the 1x1x1 conv3d_transpose_1 (DECONV_CH -> OUT_CH):
    #   w_comb[h, o*P^3 + v] = sum_c dec_w[h, c, v] * pw_w[c, o]
    #   b_comb[o]            = sum_c dec_b[c] * pw_w[c, o] + pw_b[o]
    dec_w3 = nrm((HIDDEN, DECONV_CH, P3))
    dec_b = nrm((DECONV_CH,))
    pw_w = nrm((DECONV_CH, OUT_CH))
    pw_b = nrm((OUT_CH,))
    p["dec_w"] = (jnp.einsum("hcp,co->hop", dec_w3, pw_w)
                  .reshape(HIDDEN, OUT_DIM).astype(jnp.bfloat16))
    p["dec_b"] = jnp.repeat(dec_b @ pw_w + pw_b, P3)[None, :]       # (1, OUT_CH*P^3)
    return p


# ------------------------------ forward pass ---------------------------------
def timestep_embedding(timesteps, dim, max_period=10000.0):
    half = dim // 2
    freqs = jnp.exp(-math.log(max_period) * jnp.arange(half, dtype=jnp.float32) / half)
    args = timesteps.astype(jnp.float32)[:, None] * freqs[None, :]
    emb = jnp.concatenate([jnp.cos(args), jnp.sin(args)], axis=-1)
    if dim % 2:
        emb = jnp.concatenate([emb, jnp.zeros_like(emb[:, :1])], axis=-1)
    return emb


@jax.jit
def vit_autoenc_forward(params, x, timesteps, class_cond, shift_cond):
    # raw cos/sin sinusoid stays in the wrapper (single tiny fused elementwise op);
    # everything else of the conditioning path runs inside the kernel.
    t_sin = timestep_embedding(timesteps, EMBED_DIM)               # (B, EMBED_DIM)
    cls_f = class_cond.astype(jnp.float32).reshape(B, 1)
    shift = shift_cond.astype(jnp.float32).reshape(B, 1)

    # ---- image -> per-patch rows (Conv3d kernel=stride=patch as matmul) ----
    # TODO(synk): fold this interleave into the kernel's patch gather if profiling
    # shows the transpose copy rivaling the fused kernel's runtime.
    xb = x.reshape(B, IN_CH, GRID_SP, PATCH, GRID_SP, PATCH, GRID_SP, PATCH)
    patches = xb.transpose(0, 2, 4, 6, 1, 3, 5, 7).reshape(B * N_PATCH, PATCH_DIM)

    # ---- fused ViT forward (single Pallas kernel, whole batch) ----
    dec = vit_fused(patches, t_sin, cls_f, shift, params)          # (B*N_PATCH, 512)

    # ---- scatter decoded patches back onto the voxel grid ----
    dec = dec.reshape(B, GRID_SP, GRID_SP, GRID_SP, OUT_CH, PATCH, PATCH, PATCH)
    out = dec.transpose(0, 4, 1, 5, 2, 6, 3, 7).reshape(B, OUT_CH, IMG, IMG, IMG)
    return out


# ---------------------------------- main --------------------------------------
if __name__ == "__main__":
    key = jax.random.PRNGKey(0)
    kp, kx, kt, kc, ks = jax.random.split(key, 5)

    params = init_params(kp)
    x = jax.random.normal(kx, (B, IN_CH, IMG, IMG, IMG), jnp.float32)
    timesteps = jax.random.uniform(kt, (B,), jnp.float32, 0.0, 100.0)
    class_cond = jax.random.randint(kc, (B,), 0, NUM_CLASSES)
    shift_cond = jax.random.normal(ks, (B,), jnp.float32)

    out = vit_autoenc_forward(params, x, timesteps, class_cond, shift_cond)
    out = jax.block_until_ready(out)
    assert out.shape == (B, OUT_CH, IMG, IMG, IMG), out.shape
    assert bool(jnp.all(jnp.isfinite(out)))
    print("KERNEL_OK")
</pallas_src>

<mosaic_0001>
module attributes {stable_mosaic.version = 11 : i64} {
  func.func @vit_fused_kernel(%arg0: memref<16x512xf32, #tpu.memory_space<vmem>>, %arg1: memref<2x8xf32, #tpu.memory_space<vmem>>, %arg2: memref<2x1xf32, #tpu.memory_space<vmem>>, %arg3: memref<2x1xf32, #tpu.memory_space<vmem>>, %arg4: memref<8x32xf32, #tpu.memory_space<vmem>>, %arg5: memref<1x32xf32, #tpu.memory_space<vmem>>, %arg6: memref<32x32xf32, #tpu.memory_space<vmem>>, %arg7: memref<1x32xf32, #tpu.memory_space<vmem>>, %arg8: memref<8x32xf32, #tpu.memory_space<vmem>>, %arg9: memref<1x8xf32, #tpu.memory_space<vmem>>, %arg10: memref<1x8xf32, #tpu.memory_space<vmem>>, %arg11: memref<8x32xf32, #tpu.memory_space<vmem>>, %arg12: memref<1x32xf32, #tpu.memory_space<vmem>>, %arg13: memref<512x32xbf16, #tpu.memory_space<vmem>>, %arg14: memref<1x32xf32, #tpu.memory_space<vmem>>, %arg15: memref<8x32xf32, #tpu.memory_space<vmem>>, %arg16: memref<2x1x32xf32, #tpu.memory_space<vmem>>, %arg17: memref<2x1x32xf32, #tpu.memory_space<vmem>>, %arg18: memref<24x32x8xbf16, #tpu.memory_space<vmem>>, %arg19: memref<8x8x32xbf16, #tpu.memory_space<vmem>>, %arg20: memref<2x1x32xf32, #tpu.memory_space<vmem>>, %arg21: memref<2x1x32xf32, #tpu.memory_space<vmem>>, %arg22: memref<2x1x32xf32, #tpu.memory_space<vmem>>, %arg23: memref<2x32x64xbf16, #tpu.memory_space<vmem>>, %arg24: memref<2x1x64xf32, #tpu.memory_space<vmem>>, %arg25: memref<2x64x32xbf16, #tpu.memory_space<vmem>>, %arg26: memref<2x1x32xf32, #tpu.memory_space<vmem>>, %arg27: memref<1x32xf32, #tpu.memory_space<vmem>>, %arg28: memref<1x32xf32, #tpu.memory_space<vmem>>, %arg29: memref<32x512xbf16, #tpu.memory_space<vmem>>, %arg30: memref<1x512xf32, #tpu.memory_space<vmem>>, %arg31: memref<16x512xf32, #tpu.memory_space<vmem>>) attributes {dimension_semantics = [], scalar_prefetch = 0 : i64, scratch_operands = 0 : i64, tpu.core_type = #tpu.core_type<tc>} {
    %c0 = arith.constant 0 : index
    %c0_0 = arith.constant 0 : index
    %0 = vector.load %arg0[%c0, %c0_0] : memref<16x512xf32, #tpu.memory_space<vmem>>, vector<16x512xf32>
    %1 = arith.truncf %0 : vector<16x512xf32> to vector<16x512xbf16>
    %c0_1 = arith.constant 0 : index
    %c0_2 = arith.constant 0 : index
    %2 = vector.load %arg13[%c0_1, %c0_2] : memref<512x32xbf16, #tpu.memory_space<vmem>>, vector<512x32xbf16>
    %cst = arith.constant dense<0.000000e+00> : vector<16x32xf32>
    %3 = tpu.matmul %1, %2, %cst {dimension_numbers = #tpu.dot_dimension_numbers<[1], [0], [0], [1], [0, 0, 1, 1], [], []>} : vector<16x512xbf16>, vector<512x32xbf16>, vector<16x32xf32> -> vector<16x32xf32>
    %c0_3 = arith.constant 0 : index
    %c0_4 = arith.constant 0 : index
    %4 = vector.load %arg14[%c0_3, %c0_4] : memref<1x32xf32, #tpu.memory_space<vmem>>, vector<1x32xf32>
    %5 = vector.broadcast %4 : vector<1x32xf32> to vector<16x32xf32>
    %6 = arith.addf %3, %5 : vector<16x32xf32>
    %c0_5 = arith.constant 0 : index
    %c0_6 = arith.constant 0 : index
    %7 = vector.load %arg1[%c0_5, %c0_6] : memref<2x8xf32, #tpu.memory_space<vmem>>, vector<2x8xf32>
    %c0_7 = arith.constant 0 : index
    %c0_8 = arith.constant 0 : index
    %8 = vector.load %arg4[%c0_7, %c0_8] : memref<8x32xf32, #tpu.memory_space<vmem>>, vector<8x32xf32>
    %cst_9 = arith.constant dense<0.000000e+00> : vector<2x32xf32>
    %9 = tpu.matmul %7, %8, %cst_9 {dimension_numbers = #tpu.dot_dimension_numbers<[1], [0], [0], [1], [0, 0, 1, 1], [], []>} : vector<2x8xf32>, vector<8x32xf32>, vector<2x32xf32> -> vector<2x32xf32>
    %c0_10 = arith.constant 0 : index
    %c0_11 = arith.constant 0 : index
    %10 = vector.load %arg5[%c0_10, %c0_11] : memref<1x32xf32, #tpu.memory_space<vmem>>, vector<1x32xf32>
    %11 = vector.broadcast %10 : vector<1x32xf32> to vector<2x32xf32>
    %12 = arith.addf %9, %11 : vector<2x32xf32>
    %13 = arith.negf %12 : vector<2x32xf32>
    %14 = math.exp %13 : vector<2x32xf32>
    %cst_12 = arith.constant 1.000000e+00 : f32
    %15 = vector.broadcast %cst_12 : f32 to vector<2x32xf32>
    %16 = arith.addf %15, %14 : vector<2x32xf32>
    %17 = arith.divf %15, %16 : vector<2x32xf32>
    %18 = arith.mulf %12, %17 : vector<2x32xf32>
    %c0_13 = arith.constant 0 : index
    %c0_14 = arith.constant 0 : index
    %19 = vector.load %arg6[%c0_13, %c0_14] : memref<32x32xf32, #tpu.memory_space<vmem>>, vector<32x32xf32>
    %cst_15 = arith.constant dense<0.000000e+00> : vector<2x32xf32>
    %20 = tpu.matmul %18, %19, %cst_15 {dimension_numbers = #tpu.dot_dimension_numbers<[1], [0], [0], [1], [0, 0, 1, 1], [], []>} : vector<2x32xf32>, vector<32x32xf32>, vector<2x32xf32> -> vector<2x32xf32>
    %c0_16 = arith.constant 0 : index
    %c0_17 = arith.constant 0 : index
    %21 = vector.load %arg7[%c0_16, %c0_17] : memref<1x32xf32, #tpu.memory_space<vmem>>, vector<1x32xf32>
    %22 = vector.broadcast %21 : vector<1x32xf32> to vector<2x32xf32>
    %23 = arith.addf %20, %22 : vector<2x32xf32>
    %24 = tpu.iota {dimensions = array<i32: 1>} : vector<1x8xi32>
    %25 = arith.sitofp %24 : vector<1x8xi32> to vector<1x8xf32>
    %c0_18 = arith.constant 0 : index
    %c0_19 = arith.constant 0 : index
    %26 = vector.load %arg2[%c0_18, %c0_19] : memref<2x1xf32, #tpu.memory_space<vmem>>, vector<2x1xf32>
    %27 = vector.broadcast %25 : vector<1x8xf32> to vector<2x8xf32>
    %28 = vector.broadcast %26 : vector<2x1xf32> to vector<2x8xf32>
    %29 = arith.cmpf oeq, %27, %28 : vector<2x8xf32>
    %30 = arith.extui %29 : vector<2x8xi1> to vector<2x8xi32>
    %31 = arith.sitofp %30 : vector<2x8xi32> to vector<2x8xf32>
    %c0_20 = arith.constant 0 : index
    %c0_21 = arith.constant 0 : index
    %32 = vector.load %arg8[%c0_20, %c0_21] : memref<8x32xf32, #tpu.memory_space<vmem>>, vector<8x32xf32>
    %cst_22 = arith.constant dense<0.000000e+00> : vector<2x32xf32>
    %33 = tpu.matmul %31, %32, %cst_22 {dimension_numbers = #tpu.dot_dimension_numbers<[1], [0], [0], [1], [0, 0, 1, 1], [], []>} : vector<2x8xf32>, vector<8x32xf32>, vector<2x32xf32> -> vector<2x32xf32>
    %c0_23 = arith.constant 0 : index
    %c0_24 = arith.constant 0 : index
    %34 = vector.load %arg3[%c0_23, %c0_24] : memref<2x1xf32, #tpu.memory_space<vmem>>, vector<2x1xf32>
    %c0_25 = arith.constant 0 : index
    %c0_26 = arith.constant 0 : index
    %35 = vector.load %arg9[%c0_25, %c0_26] : memref<1x8xf32, #tpu.memory_space<vmem>>, vector<1x8xf32>
    %36 = vector.broadcast %34 : vector<2x1xf32> to vector<2x8xf32>
    %37 = vector.broadcast %35 : vector<1x8xf32> to vector<2x8xf32>
    %38 = arith.mulf %36, %37 : vector<2x8xf32>
    %c0_27 = arith.constant 0 : index
    %c0_28 = arith.constant 0 : index
    %39 = vector.load %arg10[%c0_27, %c0_28] : memref<1x8xf32, #tpu.memory_space<vmem>>, vector<1x8xf32>
    %40 = vector.broadcast %39 : vector<1x8xf32> to vector<2x8xf32>
    %41 = arith.addf %38, %40 : vector<2x8xf32>
    %42 = arith.negf %41 : vector<2x8xf32>
    %43 = math.exp %42 : vector<2x8xf32>
    %cst_29 = arith.constant 1.000000e+00 : f32
    %44 = vector.broadcast %cst_29 : f32 to vector<2x8xf32>
    %45 = arith.addf %44, %43 : vector<2x8xf32>
    %46 = arith.divf %44, %45 : vector<2x8xf32>
    %47 = arith.mulf %41, %46 : vector<2x8xf32>
    %c0_30 = arith.constant 0 : index
    %c0_31 = arith.constant 0 : index
    %48 = vector.load %arg11[%c0_30, %c0_31] : memref<8x32xf32, #tpu.memory_space<vmem>>, vector<8x32xf32>
    %cst_32 = arith.constant dense<0.000000e+00> : vector<2x32xf32>
    %49 = tpu.matmul %47, %48, %cst_32 {dimension_numbers = #tpu.dot_dimension_numbers<[1], [0], [0], [1], [0, 0, 1, 1], [], []>} : vector<2x8xf32>, vector<8x32xf32>, vector<2x32xf32> -> vector<2x32xf32>
    %c0_33 = arith.constant 0 : index
    %c0_34 = arith.constant 0 : index
    %50 = vector.load %arg12[%c0_33, %c0_34] : memref<1x32xf32, #tpu.memory_space<vmem>>, vector<1x32xf32>
    %51 = vector.broadcast %50 : vector<1x32xf32> to vector<2x32xf32>
    %52 = arith.addf %49, %51 : vector<2x32xf32>
    %cst_35 = arith.constant 0.000000e+00 : f32
    %53 = vector.broadcast %cst_35 : f32 to vector<5x32xf32>
    %c0_36 = arith.constant 0 : index
    %c0_37 = arith.constant 0 : index
    %54 = vector.load %arg15[%c0_36, %c0_37] : memref<8x32xf32, #tpu.memory_space<vmem>>, vector<8x32xf32>
    %55 = vector.extract_strided_slice %6 {offsets = [0, 0], sizes = [8, 32], strides = [1, 1]} : vector<16x32xf32> to vector<8x32xf32>
    %56 = arith.addf %55, %54 : vector<8x32xf32>
    %57 = vector.extract_strided_slice %23 {offsets = [0, 0], sizes = [1, 32], strides = [1, 1]} : vector<2x32xf32> to vector<1x32xf32>
    %58 = vector.extract_strided_slice %33 {offsets = [0, 0], sizes = [1, 32], strides = [1, 1]} : vector<2x32xf32> to vector<1x32xf32>
    %59 = vector.extract_strided_slice %52 {offsets = [0, 0], sizes = [1, 32], strides = [1, 1]} : vector<2x32xf32> to vector<1x32xf32>
    %60 = tpu.concatenate %56, %57, %58, %59, %53 in 0 : vector<8x32xf32>, vector<1x32xf32>, vector<1x32xf32>, vector<1x32xf32>, vector<5x32xf32> -> vector<16x32xf32>
    %61 = vector.extract_strided_slice %6 {offsets = [8, 0], sizes = [8, 32], strides = [1, 1]} : vector<16x32xf32> to vector<8x32xf32>
    %62 = arith.addf %61, %54 : vector<8x32xf32>
    %63 = vector.extract_strided_slice %23 {offsets = [1, 0], sizes = [1, 32], strides = [1, 1]} : vector<2x32xf32> to vector<1x32xf32>
    %64 = vector.extract_strided_slice %33 {offsets = [1, 0], sizes = [1, 32], strides = [1, 1]} : vector<2x32xf32> to vector<1x32xf32>
    %65 = vector.extract_strided_slice %52 {offsets = [1, 0], sizes = [1, 32], strides = [1, 1]} : vector<2x32xf32> to vector<1x32xf32>
    %66 = tpu.concatenate %62, %63, %64, %65, %53 in 0 : vector<8x32xf32>, vector<1x32xf32>, vector<1x32xf32>, vector<1x32xf32>, vector<5x32xf32> -> vector<16x32xf32>
    %67 = tpu.concatenate %60, %66 in 0 : vector<16x32xf32>, vector<16x32xf32> -> vector<32x32xf32>
    %68 = tpu.iota {dimensions = array<i32: 1>} : vector<1x16xi32>
    %c11_i32 = arith.constant 11 : i32
    %69 = vector.broadcast %c11_i32 : i32 to vector<1x16xi32>
    %70 = arith.cmpi slt, %68, %69 : vector<1x16xi32>
    %c0_38 = arith.constant 0 : index
    %c0_39 = arith.constant 0 : index
    %c0_40 = arith.constant 0 : index
    %71 = vector.load %arg16[%c0_38, %c0_39, %c0_40] : memref<2x1x32xf32, #tpu.memory_space<vmem>>, vector<1x1x32xf32>
    %72 = vector.shape_cast %71 : vector<1x1x32xf32> to vector<1x32xf32>
    %c0_41 = arith.constant 0 : index
    %c0_42 = arith.constant 0 : index
    %c0_43 = arith.constant 0 : index
    %73 = vector.load %arg17[%c0_41, %c0_42, %c0_43] : memref<2x1x32xf32, #tpu.memory_space<vmem>>, vector<1x1x32xf32>
    %74 = vector.shape_cast %73 : vector<1x1x32xf32> to vector<1x32xf32>
    %cst_44 = arith.constant dense<0.000000e+00> : vector<32xf32>
    %75 = vector.multi_reduction <add>, %67, %cst_44 [1] : vector<32x32xf32> to vector<32xf32>
    %76 = vector.shape_cast %75 : vector<32xf32> to vector<32x1xf32>
    %cst_45 = arith.constant 3.200000e+01 : f32
    %77 = vector.broadcast %cst_45 : f32 to vector<32x1xf32>
    %78 = arith.divf %76, %77 : vector<32x1xf32>
    %79 = vector.broadcast %78 : vector<32x1xf32> to vector<32x32xf32>
    %80 = arith.subf %67, %79 : vector<32x32xf32>
    %81 = arith.mulf %80, %80 : vector<32x32xf32>
    %cst_46 = arith.constant dense<0.000000e+00> : vector<32xf32>
    %82 = vector.multi_reduction <add>, %81, %cst_46 [1] : vector<32x32xf32> to vector<32xf32>
    %83 = vector.shape_cast %82 : vector<32xf32> to vector<32x1xf32>
    %cst_47 = arith.constant 3.200000e+01 : f32
    %84 = vector.broadcast %cst_47 : f32 to vector<32x1xf32>
    %85 = arith.divf %83, %84 : vector<32x1xf32>
    %86 = vector.broadcast %78 : vector<32x1xf32> to vector<32x32xf32>
    %87 = arith.subf %67, %86 : vector<32x32xf32>
    %cst_48 = arith.constant 9.99999974E-6 : f32
    %88 = vector.broadcast %cst_48 : f32 to vector<32x1xf32>
    %89 = arith.addf %85, %88 : vector<32x1xf32>
    %90 = math.rsqrt %89 : vector<32x1xf32>
    %91 = vector.broadcast %90 : vector<32x1xf32> to vector<32x32xf32>
    %92 = arith.mulf %87, %91 : vector<32x32xf32>
    %93 = vector.broadcast %72 : vector<1x32xf32> to vector<32x32xf32>
    %94 = arith.mulf %92, %93 : vector<32x32xf32>
    %95 = vector.broadcast %74 : vector<1x32xf32> to vector<32x32xf32>
    %96 = arith.addf %94, %95 : vector<32x32xf32>
    %97 = arith.truncf %96 : vector<32x32xf32> to vector<32x32xbf16>
    %c0_49 = arith.constant 0 : index
    %c0_50 = arith.constant 0 : index
    %c0_51 = arith.constant 0 : index
    %98 = vector.load %arg18[%c0_49, %c0_50, %c0_51] : memref<24x32x8xbf16, #tpu.memory_space<vmem>>, vector<1x32x8xbf16>
    %99 = vector.shape_cast %98 : vector<1x32x8xbf16> to vector<32x8xbf16>
    %cst_52 = arith.constant dense<0.000000e+00> : vector<32x8xf32>
    %100 = tpu.matmul %97, %99, %cst_52 {dimension_numbers = #tpu.dot_dimension_numbers<[1], [0], [0], [1], [0, 0, 1, 1], [], []>} : vector<32x32xbf16>, vector<32x8xbf16>, vector<32x8xf32> -> vector<32x8xf32>
    %101 = arith.truncf %100 : vector<32x8xf32> to vector<32x8xbf16>
    %c4 = arith.constant 4 : index
    %c0_53 = arith.constant 0 : index
    %c0_54 = arith.constant 0 : index
    %102 = vector.load %arg18[%c4, %c0_53, %c0_54] : memref<24x32x8xbf16, #tpu.memory_space<vmem>>, vector<1x32x8xbf16>
    %103 = vector.shape_cast %102 : vector<1x32x8xbf16> to vector<32x8xbf16>
    %cst_55 = arith.constant dense<0.000000e+00> : vector<32x8xf32>
    %104 = tpu.matmul %97, %103, %cst_55 {dimension_numbers = #tpu.dot_dimension_numbers<[1], [0], [0], [1], [0, 0, 1, 1], [], []>} : vector<32x32xbf16>, vector<32x8xbf16>, vector<32x8xf32> -> vector<32x8xf32>
    %105 = arith.truncf %104 : vector<32x8xf32> to vector<32x8xbf16>
    %c8 = arith.constant 8 : index
    %c0_56 = arith.constant 0 : index
    %c0_57 = arith.constant 0 : index
    %106 = vector.load %arg18[%c8, %c0_56, %c0_57] : memref<24x32x8xbf16, #tpu.memory_space<vmem>>, vector<1x32x8xbf16>
    %107 = vector.shape_cast %106 : vector<1x32x8xbf16> to vector<32x8xbf16>
    %cst_58 = arith.constant dense<0.000000e+00> : vector<32x8xf32>
    %108 = tpu.matmul %97, %107, %cst_58 {dimension_numbers = #tpu.dot_dimension_numbers<[1], [0], [0], [1], [0, 0, 1, 1], [], []>} : vector<32x32xbf16>, vector<32x8xbf16>, vector<32x8xf32> -> vector<32x8xf32>
    %109 = arith.truncf %108 : vector<32x8xf32> to vector<32x8xbf16>
    %110 = vector.extract_strided_slice %101 {offsets = [0, 0], sizes = [16, 8], strides = [1, 1]} : vector<32x8xbf16> to vector<16x8xbf16>
    %111 = vector.extract_strided_slice %105 {offsets = [0, 0], sizes = [16, 8], strides = [1, 1]} : vector<32x8xbf16> to vector<16x8xbf16>
    %cst_59 = arith.constant dense<0.000000e+00> : vector<16x16xf32>
    %112 = tpu.matmul %110, %111, %cst_59 {dimension_numbers = #tpu.dot_dimension_numbers<[1], [1], [0], [0], [0, 0, 1, 0], [], []>} : vector<16x8xbf16>, vector<16x8xbf16>, vector<16x16xf32> -> vector<16x16xf32>
    %113 = vector.extract_strided_slice %101 {offsets = [16, 0], sizes = [16, 8], strides = [1, 1]} : vector<32x8xbf16> to vector<16x8xbf16>
    %114 = vector.extract_strided_slice %105 {offsets = [16, 0], sizes = [16, 8], strides = [1, 1]} : vector<32x8xbf16> to vector<16x8xbf16>
    %cst_60 = arith.constant dense<0.000000e+00> : vector<16x16xf32>
    %115 = tpu.matmul %113, %114, %cst_60 {dimension_numbers = #tpu.dot_dimension_numbers<[1], [1], [0], [0], [0, 0, 1, 0], [], []>} : vector<16x8xbf16>, vector<16x8xbf16>, vector<16x16xf32> -> vector<16x16xf32>
    %c1 = arith.constant 1 : index
    %c0_61 = arith.constant 0 : index
    %c0_62 = arith.constant 0 : index
    %116 = vector.load %arg18[%c1, %c0_61, %c0_62] : memref<24x32x8xbf16, #tpu.memory_space<vmem>>, vector<1x32x8xbf16>
    %117 = vector.shape_cast %116 : vector<1x32x8xbf16> to vector<32x8xbf16>
    %cst_63 = arith.constant dense<0.000000e+00> : vector<32x8xf32>
    %118 = tpu.matmul %97, %117, %cst_63 {dimension_numbers = #tpu.dot_dimension_numbers<[1], [0], [0], [1], [0, 0, 1, 1], [], []>} : vector<32x32xbf16>, vector<32x8xbf16>, vector<32x8xf32> -> vector<32x8xf32>
    %119 = arith.truncf %118 : vector<32x8xf32> to vector<32x8xbf16>
    %c5 = arith.constant 5 : index
    %c0_64 = arith.constant 0 : index
    %c0_65 = arith.constant 0 : index
    %120 = vector.load %arg18[%c5, %c0_64, %c0_65] : memref<24x32x8xbf16, #tpu.memory_space<vmem>>, vector<1x32x8xbf16>
    %121 = vector.shape_cast %120 : vector<1x32x8xbf16> to vector<32x8xbf16>
    %cst_66 = arith.constant dense<0.000000e+00> : vector<32x8xf32>
    %122 = tpu.matmul %97, %121, %cst_66 {dimension_numbers = #tpu.dot_dimension_numbers<[1], [0], [0], [1], [0, 0, 1, 1], [], []>} : vector<32x32xbf16>, vector<32x8xbf16>, vector<32x8xf32> -> vector<32x8xf32>
    %123 = arith.truncf %122 : vector<32x8xf32> to vector<32x8xbf16>
    %c9 = arith.constant 9 : index
    %c0_67 = arith.constant 0 : index
    %c0_68 = arith.constant 0 : index
    %124 = vector.load %arg18[%c9, %c0_67, %c0_68] : memref<24x32x8xbf16, #tpu.memory_space<vmem>>, vector<1x32x8xbf16>
    %125 = vector.shape_cast %124 : vector<1x32x8xbf16> to vector<32x8xbf16>
    %cst_69 = arith.constant dense<0.000000e+00> : vector<32x8xf32>
    %126 = tpu.matmul %97, %125, %cst_69 {dimension_numbers = #tpu.dot_dimension_numbers<[1], [0], [0], [1], [0, 0, 1, 1], [], []>} : vector<32x32xbf16>, vector<32x8xbf16>, vector<32x8xf32> -> vector<32x8xf32>
    %127 = arith.truncf %126 : vector<32x8xf32> to vector<32x8xbf16>
    %128 = vector.extract_strided_slice %119 {offsets = [0, 0], sizes = [16, 8], strides = [1, 1]} : vector<32x8xbf16> to vector<16x8xbf16>
    %129 = vector.extract_strided_slice %123 {offsets = [0, 0], sizes = [16, 8], strides = [1, 1]} : vector<32x8xbf16> to vector<16x8xbf16>
    %cst_70 = arith.constant dense<0.000000e+00> : vector<16x16xf32>
    %130 = tpu.matmul %128, %129, %cst_70 {dimension_numbers = #tpu.dot_dimension_numbers<[1], [1], [0], [0], [0, 0, 1, 0], [], []>} : vector<16x8xbf16>, vector<16x8xbf16>, vector<16x16xf32> -> vector<16x16xf32>
    %131 = vector.extract_strided_slice %119 {offsets = [16, 0], sizes = [16, 8], strides = [1, 1]} : vector<32x8xbf16> to vector<16x8xbf16>
    %132 = vector.extract_strided_slice %123 {offsets = [16, 0], sizes = [16, 8], strides = [1, 1]} : vector<32x8xbf16> to vector<16x8xbf16>
    %cst_71 = arith.constant dense<0.000000e+00> : vector<16x16xf32>
    %133 = tpu.matmul %131, %132, %cst_71 {dimension_numbers = #tpu.dot_dimension_numbers<[1], [1], [0], [0], [0, 0, 1, 0], [], []>} : vector<16x8xbf16>, vector<16x8xbf16>, vector<16x16xf32> -> vector<16x16xf32>
    %c2 = arith.constant 2 : index
    %c0_72 = arith.constant 0 : index
    %c0_73 = arith.constant 0 : index
    %134 = vector.load %arg18[%c2, %c0_72, %c0_73] : memref<24x32x8xbf16, #tpu.memory_space<vmem>>, vector<1x32x8xbf16>
    %135 = vector.shape_cast %134 : vector<1x32x8xbf16> to vector<32x8xbf16>
    %cst_74 = arith.constant dense<0.000000e+00> : vector<32x8xf32>
    %136 = tpu.matmul %97, %135, %cst_74 {dimension_numbers = #tpu.dot_dimension_numbers<[1], [0], [0], [1], [0, 0, 1, 1], [], []>} : vector<32x32xbf16>, vector<32x8xbf16>, vector<32x8xf32> -> vector<32x8xf32>
    %137 = arith.truncf %136 : vector<32x8xf32> to vector<32x8xbf16>
    %c6 = arith.constant 6 : index
    %c0_75 = arith.constant 0 : index
    %c0_76 = arith.constant 0 : index
    %138 = vector.load %arg18[%c6, %c0_75, %c0_76] : memref<24x32x8xbf16, #tpu.memory_space<vmem>>, vector<1x32x8xbf16>
    %139 = vector.shape_cast %138 : vector<1x32x8xbf16> to vector<32x8xbf16>
    %cst_77 = arith.constant dense<0.000000e+00> : vector<32x8xf32>
    %140 = tpu.matmul %97, %139, %cst_77 {dimension_numbers = #tpu.dot_dimension_numbers<[1], [0], [0], [1], [0, 0, 1, 1], [], []>} : vector<32x32xbf16>, vector<32x8xbf16>, vector<32x8xf32> -> vector<32x8xf32>
    %141 = arith.truncf %140 : vector<32x8xf32> to vector<32x8xbf16>
    %c10 = arith.constant 10 : index
    %c0_78 = arith.constant 0 : index
    %c0_79 = arith.constant 0 : index
    %142 = vector.load %arg18[%c10, %c0_78, %c0_79] : memref<24x32x8xbf16, #tpu.memory_space<vmem>>, vector<1x32x8xbf16>
    %143 = vector.shape_cast %142 : vector<1x32x8xbf16> to vector<32x8xbf16>
    %cst_80 = arith.constant dense<0.000000e+00> : vector<32x8xf32>
    %144 = tpu.matmul %97, %143, %cst_80 {dimension_numbers = #tpu.dot_dimension_numbers<[1], [0], [0], [1], [0, 0, 1, 1], [], []>} : vector<32x32xbf16>, vector<32x8xbf16>, vector<32x8xf32> -> vector<32x8xf32>
    %145 = arith.truncf %144 : vector<32x8xf32> to vector<32x8xbf16>
    %146 = vector.extract_strided_slice %137 {offsets = [0, 0], sizes = [16, 8], strides = [1, 1]} : vector<32x8xbf16> to vector<16x8xbf16>
    %147 = vector.extract_strided_slice %141 {offsets = [0, 0], sizes = [16, 8], strides = [1, 1]} : vector<32x8xbf16> to vector<16x8xbf16>
    %cst_81 = arith.constant dense<0.000000e+00> : vector<16x16xf32>
    %148 = tpu.matmul %146, %147, %cst_81 {dimension_numbers = #tpu.dot_dimension_numbers<[1], [1], [0], [0], [0, 0, 1, 0], [], []>} : vector<16x8xbf16>, vector<16x8xbf16>, vector<16x16xf32> -> vector<16x16xf32>
    %149 = vector.extract_strided_slice %137 {offsets = [16, 0], sizes = [16, 8], strides = [1, 1]} : vector<32x8xbf16> to vector<16x8xbf16>
    %150 = vector.extract_strided_slice %141 {offsets = [16, 0], sizes = [16, 8], strides = [1, 1]} : vector<32x8xbf16> to vector<16x8xbf16>
    %cst_82 = arith.constant dense<0.000000e+00> : vector<16x16xf32>
    %151 = tpu.matmul %149, %150, %cst_82 {dimension_numbers = #tpu.dot_dimension_numbers<[1], [1], [0], [0], [0, 0, 1, 0], [], []>} : vector<16x8xbf16>, vector<16x8xbf16>, vector<16x16xf32> -> vector<16x16xf32>
    %c3 = arith.constant 3 : index
    %c0_83 = arith.constant 0 : index
    %c0_84 = arith.constant 0 : index
    %152 = vector.load %arg18[%c3, %c0_83, %c0_84] : memref<24x32x8xbf16, #tpu.memory_space<vmem>>, vector<1x32x8xbf16>
    %153 = vector.shape_cast %152 : vector<1x32x8xbf16> to vector<32x8xbf16>
    %cst_85 = arith.constant dense<0.000000e+00> : vector<32x8xf32>
    %154 = tpu.matmul %97, %153, %cst_85 {dimension_numbers = #tpu.dot_dimension_numbers<[1], [0], [0], [1], [0, 0, 1, 1], [], []>} : vector<32x32xbf16>, vector<32x8xbf16>, vector<32x8xf32> -> vector<32x8xf32>
    %155 = arith.truncf %154 : vector<32x8xf32> to vector<32x8xbf16>
    %c7 = arith.constant 7 : index
    %c0_86 = arith.constant 0 : index
    %c0_87 = arith.constant 0 : index
    %156 = vector.load %arg18[%c7, %c0_86, %c0_87] : memref<24x32x8xbf16, #tpu.memory_space<vmem>>, vector<1x32x8xbf16>
    %157 = vector.shape_cast %156 : vector<1x32x8xbf16> to vector<32x8xbf16>
    %cst_88 = arith.constant dense<0.000000e+00> : vector<32x8xf32>
    %158 = tpu.matmul %97, %157, %cst_88 {dimension_numbers = #tpu.dot_dimension_numbers<[1], [0], [0], [1], [0, 0, 1, 1], [], []>} : vector<32x32xbf16>, vector<32x8xbf16>, vector<32x8xf32> -> vector<32x8xf32>
    %159 = arith.truncf %158 : vector<32x8xf32> to vector<32x8xbf16>
    %c11 = arith.constant 11 : index
    %c0_89 = arith.constant 0 : index
    %c0_90 = arith.constant 0 : index
    %160 = vector.load %arg18[%c11, %c0_89, %c0_90] : memref<24x32x8xbf16, #tpu.memory_space<vmem>>, vector<1x32x8xbf16>
    %161 = vector.shape_cast %160 : vector<1x32x8xbf16> to vector<32x8xbf16>
    %cst_91 = arith.constant dense<0.000000e+00> : vector<32x8xf32>
    %162 = tpu.matmul %97, %161, %cst_91 {dimension_numbers = #tpu.dot_dimension_numbers<[1], [0], [0], [1], [0, 0, 1, 1], [], []>} : vector<32x32xbf16>, vector<32x8xbf16>, vector<32x8xf32> -> vector<32x8xf32>
    %163 = arith.truncf %162 : vector<32x8xf32> to vector<32x8xbf16>
    %164 = vector.extract_strided_slice %155 {offsets = [0, 0], sizes = [16, 8], strides = [1, 1]} : vector<32x8xbf16> to vector<16x8xbf16>
    %165 = vector.extract_strided_slice %159 {offsets = [0, 0], sizes = [16, 8], strides = [1, 1]} : vector<32x8xbf16> to vector<16x8xbf16>
    %cst_92 = arith.constant dense<0.000000e+00> : vector<16x16xf32>
    %166 = tpu.matmul %164, %165, %cst_92 {dimension_numbers = #tpu.dot_dimension_numbers<[1], [1], [0], [0], [0, 0, 1, 0], [], []>} : vector<16x8xbf16>, vector<16x8xbf16>, vector<16x16xf32> -> vector<16x16xf32>
    %167 = vector.extract_strided_slice %155 {offsets = [16, 0], sizes = [16, 8], strides = [1, 1]} : vector<32x8xbf16> to vector<16x8xbf16>
    %168 = vector.extract_strided_slice %159 {offsets = [16, 0], sizes = [16, 8], strides = [1, 1]} : vector<32x8xbf16> to vector<16x8xbf16>
    %cst_93 = arith.constant dense<0.000000e+00> : vector<16x16xf32>
    %169 = tpu.matmul %167, %168, %cst_93 {dimension_numbers = #tpu.dot_dimension_numbers<[1], [1], [0], [0], [0, 0, 1, 0], [], []>} : vector<16x8xbf16>, vector<16x8xbf16>, vector<16x16xf32> -> vector<16x16xf32>
    %170 = tpu.concatenate %112, %115, %130, %133, %148, %151, %166, %169 in 0 : vector<16x16xf32>, vector<16x16xf32>, vector<16x16xf32>, vector<16x16xf32>, vector<16x16xf32>, vector<16x16xf32>, vector<16x16xf32>, vector<16x16xf32> -> vector<128x16xf32>
    %cst_94 = arith.constant -1.000000e+30 : f32
    %171 = vector.shape_cast %70 : vector<1x16xi1> to vector<1x16xi1>
    %172 = vector.broadcast %171 : vector<1x16xi1> to vector<128x16xi1>
    %173 = vector.broadcast %cst_94 : f32 to vector<128x16xf32>
    %174 = arith.select %172, %170, %173 : vector<128x16xi1>, vector<128x16xf32>
    %cst_95 = arith.constant dense<0xFF800000> : vector<128xf32>
    %175 = vector.multi_reduction <maximumf>, %174, %cst_95 [1] : vector<128x16xf32> to vector<128xf32>
    %176 = vector.shape_cast %175 : vector<128xf32> to vector<128x1xf32>
    %177 = vector.broadcast %176 : vector<128x1xf32> to vector<128x16xf32>
    %178 = arith.subf %174, %177 : vector<128x16xf32>
    %179 = math.exp %178 : vector<128x16xf32>
    %cst_96 = arith.constant dense<0.000000e+00> : vector<128xf32>
    %180 = vector.multi_reduction <add>, %179, %cst_96 [1] : vector<128x16xf32> to vector<128xf32>
    %181 = vector.shape_cast %180 : vector<128xf32> to vector<128x1xf32>
    %182 = tpu.reciprocal %181 {approx = true} : vector<128x1xf32> -> vector<128x1xf32>
    %183 = vector.broadcast %182 : vector<128x1xf32> to vector<128x16xf32>
    %184 = arith.mulf %179, %183 : vector<128x16xf32>
    %185 = arith.truncf %184 : vector<128x16xf32> to vector<128x16xbf16>
    %c0_97 = arith.constant 0 : index
    %c0_98 = arith.constant 0 : index
    %c0_99 = arith.constant 0 : index
    %186 = vector.load %arg20[%c0_97, %c0_98, %c0_99] : memref<2x1x32xf32, #tpu.memory_space<vmem>>, vector<1x1x32xf32>
    %187 = vector.shape_cast %186 : vector<1x1x32xf32> to vector<1x32xf32>
    %188 = vector.extract_strided_slice %185 {offsets = [0, 0], sizes = [16, 16], strides = [1, 1]} : vector<128x16xbf16> to vector<16x16xbf16>
    %189 = vector.extract_strided_slice %109 {offsets = [0, 0], sizes = [16, 8], strides = [1, 1]} : vector<32x8xbf16> to vector<16x8xbf16>
    %cst_100 = arith.constant dense<0.000000e+00> : vector<16x8xf32>
    %190 = tpu.matmul %188, %189, %cst_100 {dimension_numbers = #tpu.dot_dimension_numbers<[1], [0], [0], [1], [0, 0, 1, 1], [], []>} : vector<16x16xbf16>, vector<16x8xbf16>, vector<16x8xf32> -> vector<16x8xf32>
    %191 = arith.truncf %190 : vector<16x8xf32> to vector<16x8xbf16>
    %c0_101 = arith.constant 0 : index
    %c0_102 = arith.constant 0 : index
    %c0_103 = arith.constant 0 : index
    %192 = vector.load %arg19[%c0_101, %c0_102, %c0_103] : memref<8x8x32xbf16, #tpu.memory_space<vmem>>, vector<1x8x32xbf16>
    %193 = vector.shape_cast %192 : vector<1x8x32xbf16> to vector<8x32xbf16>
    %cst_104 = arith.constant dense<0.000000e+00> : vector<16x32xf32>
    %194 = tpu.matmul %191, %193, %cst_104 {dimension_numbers = #tpu.dot_dimension_numbers<[1], [0], [0], [1], [0, 0, 1, 1], [], []>} : vector<16x8xbf16>, vector<8x32xbf16>, vector<16x32xf32> -> vector<16x32xf32>
    %195 = vector.broadcast %187 : vector<1x32xf32> to vector<16x32xf32>
    %196 = arith.addf %195, %194 : vector<16x32xf32>
    %197 = vector.extract_strided_slice %185 {offsets = [32, 0], sizes = [16, 16], strides = [1, 1]} : vector<128x16xbf16> to vector<16x16xbf16>
    %198 = vector.extract_strided_slice %127 {offsets = [0, 0], sizes = [16, 8], strides = [1, 1]} : vector<32x8xbf16> to vector<16x8xbf16>
    %cst_105 = arith.constant dense<0.000000e+00> : vector<16x8xf32>
    %199 = tpu.matmul %197, %198, %cst_105 {dimension_numbers = #tpu.dot_dimension_numbers<[1], [0], [0], [1], [0, 0, 1, 1], [], []>} : vector<16x16xbf16>, vector<16x8xbf16>, vector<16x8xf32> -> vector<16x8xf32>
    %200 = arith.truncf %199 : vector<16x8xf32> to vector<16x8xbf16>
    %c1_106 = arith.constant 1 : index
    %c0_107 = arith.constant 0 : index
    %c0_108 = arith.constant 0 : index
    %201 = vector.load %arg19[%c1_106, %c0_107, %c0_108] : memref<8x8x32xbf16, #tpu.memory_space<vmem>>, vector<1x8x32xbf16>
    %202 = vector.shape_cast %201 : vector<1x8x32xbf16> to vector<8x32xbf16>
    %cst_109 = arith.constant dense<0.000000e+00> : vector<16x32xf32>
    %203 = tpu.matmul %200, %202, %cst_109 {dimension_numbers = #tpu.dot_dimension_numbers<[1], [0], [0], [1], [0, 0, 1, 1], [], []>} : vector<16x8xbf16>, vector<8x32xbf16>, vector<16x32xf32> -> vector<16x32xf32>
    %204 = arith.addf %196, %203 : vector<16x32xf32>
    %205 = vector.extract_strided_slice %185 {offsets = [64, 0], sizes = [16, 16], strides = [1, 1]} : vector<128x16xbf16> to vector<16x16xbf16>
    %206 = vector.extract_strided_slice %145 {offsets = [0, 0], sizes = [16, 8], strides = [1, 1]} : vector<32x8xbf16> to vector<16x8xbf16>
    %cst_110 = arith.constant dense<0.000000e+00> : vector<16x8xf32>
    %207 = tpu.matmul %205, %206, %cst_110 {dimension_numbers = #tpu.dot_dimension_numbers<[1], [0], [0], [1], [0, 0, 1, 1], [], []>} : vector<16x16xbf16>, vector<16x8xbf16>, vector<16x8xf32> -> vector<16x8xf32>
    %208 = arith.truncf %207 : vector<16x8xf32> to vector<16x8xbf16>
    %c2_111 = arith.constant 2 : index
    %c0_112 = arith.constant 0 : index
    %c0_113 = arith.constant 0 : index
    %209 = vector.load %arg19[%c2_111, %c0_112, %c0_113] : memref<8x8x32xbf16, #tpu.memory_space<vmem>>, vector<1x8x32xbf16>
    %210 = vector.shape_cast %209 : vector<1x8x32xbf16> to vector<8x32xbf16>
    %cst_114 = arith.constant dense<0.000000e+00> : vector<16x32xf32>
    %211 = tpu.matmul %208, %210, %cst_114 {dimension_numbers = #tpu.dot_dimension_numbers<[1], [0], [0], [1], [0, 0, 1, 1], [], []>} : vector<16x8xbf16>, vector<8x32xbf16>, vector<16x32xf32> -> vector<16x32xf32>
    %212 = arith.addf %204, %211 : vector<16x32xf32>
    %213 = vector.extract_strided_slice %185 {offsets = [96, 0], sizes = [16, 16], strides = [1, 1]} : vector<128x16xbf16> to vector<16x16xbf16>
    %214 = vector.extract_strided_slice %163 {offsets = [0, 0], sizes = [16, 8], strides = [1, 1]} : vector<32x8xbf16> to vector<16x8xbf16>
    %cst_115 = arith.constant dense<0.000000e+00> : vector<16x8xf32>
    %215 = tpu.matmul %213, %214, %cst_115 {dimension_numbers = #tpu.dot_dimension_numbers<[1], [0], [0], [1], [0, 0, 1, 1], [], []>} : vector<16x16xbf16>, vector<16x8xbf16>, vector<16x8xf32> -> vector<16x8xf32>
    %216 = arith.truncf %215 : vector<16x8xf32> to vector<16x8xbf16>
    %c3_116 = arith.constant 3 : index
    %c0_117 = arith.constant 0 : index
    %c0_118 = arith.constant 0 : index
    %217 = vector.load %arg19[%c3_116, %c0_117, %c0_118] : memref<8x8x32xbf16, #tpu.memory_space<vmem>>, vector<1x8x32xbf16>
    %218 = vector.shape_cast %217 : vector<1x8x32xbf16> to vector<8x32xbf16>
    %cst_119 = arith.constant dense<0.000000e+00> : vector<16x32xf32>
    %219 = tpu.matmul %216, %218, %cst_119 {dimension_numbers = #tpu.dot_dimension_numbers<[1], [0], [0], [1], [0, 0, 1, 1], [], []>} : vector<16x8xbf16>, vector<8x32xbf16>, vector<16x32xf32> -> vector<16x32xf32>
    %220 = arith.addf %212, %219 : vector<16x32xf32>
    %c0_120 = arith.constant 0 : index
    %c0_121 = arith.constant 0 : index
    %c0_122 = arith.constant 0 : index
    %221 = vector.load %arg20[%c0_120, %c0_121, %c0_122] : memref<2x1x32xf32, #tpu.memory_space<vmem>>, vector<1x1x32xf32>
    %222 = vector.shape_cast %221 : vector<1x1x32xf32> to vector<1x32xf32>
    %223 = vector.extract_strided_slice %185 {offsets = [16, 0], sizes = [16, 16], strides = [1, 1]} : vector<128x16xbf16> to vector<16x16xbf16>
    %224 = vector.extract_strided_slice %109 {offsets = [16, 0], sizes = [16, 8], strides = [1, 1]} : vector<32x8xbf16> to vector<16x8xbf16>
    %cst_123 = arith.constant dense<0.000000e+00> : vector<16x8xf32>
    %225 = tpu.matmul %223, %224, %cst_123 {dimension_numbers = #tpu.dot_dimension_numbers<[1], [0], [0], [1], [0, 0, 1, 1], [], []>} : vector<16x16xbf16>, vector<16x8xbf16>, vector<16x8xf32> -> vector<16x8xf32>
    %226 = arith.truncf %225 : vector<16x8xf32> to vector<16x8xbf16>
    %c0_124 = arith.constant 0 : index
    %c0_125 = arith.constant 0 : index
    %c0_126 = arith.constant 0 : index
    %227 = vector.load %arg19[%c0_124, %c0_125, %c0_126] : memref<8x8x32xbf16, #tpu.memory_space<vmem>>, vector<1x8x32xbf16>
    %228 = vector.shape_cast %227 : vector<1x8x32xbf16> to vector<8x32xbf16>
    %cst_127 = arith.constant dense<0.000000e+00> : vector<16x32xf32>
    %229 = tpu.matmul %226, %228, %cst_127 {dimension_numbers = #tpu.dot_dimension_numbers<[1], [0], [0], [1], [0, 0, 1, 1], [], []>} : vector<16x8xbf16>, vector<8x32xbf16>, vector<16x32xf32> -> vector<16x32xf32>
    %230 = vector.broadcast %222 : vector<1x32xf32> to vector<16x32xf32>
    %231 = arith.addf %230, %229 : vector<16x32xf32>
    %232 = vector.extract_strided_slice %185 {offsets = [48, 0], sizes = [16, 16], strides = [1, 1]} : vector<128x16xbf16> to vector<16x16xbf16>
    %233 = vector.extract_strided_slice %127 {offsets = [16, 0], sizes = [16, 8], strides = [1, 1]} : vector<32x8xbf16> to vector<16x8xbf16>
    %cst_128 = arith.constant dense<0.000000e+00> : vector<16x8xf32>
    %234 = tpu.matmul %232, %233, %cst_128 {dimension_numbers = #tpu.dot_dimension_numbers<[1], [0], [0], [1], [0, 0, 1, 1], [], []>} : vector<16x16xbf16>, vector<16x8xbf16>, vector<16x8xf32> -> vector<16x8xf32>
    %235 = arith.truncf %234 : vector<16x8xf32> to vector<16x8xbf16>
    %c1_129 = arith.constant 1 : index
    %c0_130 = arith.constant 0 : index
    %c0_131 = arith.constant 0 : index
    %236 = vector.load %arg19[%c1_129, %c0_130, %c0_131] : memref<8x8x32xbf16, #tpu.memory_space<vmem>>, vector<1x8x32xbf16>
    %237 = vector.shape_cast %236 : vector<1x8x32xbf16> to vector<8x32xbf16>
    %cst_132 = arith.constant dense<0.000000e+00> : vector<16x32xf32>
    %238 = tpu.matmul %235, %237, %cst_132 {dimension_numbers = #tpu.dot_dimension_numbers<[1], [0], [0], [1], [0, 0, 1, 1], [], []>} : vector<16x8xbf16>, vector<8x32xbf16>, vector<16x32xf32> -> vector<16x32xf32>
    %239 = arith.addf %231, %238 : vector<16x32xf32>
    %240 = vector.extract_strided_slice %185 {offsets = [80, 0], sizes = [16, 16], strides = [1, 1]} : vector<128x16xbf16> to vector<16x16xbf16>
    %241 = vector.extract_strided_slice %145 {offsets = [16, 0], sizes = [16, 8], strides = [1, 1]} : vector<32x8xbf16> to vector<16x8xbf16>
    %cst_133 = arith.constant dense<0.000000e+00> : vector<16x8xf32>
    %242 = tpu.matmul %240, %241, %cst_133 {dimension_numbers = #tpu.dot_dimension_numbers<[1], [0], [0], [1], [0, 0, 1, 1], [], []>} : vector<16x16xbf16>, vector<16x8xbf16>, vector<16x8xf32> -> vector<16x8xf32>
    %243 = arith.truncf %242 : vector<16x8xf32> to vector<16x8xbf16>
    %c2_134 = arith.constant 2 : index
    %c0_135 = arith.constant 0 : index
    %c0_136 = arith.constant 0 : index
    %244 = vector.load %arg19[%c2_134, %c0_135, %c0_136] : memref<8x8x32xbf16, #tpu.memory_space<vmem>>, vector<1x8x32xbf16>
    %245 = vector.shape_cast %244 : vector<1x8x32xbf16> to vector<8x32xbf16>
    %cst_137 = arith.constant dense<0.000000e+00> : vector<16x32xf32>
    %246 = tpu.matmul %243, %245, %cst_137 {dimension_numbers = #tpu.dot_dimension_numbers<[1], [0], [0], [1], [0, 0, 1, 1], [], []>} : vector<16x8xbf16>, vector<8x32xbf16>, vector<16x32xf32> -> vector<16x32xf32>
    %247 = arith.addf %239, %246 : vector<16x32xf32>
    %248 = vector.extract_strided_slice %185 {offsets = [112, 0], sizes = [16, 16], strides = [1, 1]} : vector<128x16xbf16> to vector<16x16xbf16>
    %249 = vector.extract_strided_slice %163 {offsets = [16, 0], sizes = [16, 8], strides = [1, 1]} : vector<32x8xbf16> to vector<16x8xbf16>
    %cst_138 = arith.constant dense<0.000000e+00> : vector<16x8xf32>
    %250 = tpu.matmul %248, %249, %cst_138 {dimension_numbers = #tpu.dot_dimension_numbers<[1], [0], [0], [1], [0, 0, 1, 1], [], []>} : vector<16x16xbf16>, vector<16x8xbf16>, vector<16x8xf32> -> vector<16x8xf32>
    %251 = arith.truncf %250 : vector<16x8xf32> to vector<16x8xbf16>
    %c3_139 = arith.constant 3 : index
    %c0_140 = arith.constant 0 : index
    %c0_141 = arith.constant 0 : index
    %252 = vector.load %arg19[%c3_139, %c0_140, %c0_141] : memref<8x8x32xbf16, #tpu.memory_space<vmem>>, vector<1x8x32xbf16>
    %253 = vector.shape_cast %252 : vector<1x8x32xbf16> to vector<8x32xbf16>
    %cst_142 = arith.constant dense<0.000000e+00> : vector<16x32xf32>
    %254 = tpu.matmul %251, %253, %cst_142 {dimension_numbers = #tpu.dot_dimension_numbers<[1], [0], [0], [1], [0, 0, 1, 1], [], []>} : vector<16x8xbf16>, vector<8x32xbf16>, vector<16x32xf32> -> vector<16x32xf32>
    %255 = arith.addf %247, %254 : vector<16x32xf32>
    %256 = tpu.concatenate %220, %255 in 0 : vector<16x32xf32>, vector<16x32xf32> -> vector<32x32xf32>
    %257 = arith.addf %67, %256 : vector<32x32xf32>
    %c0_143 = arith.constant 0 : index
    %c0_144 = arith.constant 0 : index
    %c0_145 = arith.constant 0 : index
    %258 = vector.load %arg21[%c0_143, %c0_144, %c0_145] : memref<2x1x32xf32, #tpu.memory_space<vmem>>, vector<1x1x32xf32>
    %259 = vector.shape_cast %258 : vector<1x1x32xf32> to vector<1x32xf32>
    %c0_146 = arith.constant 0 : index
    %c0_147 = arith.constant 0 : index
    %c0_148 = arith.constant 0 : index
    %260 = vector.load %arg22[%c0_146, %c0_147, %c0_148] : memref<2x1x32xf32, #tpu.memory_space<vmem>>, vector<1x1x32xf32>
    %261 = vector.shape_cast %260 : vector<1x1x32xf32> to vector<1x32xf32>
    %cst_149 = arith.constant dense<0.000000e+00> : vector<32xf32>
    %262 = vector.multi_reduction <add>, %257, %cst_149 [1] : vector<32x32xf32> to vector<32xf32>
    %263 = vector.shape_cast %262 : vector<32xf32> to vector<32x1xf32>
    %cst_150 = arith.constant 3.200000e+01 : f32
    %264 = vector.broadcast %cst_150 : f32 to vector<32x1xf32>
    %265 = arith.divf %263, %264 : vector<32x1xf32>
    %266 = vector.broadcast %265 : vector<32x1xf32> to vector<32x32xf32>
    %267 = arith.subf %257, %266 : vector<32x32xf32>
    %268 = arith.mulf %267, %267 : vector<32x32xf32>
    %cst_151 = arith.constant dense<0.000000e+00> : vector<32xf32>
    %269 = vector.multi_reduction <add>, %268, %cst_151 [1] : vector<32x32xf32> to vector<32xf32>
    %270 = vector.shape_cast %269 : vector<32xf32> to vector<32x1xf32>
    %cst_152 = arith.constant 3.200000e+01 : f32
    %271 = vector.broadcast %cst_152 : f32 to vector<32x1xf32>
    %272 = arith.divf %270, %271 : vector<32x1xf32>
    %273 = vector.broadcast %265 : vector<32x1xf32> to vector<32x32xf32>
    %274 = arith.subf %257, %273 : vector<32x32xf32>
    %cst_153 = arith.constant 9.99999974E-6 : f32
    %275 = vector.broadcast %cst_153 : f32 to vector<32x1xf32>
    %276 = arith.addf %272, %275 : vector<32x1xf32>
    %277 = math.rsqrt %276 : vector<32x1xf32>
    %278 = vector.broadcast %277 : vector<32x1xf32> to vector<32x32xf32>
    %279 = arith.mulf %274, %278 : vector<32x32xf32>
    %280 = vector.broadcast %259 : vector<1x32xf32> to vector<32x32xf32>
    %281 = arith.mulf %279, %280 : vector<32x32xf32>
    %282 = vector.broadcast %261 : vector<1x32xf32> to vector<32x32xf32>
    %283 = arith.addf %281, %282 : vector<32x32xf32>
    %284 = arith.truncf %283 : vector<32x32xf32> to vector<32x32xbf16>
    %c0_154 = arith.constant 0 : index
    %c0_155 = arith.constant 0 : index
    %c0_156 = arith.constant 0 : index
    %285 = vector.load %arg23[%c0_154, %c0_155, %c0_156] : memref<2x32x64xbf16, #tpu.memory_space<vmem>>, vector<1x32x64xbf16>
    %286 = vector.shape_cast %285 : vector<1x32x64xbf16> to vector<32x64xbf16>
    %cst_157 = arith.constant dense<0.000000e+00> : vector<32x64xf32>
    %287 = tpu.matmul %284, %286, %cst_157 {dimension_numbers = #tpu.dot_dimension_numbers<[1], [0], [0], [1], [0, 0, 1, 1], [], []>} : vector<32x32xbf16>, vector<32x64xbf16>, vector<32x64xf32> -> vector<32x64xf32>
    %c0_158 = arith.constant 0 : index
    %c0_159 = arith.constant 0 : index
    %c0_160 = arith.constant 0 : index
    %288 = vector.load %arg24[%c0_158, %c0_159, %c0_160] : memref<2x1x64xf32, #tpu.memory_space<vmem>>, vector<1x1x64xf32>
    %289 = vector.shape_cast %288 : vector<1x1x64xf32> to vector<1x64xf32>
    %290 = vector.broadcast %289 : vector<1x64xf32> to vector<32x64xf32>
    %291 = arith.addf %287, %290 : vector<32x64xf32>
    %292 = arith.mulf %291, %291 : vector<32x64xf32>
    %293 = arith.mulf %291, %292 : vector<32x64xf32>
    %cst_161 = arith.constant 4.471500e-02 : f32
    %294 = vector.broadcast %cst_161 : f32 to vector<32x64xf32>
    %295 = arith.mulf %294, %293 : vector<32x64xf32>
    %296 = arith.addf %291, %295 : vector<32x64xf32>
    %cst_162 = arith.constant 0.797884583 : f32
    %297 = vector.broadcast %cst_162 : f32 to vector<32x64xf32>
    %298 = arith.mulf %297, %296 : vector<32x64xf32>
    %299 = math.tanh %298 : vector<32x64xf32>
    %cst_163 = arith.constant 1.000000e+00 : f32
    %300 = vector.broadcast %cst_163 : f32 to vector<32x64xf32>
    %301 = arith.addf %300, %299 : vector<32x64xf32>
    %cst_164 = arith.constant 5.000000e-01 : f32
    %302 = vector.broadcast %cst_164 : f32 to vector<32x64xf32>
    %303 = arith.mulf %302, %301 : vector<32x64xf32>
    %304 = arith.mulf %291, %303 : vector<32x64xf32>
    %305 = arith.truncf %304 : vector<32x64xf32> to vector<32x64xbf16>
    %c0_165 = arith.constant 0 : index
    %c0_166 = arith.constant 0 : index
    %c0_167 = arith.constant 0 : index
    %306 = vector.load %arg25[%c0_165, %c0_166, %c0_167] : memref<2x64x32xbf16, #tpu.memory_space<vmem>>, vector<1x64x32xbf16>
    %307 = vector.shape_cast %306 : vector<1x64x32xbf16> to vector<64x32xbf16>
    %cst_168 = arith.constant dense<0.000000e+00> : vector<32x32xf32>
    %308 = tpu.matmul %305, %307, %cst_168 {dimension_numbers = #tpu.dot_dimension_numbers<[1], [0], [0], [1], [0, 0, 1, 1], [], []>} : vector<32x64xbf16>, vector<64x32xbf16>, vector<32x32xf32> -> vector<32x32xf32>
    %c0_169 = arith.constant 0 : index
    %c0_170 = arith.constant 0 : index
    %c0_171 = arith.constant 0 : index
    %309 = vector.load %arg26[%c0_169, %c0_170, %c0_171] : memref<2x1x32xf32, #tpu.memory_space<vmem>>, vector<1x1x32xf32>
    %310 = vector.shape_cast %309 : vector<1x1x32xf32> to vector<1x32xf32>
    %311 = vector.broadcast %310 : vector<1x32xf32> to vector<32x32xf32>
    %312 = arith.addf %308, %311 : vector<32x32xf32>
    %313 = arith.addf %257, %312 : vector<32x32xf32>
    %c1_172 = arith.constant 1 : index
    %c0_173 = arith.constant 0 : index
    %c0_174 = arith.constant 0 : index
    %314 = vector.load %arg16[%c1_172, %c0_173, %c0_174] : memref<2x1x32xf32, #tpu.memory_space<vmem>>, vector<1x1x32xf32>
    %315 = vector.shape_cast %314 : vector<1x1x32xf32> to vector<1x32xf32>
    %c1_175 = arith.constant 1 : index
    %c0_176 = arith.constant 0 : index
    %c0_177 = arith.constant 0 : index
    %316 = vector.load %arg17[%c1_175, %c0_176, %c0_177] : memref<2x1x32xf32, #tpu.memory_space<vmem>>, vector<1x1x32xf32>
    %317 = vector.shape_cast %316 : vector<1x1x32xf32> to vector<1x32xf32>
    %cst_178 = arith.constant dense<0.000000e+00> : vector<32xf32>
    %318 = vector.multi_reduction <add>, %313, %cst_178 [1] : vector<32x32xf32> to vector<32xf32>
    %319 = vector.shape_cast %318 : vector<32xf32> to vector<32x1xf32>
    %cst_179 = arith.constant 3.200000e+01 : f32
    %320 = vector.broadcast %cst_179 : f32 to vector<32x1xf32>
    %321 = arith.divf %319, %320 : vector<32x1xf32>
    %322 = vector.broadcast %321 : vector<32x1xf32> to vector<32x32xf32>
    %323 = arith.subf %313, %322 : vector<32x32xf32>
    %324 = arith.mulf %323, %323 : vector<32x32xf32>
    %cst_180 = arith.constant dense<0.000000e+00> : vector<32xf32>
    %325 = vector.multi_reduction <add>, %324, %cst_180 [1] : vector<32x32xf32> to vector<32xf32>
    %326 = vector.shape_cast %325 : vector<32xf32> to vector<32x1xf32>
    %cst_181 = arith.constant 3.200000e+01 : f32
    %327 = vector.broadcast %cst_181 : f32 to vector<32x1xf32>
    %328 = arith.divf %326, %327 : vector<32x1xf32>
    %329 = vector.broadcast %321 : vector<32x1xf32> to vector<32x32xf32>
    %330 = arith.subf %313, %329 : vector<32x32xf32>
    %cst_182 = arith.constant 9.99999974E-6 : f32
    %331 = vector.broadcast %cst_182 : f32 to vector<32x1xf32>
    %332 = arith.addf %328, %331 : vector<32x1xf32>
    %333 = math.rsqrt %332 : vector<32x1xf32>
    %334 = vector.broadcast %333 : vector<32x1xf32> to vector<32x32xf32>
    %335 = arith.mulf %330, %334 : vector<32x32xf32>
    %336 = vector.broadcast %315 : vector<1x32xf32> to vector<32x32xf32>
    %337 = arith.mulf %335, %336 : vector<32x32xf32>
    %338 = vector.broadcast %317 : vector<1x32xf32> to vector<32x32xf32>
    %339 = arith.addf %337, %338 : vector<32x32xf32>
    %340 = arith.truncf %339 : vector<32x32xf32> to vector<32x32xbf16>
    %c12 = arith.constant 12 : index
    %c0_183 = arith.constant 0 : index
    %c0_184 = arith.constant 0 : index
    %341 = vector.load %arg18[%c12, %c0_183, %c0_184] : memref<24x32x8xbf16, #tpu.memory_space<vmem>>, vector<1x32x8xbf16>
    %342 = vector.shape_cast %341 : vector<1x32x8xbf16> to vector<32x8xbf16>
    %cst_185 = arith.constant dense<0.000000e+00> : vector<32x8xf32>
    %343 = tpu.matmul %340, %342, %cst_185 {dimension_numbers = #tpu.dot_dimension_numbers<[1], [0], [0], [1], [0, 0, 1, 1], [], []>} : vector<32x32xbf16>, vector<32x8xbf16>, vector<32x8xf32> -> vector<32x8xf32>
    %344 = arith.truncf %343 : vector<32x8xf32> to vector<32x8xbf16>
    %c16 = arith.constant 16 : index
    %c0_186 = arith.constant 0 : index
    %c0_187 = arith.constant 0 : index
    %345 = vector.load %arg18[%c16, %c0_186, %c0_187] : memref<24x32x8xbf16, #tpu.memory_space<vmem>>, vector<1x32x8xbf16>
    %346 = vector.shape_cast %345 : vector<1x32x8xbf16> to vector<32x8xbf16>
    %cst_188 = arith.constant dense<0.000000e+00> : vector<32x8xf32>
    %347 = tpu.matmul %340, %346, %cst_188 {dimension_numbers = #tpu.dot_dimension_numbers<[1], [0], [0], [1], [0, 0, 1, 1], [], []>} : vector<32x32xbf16>, vector<32x8xbf16>, vector<32x8xf32> -> vector<32x8xf32>
    %348 = arith.truncf %347 : vector<32x8xf32> to vector<32x8xbf16>
    %c20 = arith.constant 20 : index
    %c0_189 = arith.constant 0 : index
    %c0_190 = arith.constant 0 : index
    %349 = vector.load %arg18[%c20, %c0_189, %c0_190] : memref<24x32x8xbf16, #tpu.memory_space<vmem>>, vector<1x32x8xbf16>
    %350 = vector.shape_cast %349 : vector<1x32x8xbf16> to vector<32x8xbf16>
    %cst_191 = arith.constant dense<0.000000e+00> : vector<32x8xf32>
    %351 = tpu.matmul %340, %350, %cst_191 {dimension_numbers = #tpu.dot_dimension_numbers<[1], [0], [0], [1], [0, 0, 1, 1], [], []>} : vector<32x32xbf16>, vector<32x8xbf16>, vector<32x8xf32> -> vector<32x8xf32>
    %352 = arith.truncf %351 : vector<32x8xf32> to vector<32x8xbf16>
    %353 = vector.extract_strided_slice %344 {offsets = [0, 0], sizes = [16, 8], strides = [1, 1]} : vector<32x8xbf16> to vector<16x8xbf16>
    %354 = vector.extract_strided_slice %348 {offsets = [0, 0], sizes = [16, 8], strides = [1, 1]} : vector<32x8xbf16> to vector<16x8xbf16>
    %cst_192 = arith.constant dense<0.000000e+00> : vector<16x16xf32>
    %355 = tpu.matmul %353, %354, %cst_192 {dimension_numbers = #tpu.dot_dimension_numbers<[1], [1], [0], [0], [0, 0, 1, 0], [], []>} : vector<16x8xbf16>, vector<16x8xbf16>, vector<16x16xf32> -> vector<16x16xf32>
    %356 = vector.extract_strided_slice %344 {offsets = [16, 0], sizes = [16, 8], strides = [1, 1]} : vector<32x8xbf16> to vector<16x8xbf16>
    %357 = vector.extract_strided_slice %348 {offsets = [16, 0], sizes = [16, 8], strides = [1, 1]} : vector<32x8xbf16> to vector<16x8xbf16>
    %cst_193 = arith.constant dense<0.000000e+00> : vector<16x16xf32>
    %358 = tpu.matmul %356, %357, %cst_193 {dimension_numbers = #tpu.dot_dimension_numbers<[1], [1], [0], [0], [0, 0, 1, 0], [], []>} : vector<16x8xbf16>, vector<16x8xbf16>, vector<16x16xf32> -> vector<16x16xf32>
    %c13 = arith.constant 13 : index
    %c0_194 = arith.constant 0 : index
    %c0_195 = arith.constant 0 : index
    %359 = vector.load %arg18[%c13, %c0_194, %c0_195] : memref<24x32x8xbf16, #tpu.memory_space<vmem>>, vector<1x32x8xbf16>
    %360 = vector.shape_cast %359 : vector<1x32x8xbf16> to vector<32x8xbf16>
    %cst_196 = arith.constant dense<0.000000e+00> : vector<32x8xf32>
    %361 = tpu.matmul %340, %360, %cst_196 {dimension_numbers = #tpu.dot_dimension_numbers<[1], [0], [0], [1], [0, 0, 1, 1], [], []>} : vector<32x32xbf16>, vector<32x8xbf16>, vector<32x8xf32> -> vector<32x8xf32>
    %362 = arith.truncf %361 : vector<32x8xf32> to vector<32x8xbf16>
    %c17 = arith.constant 17 : index
    %c0_197 = arith.constant 0 : index
    %c0_198 = arith.constant 0 : index
    %363 = vector.load %arg18[%c17, %c0_197, %c0_198] : memref<24x32x8xbf16, #tpu.memory_space<vmem>>, vector<1x32x8xbf16>
    %364 = vector.shape_cast %363 : vector<1x32x8xbf16> to vector<32x8xbf16>
    %cst_199 = arith.constant dense<0.000000e+00> : vector<32x8xf32>
    %365 = tpu.matmul %340, %364, %cst_199 {dimension_numbers = #tpu.dot_dimension_numbers<[1], [0], [0], [1], [0, 0, 1, 1], [], []>} : vector<32x32xbf16>, vector<32x8xbf16>, vector<32x8xf32> -> vector<32x8xf32>
    %366 = arith.truncf %365 : vector<32x8xf32> to vector<32x8xbf16>
    %c21 = arith.constant 21 : index
    %c0_200 = arith.constant 0 : index
    %c0_201 = arith.constant 0 : index
    %367 = vector.load %arg18[%c21, %c0_200, %c0_201] : memref<24x32x8xbf16, #tpu.memory_space<vmem>>, vector<1x32x8xbf16>
    %368 = vector.shape_cast %367 : vector<1x32x8xbf16> to vector<32x8xbf16>
    %cst_202 = arith.constant dense<0.000000e+00> : vector<32x8xf32>
    %369 = tpu.matmul %340, %368, %cst_202 {dimension_numbers = #tpu.dot_dimension_numbers<[1], [0], [0], [1], [0, 0, 1, 1], [], []>} : vector<32x32xbf16>, vector<32x8xbf16>, vector<32x8xf32> -> vector<32x8xf32>
    %370 = arith.truncf %369 : vector<32x8xf32> to vector<32x8xbf16>
    %371 = vector.extract_strided_slice %362 {offsets = [0, 0], sizes = [16, 8], strides = [1, 1]} : vector<32x8xbf16> to vector<16x8xbf16>
    %372 = vector.extract_strided_slice %366 {offsets = [0, 0], sizes = [16, 8], strides = [1, 1]} : vector<32x8xbf16> to vector<16x8xbf16>
    %cst_203 = arith.constant dense<0.000000e+00> : vector<16x16xf32>
    %373 = tpu.matmul %371, %372, %cst_203 {dimension_numbers = #tpu.dot_dimension_numbers<[1], [1], [0], [0], [0, 0, 1, 0], [], []>} : vector<16x8xbf16>, vector<16x8xbf16>, vector<16x16xf32> -> vector<16x16xf32>
    %374 = vector.extract_strided_slice %362 {offsets = [16, 0], sizes = [16, 8], strides = [1, 1]} : vector<32x8xbf16> to vector<16x8xbf16>
    %375 = vector.extract_strided_slice %366 {offsets = [16, 0], sizes = [16, 8], strides = [1, 1]} : vector<32x8xbf16> to vector<16x8xbf16>
    %cst_204 = arith.constant dense<0.000000e+00> : vector<16x16xf32>
    %376 = tpu.matmul %374, %375, %cst_204 {dimension_numbers = #tpu.dot_dimension_numbers<[1], [1], [0], [0], [0, 0, 1, 0], [], []>} : vector<16x8xbf16>, vector<16x8xbf16>, vector<16x16xf32> -> vector<16x16xf32>
    %c14 = arith.constant 14 : index
    %c0_205 = arith.constant 0 : index
    %c0_206 = arith.constant 0 : index
    %377 = vector.load %arg18[%c14, %c0_205, %c0_206] : memref<24x32x8xbf16, #tpu.memory_space<vmem>>, vector<1x32x8xbf16>
    %378 = vector.shape_cast %377 : vector<1x32x8xbf16> to vector<32x8xbf16>
    %cst_207 = arith.constant dense<0.000000e+00> : vector<32x8xf32>
    %379 = tpu.matmul %340, %378, %cst_207 {dimension_numbers = #tpu.dot_dimension_numbers<[1], [0], [0], [1], [0, 0, 1, 1], [], []>} : vector<32x32xbf16>, vector<32x8xbf16>, vector<32x8xf32> -> vector<32x8xf32>
    %380 = arith.truncf %379 : vector<32x8xf32> to vector<32x8xbf16>
    %c18 = arith.constant 18 : index
    %c0_208 = arith.constant 0 : index
    %c0_209 = arith.constant 0 : index
    %381 = vector.load %arg18[%c18, %c0_208, %c0_209] : memref<24x32x8xbf16, #tpu.memory_space<vmem>>, vector<1x32x8xbf16>
    %382 = vector.shape_cast %381 : vector<1x32x8xbf16> to vector<32x8xbf16>
    %cst_210 = arith.constant dense<0.000000e+00> : vector<32x8xf32>
    %383 = tpu.matmul %340, %382, %cst_210 {dimension_numbers = #tpu.dot_dimension_numbers<[1], [0], [0], [1], [0, 0, 1, 1], [], []>} : vector<32x32xbf16>, vector<32x8xbf16>, vector<32x8xf32> -> vector<32x8xf32>
    %384 = arith.truncf %383 : vector<32x8xf32> to vector<32x8xbf16>
    %c22 = arith.constant 22 : index
    %c0_211 = arith.constant 0 : index
    %c0_212 = arith.constant 0 : index
    %385 = vector.load %arg18[%c22, %c0_211, %c0_212] : memref<24x32x8xbf16, #tpu.memory_space<vmem>>, vector<1x32x8xbf16>
    %386 = vector.shape_cast %385 : vector<1x32x8xbf16> to vector<32x8xbf16>
    %cst_213 = arith.constant dense<0.000000e+00> : vector<32x8xf32>
    %387 = tpu.matmul %340, %386, %cst_213 {dimension_numbers = #tpu.dot_dimension_numbers<[1], [0], [0], [1], [0, 0, 1, 1], [], []>} : vector<32x32xbf16>, vector<32x8xbf16>, vector<32x8xf32> -> vector<32x8xf32>
    %388 = arith.truncf %387 : vector<32x8xf32> to vector<32x8xbf16>
    %389 = vector.extract_strided_slice %380 {offsets = [0, 0], sizes = [16, 8], strides = [1, 1]} : vector<32x8xbf16> to vector<16x8xbf16>
    %390 = vector.extract_strided_slice %384 {offsets = [0, 0], sizes = [16, 8], strides = [1, 1]} : vector<32x8xbf16> to vector<16x8xbf16>
    %cst_214 = arith.constant dense<0.000000e+00> : vector<16x16xf32>
    %391 = tpu.matmul %389, %390, %cst_214 {dimension_numbers = #tpu.dot_dimension_numbers<[1], [1], [0], [0], [0, 0, 1, 0], [], []>} : vector<16x8xbf16>, vector<16x8xbf16>, vector<16x16xf32> -> vector<16x16xf32>
    %392 = vector.extract_strided_slice %380 {offsets = [16, 0], sizes = [16, 8], strides = [1, 1]} : vector<32x8xbf16> to vector<16x8xbf16>
    %393 = vector.extract_strided_slice %384 {offsets = [16, 0], sizes = [16, 8], strides = [1, 1]} : vector<32x8xbf16> to vector<16x8xbf16>
    %cst_215 = arith.constant dense<0.000000e+00> : vector<16x16xf32>
    %394 = tpu.matmul %392, %393, %cst_215 {dimension_numbers = #tpu.dot_dimension_numbers<[1], [1], [0], [0], [0, 0, 1, 0], [], []>} : vector<16x8xbf16>, vector<16x8xbf16>, vector<16x16xf32> -> vector<16x16xf32>
    %c15 = arith.constant 15 : index
    %c0_216 = arith.constant 0 : index
    %c0_217 = arith.constant 0 : index
    %395 = vector.load %arg18[%c15, %c0_216, %c0_217] : memref<24x32x8xbf16, #tpu.memory_space<vmem>>, vector<1x32x8xbf16>
    %396 = vector.shape_cast %395 : vector<1x32x8xbf16> to vector<32x8xbf16>
    %cst_218 = arith.constant dense<0.000000e+00> : vector<32x8xf32>
    %397 = tpu.matmul %340, %396, %cst_218 {dimension_numbers = #tpu.dot_dimension_numbers<[1], [0], [0], [1], [0, 0, 1, 1], [], []>} : vector<32x32xbf16>, vector<32x8xbf16>, vector<32x8xf32> -> vector<32x8xf32>
    %398 = arith.truncf %397 : vector<32x8xf32> to vector<32x8xbf16>
    %c19 = arith.constant 19 : index
    %c0_219 = arith.constant 0 : index
    %c0_220 = arith.constant 0 : index
    %399 = vector.load %arg18[%c19, %c0_219, %c0_220] : memref<24x32x8xbf16, #tpu.memory_space<vmem>>, vector<1x32x8xbf16>
    %400 = vector.shape_cast %399 : vector<1x32x8xbf16> to vector<32x8xbf16>
    %cst_221 = arith.constant dense<0.000000e+00> : vector<32x8xf32>
    %401 = tpu.matmul %340, %400, %cst_221 {dimension_numbers = #tpu.dot_dimension_numbers<[1], [0], [0], [1], [0, 0, 1, 1], [], []>} : vector<32x32xbf16>, vector<32x8xbf16>, vector<32x8xf32> -> vector<32x8xf32>
    %402 = arith.truncf %401 : vector<32x8xf32> to vector<32x8xbf16>
    %c23 = arith.constant 23 : index
    %c0_222 = arith.constant 0 : index
    %c0_223 = arith.constant 0 : index
    %403 = vector.load %arg18[%c23, %c0_222, %c0_223] : memref<24x32x8xbf16, #tpu.memory_space<vmem>>, vector<1x32x8xbf16>
    %404 = vector.shape_cast %403 : vector<1x32x8xbf16> to vector<32x8xbf16>
    %cst_224 = arith.constant dense<0.000000e+00> : vector<32x8xf32>
    %405 = tpu.matmul %340, %404, %cst_224 {dimension_numbers = #tpu.dot_dimension_numbers<[1], [0], [0], [1], [0, 0, 1, 1], [], []>} : vector<32x32xbf16>, vector<32x8xbf16>, vector<32x8xf32> -> vector<32x8xf32>
    %406 = arith.truncf %405 : vector<32x8xf32> to vector<32x8xbf16>
    %407 = vector.extract_strided_slice %398 {offsets = [0, 0], sizes = [16, 8], strides = [1, 1]} : vector<32x8xbf16> to vector<16x8xbf16>
    %408 = vector.extract_strided_slice %402 {offsets = [0, 0], sizes = [16, 8], strides = [1, 1]} : vector<32x8xbf16> to vector<16x8xbf16>
    %cst_225 = arith.constant dense<0.000000e+00> : vector<16x16xf32>
    %409 = tpu.matmul %407, %408, %cst_225 {dimension_numbers = #tpu.dot_dimension_numbers<[1], [1], [0], [0], [0, 0, 1, 0], [], []>} : vector<16x8xbf16>, vector<16x8xbf16>, vector<16x16xf32> -> vector<16x16xf32>
    %410 = vector.extract_strided_slice %398 {offsets = [16, 0], sizes = [16, 8], strides = [1, 1]} : vector<32x8xbf16> to vector<16x8xbf16>
    %411 = vector.extract_strided_slice %402 {offsets = [16, 0], sizes = [16, 8], strides = [1, 1]} : vector<32x8xbf16> to vector<16x8xbf16>
    %cst_226 = arith.constant dense<0.000000e+00> : vector<16x16xf32>
    %412 = tpu.matmul %410, %411, %cst_226 {dimension_numbers = #tpu.dot_dimension_numbers<[1], [1], [0], [0], [0, 0, 1, 0], [], []>} : vector<16x8xbf16>, vector<16x8xbf16>, vector<16x16xf32> -> vector<16x16xf32>
    %413 = tpu.concatenate %355, %358, %373, %376, %391, %394, %409, %412 in 0 : vector<16x16xf32>, vector<16x16xf32>, vector<16x16xf32>, vector<16x16xf32>, vector<16x16xf32>, vector<16x16xf32>, vector<16x16xf32>, vector<16x16xf32> -> vector<128x16xf32>
    %cst_227 = arith.constant -1.000000e+30 : f32
    %414 = vector.shape_cast %70 : vector<1x16xi1> to vector<1x16xi1>
    %415 = vector.broadcast %414 : vector<1x16xi1> to vector<128x16xi1>
    %416 = vector.broadcast %cst_227 : f32 to vector<128x16xf32>
    %417 = arith.select %415, %413, %416 : vector<128x16xi1>, vector<128x16xf32>
    %cst_228 = arith.constant dense<0xFF800000> : vector<128xf32>
    %418 = vector.multi_reduction <maximumf>, %417, %cst_228 [1] : vector<128x16xf32> to vector<128xf32>
    %419 = vector.shape_cast %418 : vector<128xf32> to vector<128x1xf32>
    %420 = vector.broadcast %419 : vector<128x1xf32> to vector<128x16xf32>
    %421 = arith.subf %417, %420 : vector<128x16xf32>
    %422 = math.exp %421 : vector<128x16xf32>
    %cst_229 = arith.constant dense<0.000000e+00> : vector<128xf32>
    %423 = vector.multi_reduction <add>, %422, %cst_229 [1] : vector<128x16xf32> to vector<128xf32>
    %424 = vector.shape_cast %423 : vector<128xf32> to vector<128x1xf32>
    %425 = tpu.reciprocal %424 {approx = true} : vector<128x1xf32> -> vector<128x1xf32>
    %426 = vector.broadcast %425 : vector<128x1xf32> to vector<128x16xf32>
    %427 = arith.mulf %422, %426 : vector<128x16xf32>
    %428 = arith.truncf %427 : vector<128x16xf32> to vector<128x16xbf16>
    %c1_230 = arith.constant 1 : index
    %c0_231 = arith.constant 0 : index
    %c0_232 = arith.constant 0 : index
    %429 = vector.load %arg20[%c1_230, %c0_231, %c0_232] : memref<2x1x32xf32, #tpu.memory_space<vmem>>, vector<1x1x32xf32>
    %430 = vector.shape_cast %429 : vector<1x1x32xf32> to vector<1x32xf32>
    %431 = vector.extract_strided_slice %428 {offsets = [0, 0], sizes = [16, 16], strides = [1, 1]} : vector<128x16xbf16> to vector<16x16xbf16>
    %432 = vector.extract_strided_slice %352 {offsets = [0, 0], sizes = [16, 8], strides = [1, 1]} : vector<32x8xbf16> to vector<16x8xbf16>
    %cst_233 = arith.constant dense<0.000000e+00> : vector<16x8xf32>
    %433 = tpu.matmul %431, %432, %cst_233 {dimension_numbers = #tpu.dot_dimension_numbers<[1], [0], [0], [1], [0, 0, 1, 1], [], []>} : vector<16x16xbf16>, vector<16x8xbf16>, vector<16x8xf32> -> vector<16x8xf32>
    %434 = arith.truncf %433 : vector<16x8xf32> to vector<16x8xbf16>
    %c4_234 = arith.constant 4 : index
    %c0_235 = arith.constant 0 : index
    %c0_236 = arith.constant 0 : index
    %435 = vector.load %arg19[%c4_234, %c0_235, %c0_236] : memref<8x8x32xbf16, #tpu.memory_space<vmem>>, vector<1x8x32xbf16>
    %436 = vector.shape_cast %435 : vector<1x8x32xbf16> to vector<8x32xbf16>
    %cst_237 = arith.constant dense<0.000000e+00> : vector<16x32xf32>
    %437 = tpu.matmul %434, %436, %cst_237 {dimension_numbers = #tpu.dot_dimension_numbers<[1], [0], [0], [1], [0, 0, 1, 1], [], []>} : vector<16x8xbf16>, vector<8x32xbf16>, vector<16x32xf32> -> vector<16x32xf32>
    %438 = vector.broadcast %430 : vector<1x32xf32> to vector<16x32xf32>
    %439 = arith.addf %438, %437 : vector<16x32xf32>
    %440 = vector.extract_strided_slice %428 {offsets = [32, 0], sizes = [16, 16], strides = [1, 1]} : vector<128x16xbf16> to vector<16x16xbf16>
    %441 = vector.extract_strided_slice %370 {offsets = [0, 0], sizes = [16, 8], strides = [1, 1]} : vector<32x8xbf16> to vector<16x8xbf16>
    %cst_238 = arith.constant dense<0.000000e+00> : vector<16x8xf32>
    %442 = tpu.matmul %440, %441, %cst_238 {dimension_numbers = #tpu.dot_dimension_numbers<[1], [0], [0], [1], [0, 0, 1, 1], [], []>} : vector<16x16xbf16>, vector<16x8xbf16>, vector<16x8xf32> -> vector<16x8xf32>
    %443 = arith.truncf %442 : vector<16x8xf32> to vector<16x8xbf16>
    %c5_239 = arith.constant 5 : index
    %c0_240 = arith.constant 0 : index
    %c0_241 = arith.constant 0 : index
    %444 = vector.load %arg19[%c5_239, %c0_240, %c0_241] : memref<8x8x32xbf16, #tpu.memory_space<vmem>>, vector<1x8x32xbf16>
    %445 = vector.shape_cast %444 : vector<1x8x32xbf16> to vector<8x32xbf16>
    %cst_242 = arith.constant dense<0.000000e+00> : vector<16x32xf32>
    %446 = tpu.matmul %443, %445, %cst_242 {dimension_numbers = #tpu.dot_dimension_numbers<[1], [0], [0], [1], [0, 0, 1, 1], [], []>} : vector<16x8xbf16>, vector<8x32xbf16>, vector<16x32xf32> -> vector<16x32xf32>
    %447 = arith.addf %439, %446 : vector<16x32xf32>
    %448 = vector.extract_strided_slice %428 {offsets = [64, 0], sizes = [16, 16], strides = [1, 1]} : vector<128x16xbf16> to vector<16x16xbf16>
    %449 = vector.extract_strided_slice %388 {offsets = [0, 0], sizes = [16, 8], strides = [1, 1]} : vector<32x8xbf16> to vector<16x8xbf16>
    %cst_243 = arith.constant dense<0.000000e+00> : vector<16x8xf32>
    %450 = tpu.matmul %448, %449, %cst_243 {dimension_numbers = #tpu.dot_dimension_numbers<[1], [0], [0], [1], [0, 0, 1, 1], [], []>} : vector<16x16xbf16>, vector<16x8xbf16>, vector<16x8xf32> -> vector<16x8xf32>
    %451 = arith.truncf %450 : vector<16x8xf32> to vector<16x8xbf16>
    %c6_244 = arith.constant 6 : index
    %c0_245 = arith.constant 0 : index
    %c0_246 = arith.constant 0 : index
    %452 = vector.load %arg19[%c6_244, %c0_245, %c0_246] : memref<8x8x32xbf16, #tpu.memory_space<vmem>>, vector<1x8x32xbf16>
    %453 = vector.shape_cast %452 : vector<1x8x32xbf16> to vector<8x32xbf16>
    %cst_247 = arith.constant dense<0.000000e+00> : vector<16x32xf32>
    %454 = tpu.matmul %451, %453, %cst_247 {dimension_numbers = #tpu.dot_dimension_numbers<[1], [0], [0], [1], [0, 0, 1, 1], [], []>} : vector<16x8xbf16>, vector<8x32xbf16>, vector<16x32xf32> -> vector<16x32xf32>
    %455 = arith.addf %447, %454 : vector<16x32xf32>
    %456 = vector.extract_strided_slice %428 {offsets = [96, 0], sizes = [16, 16], strides = [1, 1]} : vector<128x16xbf16> to vector<16x16xbf16>
    %457 = vector.extract_strided_slice %406 {offsets = [0, 0], sizes = [16, 8], strides = [1, 1]} : vector<32x8xbf16> to vector<16x8xbf16>
    %cst_248 = arith.constant dense<0.000000e+00> : vector<16x8xf32>
    %458 = tpu.matmul %456, %457, %cst_248 {dimension_numbers = #tpu.dot_dimension_numbers<[1], [0], [0], [1], [0, 0, 1, 1], [], []>} : vector<16x16xbf16>, vector<16x8xbf16>, vector<16x8xf32> -> vector<16x8xf32>
    %459 = arith.truncf %458 : vector<16x8xf32> to vector<16x8xbf16>
    %c7_249 = arith.constant 7 : index
    %c0_250 = arith.constant 0 : index
    %c0_251 = arith.constant 0 : index
    %460 = vector.load %arg19[%c7_249, %c0_250, %c0_251] : memref<8x8x32xbf16, #tpu.memory_space<vmem>>, vector<1x8x32xbf16>
    %461 = vector.shape_cast %460 : vector<1x8x32xbf16> to vector<8x32xbf16>
    %cst_252 = arith.constant dense<0.000000e+00> : vector<16x32xf32>
    %462 = tpu.matmul %459, %461, %cst_252 {dimension_numbers = #tpu.dot_dimension_numbers<[1], [0], [0], [1], [0, 0, 1, 1], [], []>} : vector<16x8xbf16>, vector<8x32xbf16>, vector<16x32xf32> -> vector<16x32xf32>
    %463 = arith.addf %455, %462 : vector<16x32xf32>
    %c1_253 = arith.constant 1 : index
    %c0_254 = arith.constant 0 : index
    %c0_255 = arith.constant 0 : index
    %464 = vector.load %arg20[%c1_253, %c0_254, %c0_255] : memref<2x1x32xf32, #tpu.memory_space<vmem>>, vector<1x1x32xf32>
    %465 = vector.shape_cast %464 : vector<1x1x32xf32> to vector<1x32xf32>
    %466 = vector.extract_strided_slice %428 {offsets = [16, 0], sizes = [16, 16], strides = [1, 1]} : vector<128x16xbf16> to vector<16x16xbf16>
    %467 = vector.extract_strided_slice %352 {offsets = [16, 0], sizes = [16, 8], strides = [1, 1]} : vector<32x8xbf16> to vector<16x8xbf16>
    %cst_256 = arith.constant dense<0.000000e+00> : vector<16x8xf32>
    %468 = tpu.matmul %466, %467, %cst_256 {dimension_numbers = #tpu.dot_dimension_numbers<[1], [0], [0], [1], [0, 0, 1, 1], [], []>} : vector<16x16xbf16>, vector<16x8xbf16>, vector<16x8xf32> -> vector<16x8xf32>
    %469 = arith.truncf %468 : vector<16x8xf32> to vector<16x8xbf16>
    %c4_257 = arith.constant 4 : index
    %c0_258 = arith.constant 0 : index
    %c0_259 = arith.constant 0 : index
    %470 = vector.load %arg19[%c4_257, %c0_258, %c0_259] : memref<8x8x32xbf16, #tpu.memory_space<vmem>>, vector<1x8x32xbf16>
    %471 = vector.shape_cast %470 : vector<1x8x32xbf16> to vector<8x32xbf16>
    %cst_260 = arith.constant dense<0.000000e+00> : vector<16x32xf32>
    %472 = tpu.matmul %469, %471, %cst_260 {dimension_numbers = #tpu.dot_dimension_numbers<[1], [0], [0], [1], [0, 0, 1, 1], [], []>} : vector<16x8xbf16>, vector<8x32xbf16>, vector<16x32xf32> -> vector<16x32xf32>
    %473 = vector.broadcast %465 : vector<1x32xf32> to vector<16x32xf32>
    %474 = arith.addf %473, %472 : vector<16x32xf32>
    %475 = vector.extract_strided_slice %428 {offsets = [48, 0], sizes = [16, 16], strides = [1, 1]} : vector<128x16xbf16> to vector<16x16xbf16>
    %476 = vector.extract_strided_slice %370 {offsets = [16, 0], sizes = [16, 8], strides = [1, 1]} : vector<32x8xbf16> to vector<16x8xbf16>
    %cst_261 = arith.constant dense<0.000000e+00> : vector<16x8xf32>
    %477 = tpu.matmul %475, %476, %cst_261 {dimension_numbers = #tpu.dot_dimension_numbers<[1], [0], [0], [1], [0, 0, 1, 1], [], []>} : vector<16x16xbf16>, vector<16x8xbf16>, vector<16x8xf32> -> vector<16x8xf32>
    %478 = arith.truncf %477 : vector<16x8xf32> to vector<16x8xbf16>
    %c5_262 = arith.constant 5 : index
    %c0_263 = arith.constant 0 : index
    %c0_264 = arith.constant 0 : index
    %479 = vector.load %arg19[%c5_262, %c0_263, %c0_264] : memref<8x8x32xbf16, #tpu.memory_space<vmem>>, vector<1x8x32xbf16>
    %480 = vector.shape_cast %479 : vector<1x8x32xbf16> to vector<8x32xbf16>
    %cst_265 = arith.constant dense<0.000000e+00> : vector<16x32xf32>
    %481 = tpu.matmul %478, %480, %cst_265 {dimension_numbers = #tpu.dot_dimension_numbers<[1], [0], [0], [1], [0, 0, 1, 1], [], []>} : vector<16x8xbf16>, vector<8x32xbf16>, vector<16x32xf32> -> vector<16x32xf32>
    %482 = arith.addf %474, %481 : vector<16x32xf32>
    %483 = vector.extract_strided_slice %428 {offsets = [80, 0], sizes = [16, 16], strides = [1, 1]} : vector<128x16xbf16> to vector<16x16xbf16>
    %484 = vector.extract_strided_slice %388 {offsets = [16, 0], sizes = [16, 8], strides = [1, 1]} : vector<32x8xbf16> to vector<16x8xbf16>
    %cst_266 = arith.constant dense<0.000000e+00> : vector<16x8xf32>
    %485 = tpu.matmul %483, %484, %cst_266 {dimension_numbers = #tpu.dot_dimension_numbers<[1], [0], [0], [1], [0, 0, 1, 1], [], []>} : vector<16x16xbf16>, vector<16x8xbf16>, vector<16x8xf32> -> vector<16x8xf32>
    %486 = arith.truncf %485 : vector<16x8xf32> to vector<16x8xbf16>
    %c6_267 = arith.constant 6 : index
    %c0_268 = arith.constant 0 : index
    %c0_269 = arith.constant 0 : index
    %487 = vector.load %arg19[%c6_267, %c0_268, %c0_269] : memref<8x8x32xbf16, #tpu.memory_space<vmem>>, vector<1x8x32xbf16>
    %488 = vector.shape_cast %487 : vector<1x8x32xbf16> to vector<8x32xbf16>
    %cst_270 = arith.constant dense<0.000000e+00> : vector<16x32xf32>
    %489 = tpu.matmul %486, %488, %cst_270 {dimension_numbers = #tpu.dot_dimension_numbers<[1], [0], [0], [1], [0, 0, 1, 1], [], []>} : vector<16x8xbf16>, vector<8x32xbf16>, vector<16x32xf32> -> vector<16x32xf32>
    %490 = arith.addf %482, %489 : vector<16x32xf32>
    %491 = vector.extract_strided_slice %428 {offsets = [112, 0], sizes = [16, 16], strides = [1, 1]} : vector<128x16xbf16> to vector<16x16xbf16>
    %492 = vector.extract_strided_slice %406 {offsets = [16, 0], sizes = [16, 8], strides = [1, 1]} : vector<32x8xbf16> to vector<16x8xbf16>
    %cst_271 = arith.constant dense<0.000000e+00> : vector<16x8xf32>
    %493 = tpu.matmul %491, %492, %cst_271 {dimension_numbers = #tpu.dot_dimension_numbers<[1], [0], [0], [1], [0, 0, 1, 1], [], []>} : vector<16x16xbf16>, vector<16x8xbf16>, vector<16x8xf32> -> vector<16x8xf32>
    %494 = arith.truncf %493 : vector<16x8xf32> to vector<16x8xbf16>
    %c7_272 = arith.constant 7 : index
    %c0_273 = arith.constant 0 : index
    %c0_274 = arith.constant 0 : index
    %495 = vector.load %arg19[%c7_272, %c0_273, %c0_274] : memref<8x8x32xbf16, #tpu.memory_space<vmem>>, vector<1x8x32xbf16>
    %496 = vector.shape_cast %495 : vector<1x8x32xbf16> to vector<8x32xbf16>
    %cst_275 = arith.constant dense<0.000000e+00> : vector<16x32xf32>
    %497 = tpu.matmul %494, %496, %cst_275 {dimension_numbers = #tpu.dot_dimension_numbers<[1], [0], [0], [1], [0, 0, 1, 1], [], []>} : vector<16x8xbf16>, vector<8x32xbf16>, vector<16x32xf32> -> vector<16x32xf32>
    %498 = arith.addf %490, %497 : vector<16x32xf32>
    %499 = tpu.concatenate %463, %498 in 0 : vector<16x32xf32>, vector<16x32xf32> -> vector<32x32xf32>
    %500 = arith.addf %313, %499 : vector<32x32xf32>
    %c1_276 = arith.constant 1 : index
    %c0_277 = arith.constant 0 : index
    %c0_278 = arith.constant 0 : index
    %501 = vector.load %arg21[%c1_276, %c0_277, %c0_278] : memref<2x1x32xf32, #tpu.memory_space<vmem>>, vector<1x1x32xf32>
    %502 = vector.shape_cast %501 : vector<1x1x32xf32> to vector<1x32xf32>
    %c1_279 = arith.constant 1 : index
    %c0_280 = arith.constant 0 : index
    %c0_281 = arith.constant 0 : index
    %503 = vector.load %arg22[%c1_279, %c0_280, %c0_281] : memref<2x1x32xf32, #tpu.memory_space<vmem>>, vector<1x1x32xf32>
    %504 = vector.shape_cast %503 : vector<1x1x32xf32> to vector<1x32xf32>
    %cst_282 = arith.constant dense<0.000000e+00> : vector<32xf32>
    %505 = vector.multi_reduction <add>, %500, %cst_282 [1] : vector<32x32xf32> to vector<32xf32>
    %506 = vector.shape_cast %505 : vector<32xf32> to vector<32x1xf32>
    %cst_283 = arith.constant 3.200000e+01 : f32
    %507 = vector.broadcast %cst_283 : f32 to vector<32x1xf32>
    %508 = arith.divf %506, %507 : vector<32x1xf32>
    %509 = vector.broadcast %508 : vector<32x1xf32> to vector<32x32xf32>
    %510 = arith.subf %500, %509 : vector<32x32xf32>
    %511 = arith.mulf %510, %510 : vector<32x32xf32>
    %cst_284 = arith.constant dense<0.000000e+00> : vector<32xf32>
    %512 = vector.multi_reduction <add>, %511, %cst_284 [1] : vector<32x32xf32> to vector<32xf32>
    %513 = vector.shape_cast %512 : vector<32xf32> to vector<32x1xf32>
    %cst_285 = arith.constant 3.200000e+01 : f32
    %514 = vector.broadcast %cst_285 : f32 to vector<32x1xf32>
    %515 = arith.divf %513, %514 : vector<32x1xf32>
    %516 = vector.broadcast %508 : vector<32x1xf32> to vector<32x32xf32>
    %517 = arith.subf %500, %516 : vector<32x32xf32>
    %cst_286 = arith.constant 9.99999974E-6 : f32
    %518 = vector.broadcast %cst_286 : f32 to vector<32x1xf32>
    %519 = arith.addf %515, %518 : vector<32x1xf32>
    %520 = math.rsqrt %519 : vector<32x1xf32>
    %521 = vector.broadcast %520 : vector<32x1xf32> to vector<32x32xf32>
    %522 = arith.mulf %517, %521 : vector<32x32xf32>
    %523 = vector.broadcast %502 : vector<1x32xf32> to vector<32x32xf32>
    %524 = arith.mulf %522, %523 : vector<32x32xf32>
    %525 = vector.broadcast %504 : vector<1x32xf32> to vector<32x32xf32>
    %526 = arith.addf %524, %525 : vector<32x32xf32>
    %527 = arith.truncf %526 : vector<32x32xf32> to vector<32x32xbf16>
    %c1_287 = arith.constant 1 : index
    %c0_288 = arith.constant 0 : index
    %c0_289 = arith.constant 0 : index
    %528 = vector.load %arg23[%c1_287, %c0_288, %c0_289] : memref<2x32x64xbf16, #tpu.memory_space<vmem>>, vector<1x32x64xbf16>
    %529 = vector.shape_cast %528 : vector<1x32x64xbf16> to vector<32x64xbf16>
    %cst_290 = arith.constant dense<0.000000e+00> : vector<32x64xf32>
    %530 = tpu.matmul %527, %529, %cst_290 {dimension_numbers = #tpu.dot_dimension_numbers<[1], [0], [0], [1], [0, 0, 1, 1], [], []>} : vector<32x32xbf16>, vector<32x64xbf16>, vector<32x64xf32> -> vector<32x64xf32>
    %c1_291 = arith.constant 1 : index
    %c0_292 = arith.constant 0 : index
    %c0_293 = arith.constant 0 : index
    %531 = vector.load %arg24[%c1_291, %c0_292, %c0_293] : memref<2x1x64xf32, #tpu.memory_space<vmem>>, vector<1x1x64xf32>
    %532 = vector.shape_cast %531 : vector<1x1x64xf32> to vector<1x64xf32>
    %533 = vector.broadcast %532 : vector<1x64xf32> to vector<32x64xf32>
    %534 = arith.addf %530, %533 : vector<32x64xf32>
    %535 = arith.mulf %534, %534 : vector<32x64xf32>
    %536 = arith.mulf %534, %535 : vector<32x64xf32>
    %cst_294 = arith.constant 4.471500e-02 : f32
    %537 = vector.broadcast %cst_294 : f32 to vector<32x64xf32>
    %538 = arith.mulf %537, %536 : vector<32x64xf32>
    %539 = arith.addf %534, %538 : vector<32x64xf32>
    %cst_295 = arith.constant 0.797884583 : f32
    %540 = vector.broadcast %cst_295 : f32 to vector<32x64xf32>
    %541 = arith.mulf %540, %539 : vector<32x64xf32>
    %542 = math.tanh %541 : vector<32x64xf32>
    %cst_296 = arith.constant 1.000000e+00 : f32
    %543 = vector.broadcast %cst_296 : f32 to vector<32x64xf32>
    %544 = arith.addf %543, %542 : vector<32x64xf32>
    %cst_297 = arith.constant 5.000000e-01 : f32
    %545 = vector.broadcast %cst_297 : f32 to vector<32x64xf32>
    %546 = arith.mulf %545, %544 : vector<32x64xf32>
    %547 = arith.mulf %534, %546 : vector<32x64xf32>
    %548 = arith.truncf %547 : vector<32x64xf32> to vector<32x64xbf16>
    %c1_298 = arith.constant 1 : index
    %c0_299 = arith.constant 0 : index
    %c0_300 = arith.constant 0 : index
    %549 = vector.load %arg25[%c1_298, %c0_299, %c0_300] : memref<2x64x32xbf16, #tpu.memory_space<vmem>>, vector<1x64x32xbf16>
    %550 = vector.shape_cast %549 : vector<1x64x32xbf16> to vector<64x32xbf16>
    %cst_301 = arith.constant dense<0.000000e+00> : vector<32x32xf32>
    %551 = tpu.matmul %548, %550, %cst_301 {dimension_numbers = #tpu.dot_dimension_numbers<[1], [0], [0], [1], [0, 0, 1, 1], [], []>} : vector<32x64xbf16>, vector<64x32xbf16>, vector<32x32xf32> -> vector<32x32xf32>
    %c1_302 = arith.constant 1 : index
    %c0_303 = arith.constant 0 : index
    %c0_304 = arith.constant 0 : index
    %552 = vector.load %arg26[%c1_302, %c0_303, %c0_304] : memref<2x1x32xf32, #tpu.memory_space<vmem>>, vector<1x1x32xf32>
    %553 = vector.shape_cast %552 : vector<1x1x32xf32> to vector<1x32xf32>
    %554 = vector.broadcast %553 : vector<1x32xf32> to vector<32x32xf32>
    %555 = arith.addf %551, %554 : vector<32x32xf32>
    %556 = arith.addf %500, %555 : vector<32x32xf32>
    %557 = vector.extract_strided_slice %556 {offsets = [0, 0], sizes = [8, 32], strides = [1, 1]} : vector<32x32xf32> to vector<8x32xf32>
    %558 = vector.extract_strided_slice %556 {offsets = [16, 0], sizes = [8, 32], strides = [1, 1]} : vector<32x32xf32> to vector<8x32xf32>
    %559 = tpu.concatenate %557, %558 in 0 : vector<8x32xf32>, vector<8x32xf32> -> vector<16x32xf32>
    %c0_305 = arith.constant 0 : index
    %c0_306 = arith.constant 0 : index
    %560 = vector.load %arg27[%c0_305, %c0_306] : memref<1x32xf32, #tpu.memory_space<vmem>>, vector<1x32xf32>
    %c0_307 = arith.constant 0 : index
    %c0_308 = arith.constant 0 : index
    %561 = vector.load %arg28[%c0_307, %c0_308] : memref<1x32xf32, #tpu.memory_space<vmem>>, vector<1x32xf32>
    %cst_309 = arith.constant dense<0.000000e+00> : vector<16xf32>
    %562 = vector.multi_reduction <add>, %559, %cst_309 [1] : vector<16x32xf32> to vector<16xf32>
    %563 = vector.shape_cast %562 : vector<16xf32> to vector<16x1xf32>
    %cst_310 = arith.constant 3.200000e+01 : f32
    %564 = vector.broadcast %cst_310 : f32 to vector<16x1xf32>
    %565 = arith.divf %563, %564 : vector<16x1xf32>
    %566 = vector.broadcast %565 : vector<16x1xf32> to vector<16x32xf32>
    %567 = arith.subf %559, %566 : vector<16x32xf32>
    %568 = arith.mulf %567, %567 : vector<16x32xf32>
    %cst_311 = arith.constant dense<0.000000e+00> : vector<16xf32>
    %569 = vector.multi_reduction <add>, %568, %cst_311 [1] : vector<16x32xf32> to vector<16xf32>
    %570 = vector.shape_cast %569 : vector<16xf32> to vector<16x1xf32>
    %cst_312 = arith.constant 3.200000e+01 : f32
    %571 = vector.broadcast %cst_312 : f32 to vector<16x1xf32>
    %572 = arith.divf %570, %571 : vector<16x1xf32>
    %573 = vector.broadcast %565 : vector<16x1xf32> to vector<16x32xf32>
    %574 = arith.subf %559, %573 : vector<16x32xf32>
    %cst_313 = arith.constant 9.99999974E-6 : f32
    %575 = vector.broadcast %cst_313 : f32 to vector<16x1xf32>
    %576 = arith.addf %572, %575 : vector<16x1xf32>
    %577 = math.rsqrt %576 : vector<16x1xf32>
    %578 = vector.broadcast %577 : vector<16x1xf32> to vector<16x32xf32>
    %579 = arith.mulf %574, %578 : vector<16x32xf32>
    %580 = vector.broadcast %560 : vector<1x32xf32> to vector<16x32xf32>
    %581 = arith.mulf %579, %580 : vector<16x32xf32>
    %582 = vector.broadcast %561 : vector<1x32xf32> to vector<16x32xf32>
    %583 = arith.addf %581, %582 : vector<16x32xf32>
    %584 = arith.truncf %583 : vector<16x32xf32> to vector<16x32xbf16>
    %c0_314 = arith.constant 0 : index
    %c0_315 = arith.constant 0 : index
    %585 = vector.load %arg29[%c0_314, %c0_315] : memref<32x512xbf16, #tpu.memory_space<vmem>>, vector<32x512xbf16>
    %cst_316 = arith.constant dense<0.000000e+00> : vector<16x512xf32>
    %586 = tpu.matmul %584, %585, %cst_316 {dimension_numbers = #tpu.dot_dimension_numbers<[1], [0], [0], [1], [0, 0, 1, 1], [], []>} : vector<16x32xbf16>, vector<32x512xbf16>, vector<16x512xf32> -> vector<16x512xf32>
    %c0_317 = arith.constant 0 : index
    %c0_318 = arith.constant 0 : index
    %587 = vector.load %arg30[%c0_317, %c0_318] : memref<1x512xf32, #tpu.memory_space<vmem>>, vector<1x512xf32>
    %588 = vector.broadcast %587 : vector<1x512xf32> to vector<16x512xf32>
    %589 = arith.addf %586, %588 : vector<16x512xf32>
    %c0_319 = arith.constant 0 : index
    %c0_320 = arith.constant 0 : index
    %590 = vector.load %arg31[%c0_319, %c0_320] : memref<16x512xf32, #tpu.memory_space<vmem>>, vector<16x512xf32>
    tpu.vector_store %arg31[%c0_319, %c0_320], %589 {strides = array<i32>} : memref<16x512xf32, #tpu.memory_space<vmem>>, vector<16x512xf32>,
    return
  }
}

</mosaic_0001>

<bundles_post_ra>
// kernel: vit_autoenc_forward.1
= control target key start
LH: loop header
LB: loop body
LE: loop exit
PB: predicated region body
PF: predicated region fallthrough
CT: control target
= control target key end

     0   :  { %s5289_s3 = smov 13   ;;  %v5290_v0 = vmov 0   ;;  %s5291_s7 = smov 3   ;;  %vm465_vm0 = vcmask 64512   ;;  %v541_v55 = vlaneseq  ;;  %v5301_v62 = vmov 0.0   ;;  %s6451_s0 = inlined_call_operand.smem [shape: u32[32], index: -1, kind: input, shape index: {}] }
   0x1   :  { %s5331_s6 = sld [smem:[%s6451_s0 + %s5289_s3]]   ;;  %5076 = vset.pattern.permute.xlu0 %v5290_v0  ;;  %s5292_s11 = smov 9   ;;  %vm517_vm6 = vcmask 261120   ;;  %vm649_vm12 = vcmask 1040384   ;;  %vm651_vm13 = vcmask 1041408   ;;  %vm653_vm14 = vcmask 1042432  }
   0x2   :  { %s4280_s10 = sld [smem:[%s6451_s0 + %s5291_s7]]   ;;  %s5293_s15 = smov 10   ;;  %v5419_v56 = vand.u32 127, %v541_v55  ;;  %v5308_v55 = vmov 32.0  }
   0x3   :  { %s5351_s14 = sld [smem:[%s6451_s0 + %s5292_s11]]   ;;  %s5294_s19 = smov 2  }
   0x4   :  { %s5356_s18 = sld [smem:[%s6451_s0 + %s5293_s15]]   ;;  %s5295_s26 = smov 4   ;;  %v543_v57 = vcvt.s32.f32 %v5419_v56 }
   0x5   :  { %s4279_s22 = sld [smem:[%s6451_s0 + %s5294_s19]]   ;;  %s5296_s30 = smov 14  }
   0x6   :  { %s5372_s25 = sld [smem:[%s6451_s0]]   ;;  %s5297_s4 = smov 1  }
   0x7   :  { %v4949_v1 = vld [vmem:[%s5331_s6 + $0x38] sm:$0xff]  ;;  %v4948_v5 = vld [vmem:[%s5331_s6 + $0x30] sm:$0xff]  ;;  %v4947_v9 = vld [vmem:[%s5331_s6 + $0x28] sm:$0xff]  ;;  %s4281_s29 = sld [smem:[%s6451_s0 + %s5295_s26]]   ;;  %s5298_s8 = smov 5  }
   0x8   :  { %v4965_v2 = vld [vmem:[%s5331_s6 + $0xb8] sm:$0xff]  ;;  %403 = vmatpush.bf16.msra.mxu0 %v4949_v1  ;;  %v4964_v6 = vld [vmem:[%s5331_s6 + $0xb0] sm:$0xff]  ;;  %v4963_v10 = vld [vmem:[%s5331_s6 + $0xa8] sm:$0xff]  ;;  %s5388_s3 = sld [smem:[%s6451_s0 + %s5296_s30]]   ;;  %s5299_s12 = smov 8  }
   0x9   :  { %v4957_v3 = vld [vmem:[%s5331_s6 + $0x78] sm:$0xff]  ;;  %431 = vmatpush.bf16.msra.mxu2 %v4965_v2  ;;  %v4956_v7 = vld [vmem:[%s5331_s6 + $0x70] sm:$0xff]  ;;  %v4955_v11 = vld [vmem:[%s5331_s6 + $0x68] sm:$0xff]  ;;  %s4278_s7 = sld [smem:[%s6451_s0 + %s5297_s4]]   ;;  %s5300_s17 = smov 11  }
   0xa   :  { %v4973_v4 = vld [vmem:[%s5331_s6 + $0xf8] sm:$0xff]  ;;  %417 = vmatpush.bf16.msra.mxu1 %v4957_v3  ;;  %v4972_v8 = vld [vmem:[%s5331_s6 + $0xf0] sm:$0xff]  ;;  %v4971_v12 = vld [vmem:[%s5331_s6 + $0xe8] sm:$0xff]  ;;  %s5408_s11 = sld [smem:[%s6451_s0 + %s5298_s8]]   ;;  %s5303_s24 = smov 6  }
   0xb   :  { %445 = vmatpush.bf16.msra.mxu3 %v4973_v4  ;;  %v577_v13 = vld [vmem:[%s4280_s10] sm:$0x3]  ;;  %v4945_v18 = vld [vmem:[%s5331_s6 + $0x18] sm:$0xff]  ;;  %v4944_v23 = vld [vmem:[%s5331_s6 + $0x10] sm:$0xff]  ;;  %s4285_s16 = sld [smem:[%s6451_s0 + %s5299_s12]]   ;;  %s5304_s28 = smov 12  }
   0xc   :  { %404 = vmatpush.bf16.msra.mxu0 %v4948_v5  ;;  %581 = vperm.xlu0 %5076, %v577_v13   ;;  %v4946_v14 = vld [vmem:[%s5331_s6 + $0x20] sm:$0xff]  ;;  %v4961_v19 = vld [vmem:[%s5331_s6 + $0x98] sm:$0xff]  ;;  %v4960_v24 = vld [vmem:[%s5331_s6 + $0x90] sm:$0xff]  ;;  %s4288_s21 = sld [smem:[%s6451_s0 + %s5300_s17]]   ;;  %s5305_s2 = smov 7  }
   0xd   :  { %432 = vmatpush.bf16.msra.mxu2 %v4964_v6  ;;  %v4962_v15 = vld [vmem:[%s5331_s6 + $0xa0] sm:$0xff]  ;;  %v4953_v20 = vld [vmem:[%s5331_s6 + $0x58] sm:$0xff]  ;;  %v4952_v25 = vld [vmem:[%s5331_s6 + $0x50] sm:$0xff]  ;;  %s4283_s27 = sld [smem:[%s6451_s0 + %s5303_s24]]   ;;  %s5307_s10 = smov 17  }
   0xe   :  { %418 = vmatpush.bf16.msra.mxu1 %v4956_v7  ;;  %v4954_v16 = vld [vmem:[%s5331_s6 + $0x60] sm:$0xff]  ;;  %v4969_v21 = vld [vmem:[%s5331_s6 + $0xd8] sm:$0xff]  ;;  %v4968_v26 = vld [vmem:[%s5331_s6 + $0xd0] sm:$0xff]  ;;  %s5434_s1 = sld [smem:[%s6451_s0 + %s5304_s28]]   ;;  %s5309_s15 = smov 18  }
   0xf   :  { %446 = vmatpush.bf16.msra.mxu3 %v4972_v8  ;;  %v4970_v17 = vld [vmem:[%s5331_s6 + $0xe0] sm:$0xff]  ;;  %v4943_v27 = vld [vmem:[%s5331_s6 + $0x8] sm:$0xff]  ;;  %v133_v37 = vld [vmem:[%s5372_s25 + $0x10] sm:$0xff]  ;;  %s5444_s5 = sld [smem:[%s6451_s0 + %s5305_s2]]   ;;  %s5310_s20 = smov 20  }
  0x10   :  { %405 = vmatpush.bf16.msra.mxu0 %v4947_v9  ;;  %v544_v22 = vld [vmem:[%s4279_s22] sm:$0x3]  ;;  %v4959_v28 = vld [vmem:[%s5331_s6 + $0x88] sm:$0xff]  ;;  %v137_v38 = vld [vmem:[%s5372_s25 + $0x30] sm:$0xff]  ;;  %s5459_s13 = sld [smem:[%s6451_s0 + %s5307_s10]]   ;;  %s5311_s22 = smov 19  }
  0x11   :  { %433 = vmatpush.bf16.msra.mxu2 %v4963_v10  ;;  %v4951_v29 = vld [vmem:[%s5331_s6 + $0x48] sm:$0xff]  ;;  %v4942_v31 = vld [vmem:[%s5331_s6] sm:$0xff]  ;;  %v134_v41 = vld [vmem:[%s5372_s25 + $0x18] sm:$0xff]  ;;  %v141_v44 = vpack.c.bf16 %v137_v38, %v133_v37  ;;  %s5505_s19 = sld [smem:[%s6451_s0 + %s5309_s15]]   ;;  %s5312_s26 = smov 21  }
  0x12   :  { %419 = vmatpush.bf16.msra.mxu1 %v4955_v11  ;;  %v4967_v30 = vld [vmem:[%s5331_s6 + $0xc8] sm:$0xff]  ;;  %v4958_v32 = vld [vmem:[%s5331_s6 + $0x80] sm:$0xff]  ;;  %v138_v42 = vld [vmem:[%s5372_s25 + $0x38] sm:$0xff]  ;;  %s5313_s30 = smov 22   ;;  %s5314_s4 = smov 23  }
  0x13   :  { %447 = vmatpush.bf16.msra.mxu3 %v4971_v12  ;;  %v4950_v33 = vld [vmem:[%s5331_s6 + $0x40] sm:$0xff]  ;;  %v132_v39 = vld [vmem:[%s5372_s25 + $0x8] sm:$0xff]  ;;  %v142_v47 = vpack.c.bf16 %v138_v42, %v134_v41  ;;  %s5315_s8 = smov 24   ;;  %s5316_s15 = smov 25  }
  0x14   :  { %406 = vmatpush.bf16.msra.mxu0 %v4946_v14  ;;  %547 = vperm.xlu0 %5076, %v544_v22   ;;  %v4966_v34 = vld [vmem:[%s5331_s6 + $0xc0] sm:$0xff]  ;;  %v136_v40 = vld [vmem:[%s5372_s25 + $0x28] sm:$0xff]  ;;  %s5306_s6 = smov 16   ;;  %s5895_s12 = sld [smem:[%s6451_s0 + %s5315_s8]]  }
  0x15   :  { %434 = vmatpush.bf16.msra.mxu2 %v4962_v15  ;;  %v131_v35 = vld [vmem:[%s5372_s25] sm:$0xff]  ;;  %v140_v46 = vpack.c.bf16 %v136_v40, %v132_v39  ;;  %s5454_s9 = sld [smem:[%s6451_s0 + %s5306_s6]]   ;;  %s5319_s24 = smov 28  }
  0x16   :  { %420 = vmatpush.bf16.msra.mxu1 %v4954_v16  ;;  %v135_v36 = vld [vmem:[%s5372_s25 + $0x20] sm:$0xff]  ;;  %s5799_s25 = sld [smem:[%s6451_s0 + %s5311_s22]]   ;;  %s5320_s28 = smov 29  }
  0x17   :  { %448 = vmatpush.bf16.msra.mxu3 %v4970_v17  ;;  %v139_v43 = vpack.c.bf16 %v135_v36, %v131_v35  ;;  %v460_v45 = vld [vmem:[%s4281_s29] sm:$0xff]  ;;  %s5843_s29 = sld [smem:[%s6451_s0 + %s5312_s26]]   ;;  %s5321_s2 = smov 30  }
  0x18   :  { %407 = vmatpush.bf16.msra.mxu0 %v4945_v18  ;;  %v459_v48 = vld [vmem:[%s4278_s7] sm:$0x3]  ;;  %s5877_s7 = sld [smem:[%s6451_s0 + %s5314_s4]]   ;;  %s5322_s6 = smov 31  }
  0x19   :  { %435 = vmatpush.bf16.msra.mxu2 %v4961_v19  ;;  %v5077_v49 = vld [vmem:[%s5351_s14] ss:$0 sm:$0xff]  ;;  %s5302_s14 = smov 15   ;;  %s4308_s10 = sld [smem:[%s6451_s0 + %s5322_s6]]  }
  0x1a   :  { %421 = vmatpush.bf16.msra.mxu1 %v4953_v20  ;;  %v5078_v50 = vld [vmem:[%s5356_s18] ss:$0 sm:$0xff]  ;;  %s4292_s23 = sld [smem:[%s6451_s0 + %s5302_s14]]  }
  0x1b   :  { %449 = vmatpush.bf16.msra.mxu3 %v4969_v21  ;;  %v553_v59 = vld [vmem:[%s4285_s16] sm:$0xff]  ;;  %s5794_s18 = sld [smem:[%s6451_s0 + %s5310_s20]]  }
  0x1c   :  { %408 = vmatpush.bf16.msra.mxu0 %v4944_v23  ;;  %v613_v0 = vld [vmem:[%s4288_s21] sm:$0xff]  ;;  %s5910_s20 = sld [smem:[%s6451_s0 + %s5316_s15]]   ;;  %s5317_s21 = smov 26  }
  0x1d   :  { %436 = vmatpush.bf16.msra.mxu2 %v4960_v24  ;;  %v5079_v12 = vld [vmem:[%s5388_s3] ss:$0 sm:$0xff]  ;;  %v512_v24 = vld [vmem:[%s4283_s27 + $0x18] sm:$0xff]  ;;  %s5848_s3 = sld [smem:[%s6451_s0 + %s5313_s30]]  }
  0x1e   :  { %422 = vmatpush.bf16.msra.mxu1 %v4952_v25  ;;  %v509_v35 = vld [vmem:[%s4283_s27] sm:$0xff] }
  0x1f   :  { %450 = vmatpush.bf16.msra.mxu3 %v4968_v26 }
  0x20   :  { %409 = vmatpush.bf16.msra.mxu0 %v4943_v27  ;;  %v641_v21 = vld [vmem:[%s4292_s23] sm:$0xff]  ;;  %v511_v27 = vld [vmem:[%s4283_s27 + $0x10] sm:$0xff]  ;;  %s5930_s23 = sld [smem:[%s6451_s0 + %s5317_s21]]  }
  0x21   :  { %437 = vmatpush.bf16.msra.mxu2 %v4959_v28 }
  0x22   :  { %423 = vmatpush.bf16.msra.mxu1 %v4951_v29 }
  0x23   :  { %451 = vmatpush.bf16.msra.mxu3 %v4967_v30  ;;  %v5080_v30 = vld [vmem:[%s5408_s11] ss:$0 sm:$0xff] }
  0x24   :  { %410 = vmatpush.bf16.msra.mxu0 %v4942_v31  ;;  %v510_v31 = vld [vmem:[%s4283_s27 + $0x8] sm:$0xff]  ;;  %s6399_s27 = sld [smem:[%s6451_s0 + %s5319_s24]]  }
  0x25   :  { %438 = vmatpush.bf16.msra.mxu2 %v4958_v32 }
  0x26   :  { %424 = vmatpush.bf16.msra.mxu1 %v4950_v33 }
  0x27   :  { %452 = vmatpush.bf16.msra.mxu3 %v4966_v34  ;;  %411 = vmatmul.bf16.vlgmr.msra.gmra.mxu0 %v139_v43 }
  0x28   :  { %484 = vmatpush.msrb.mxu0 %v460_v45  ;;  %439 = vmatmul.bf16.vlgmr.msra.gmra.mxu2 %v141_v44 }
  0x29   :  { %425 = vmatmul.bf16.vlgmr.msra.gmra.mxu1 %v140_v46  ;;  %572 = vmatpush.msrb.mxu2 %v553_v59 }
  0x2a   :  { %453 = vmatmul.bf16.vlgmr.msra.gmra.mxu3 %v142_v47  ;;  %533 = vmatpush.msrb.mxu1 %v512_v24 }
  0x2b   :  { %636 = vmatpush.msrb.mxu3 %v613_v0 }
  0x2c   :  { %534 = vmatpush.msrb.mxu1 %v511_v27 }
  0x2e   :  { %535 = vmatpush.msrb.mxu1 %v510_v31 }
  0x30   :  { %536 = vmatpush.msrb.mxu1 %v509_v35 }
  0x37   :  { %4437 = vmatmul.msk.f32.vlgmr.msrb.gmra.mxu0 %vm465_vm0, %v459_v48 }
  0x7e   :  { %v582_v51 = vpop.permute.xlu0 %581 }
  0x7f   :  { %v587_v52 = vmul.f32 %v5077_v49, %v582_v51 }
  0x81   :  { %v592_v53 = vadd.f32 %v5078_v50, %v587_v52 }
  0x83   :  { %v4442_v54 = vmul.f32 -1.442695, %v592_v53 }
  0x85   :  { %5099 = vpow2.f32 %v4442_v54 }
  0x86   :  { %v548_v58 = vpop.permute.xlu0 %547 }
  0x87   :  { %vm550_vm1 = vcmp.eq.f32.partialorder %v543_v57, %v548_v58 }
  0x88   :  { %v4440_v63 = vsel %vm550_vm1, 1.0, %v5301_v62 }
  0x89   :  { %4441 = vmatmul.msk.f32.vlgmr.msrb.gmra.mxu2 %vm465_vm0, %v4440_v63 }
  0x8b   :  { %v5100_v60 = vpop.eup %5099 }
  0x8c   :  { %v596_v61 = vadd.f32 1.0, %v5100_v60 }
  0x8e   :  { %5101 = vrcp.f32 %v596_v61  ;;  %v608_v3 = vand.u32 2147483648, %v596_v61  ;;  %vm602_vm2 = vweird.f32 %v596_v61  ;;  %v606_v5 = vand.u32 2147483647, %v596_v61 }
  0x90   :  { %v609_v7 = vor.u32 1.1754944e-38, %v608_v3  ;;  %vm607_vm5 = vcmp.eq.f32.partialorder %v606_v5, 8.507059e+37 }
  0x94   :  { %v5102_v1 = vpop.eup %5101 }
  0x95   :  { %v598_v2 = vmul.f32 %v5102_v1, %v596_v61  ;;  %vm603_vm3 = vweird.f32 %v5102_v1 }
  0x96   :  { %vm604_vm4 = vmor %vm602_vm2, %vm603_vm3 }
  0x97   :  { %v599_v4 = vsub.f32 1.0, %v598_v2 }
  0x99   :  { %v600_v6 = vmul.f32 %v5102_v1, %v599_v4  ;;  %v5081_v4 = vld [vmem:[%s5434_s1] ss:$0 sm:$0xff]  ;;  %s6418_s1 = sld [smem:[%s6451_s0 + %s5320_s28]]  }
  0x9b   :  { %v601_v8 = vadd.f32 %v5102_v1, %v600_v6  ;;  %v5082_v6 = vld [vmem:[%s5444_s5] ss:$0 sm:$0xff]  ;;  %s4307_s5 = sld [smem:[%s6451_s0 + %s5321_s2]]  }
  0x9d   :  { %v605_v9 = vsel %vm604_vm4, %v5102_v1, %v601_v8 }
  0x9e   :  { %v610_v10 = vsel %vm607_vm5, %v609_v7, %v605_v9 }
  0x9f   :  { %v612_v11 = vmul.f32 %v610_v10, %v592_v53 }
  0xa1   :  { %4443 = vmatmul.msk.f32.vlgmr.msrb.gmra.mxu3 %vm465_vm0, %v612_v11 }
  0xa4   :  { %v412_v13 = vpop.f32.mrf.mxu0 }
  0xa5   :  { %v413_v14 = vadd.f32 %v5079_v12, %v412_v13 }
  0xa6   :  { %v426_v15 = vpop.f32.mrf.mxu1 }
  0xa7   :  { %v427_v16 = vadd.f32 %v426_v15, %v413_v14 }
  0xab   :  { %v440_v17 = vpop.f32.mrf.mxu2 }
  0xac   :  { %v441_v18 = vadd.f32 %v440_v17, %v427_v16  ;;  %v414_v20 = vpop.f32.mrf.mxu0 }
  0xad   :  { %v454_v19 = vpop.f32.mrf.mxu3  ;;  %v415_v22 = vadd.f32 %v5079_v12, %v414_v20 }
  0xae   :  { %v455_v23 = vadd.f32 %v454_v19, %v441_v18  ;;  %v428_v25 = vpop.f32.mrf.mxu1 }
  0xaf   :  { %v429_v28 = vadd.f32 %v428_v25, %v415_v22 }
  0xb0   :  { %v5436_v26 = vadd.f32 %v641_v21, %v455_v23 }
  0xb2   :  { %v667_v29 = vsel %vm517_vm6, %v5436_v26, 0.0 }
  0xb3   :  { %v442_v32 = vpop.f32.mrf.mxu2  ;;  %668 = vadd.xlane.f32.xlu1 %v667_v29 }
  0xb4   :  { %v443_v33 = vadd.f32 %v442_v32, %v429_v28  ;;  %v486_v36 = vpop.f32.mrf.mxu0 }
  0xb5   :  { %v456_v34 = vpop.f32.mrf.mxu3  ;;  %v487_v38 = vadd.f32 %v5080_v30, %v486_v36 }
  0xb6   :  { %v457_v37 = vadd.f32 %v456_v34, %v443_v33 }
  0xb7   :  { %v4438_v40 = vmul.f32 -1.442695, %v487_v38 }
  0xb8   :  { %v5446_v39 = vadd.f32 %v641_v21, %v457_v37 }
  0xb9   :  { %5103 = vpow2.f32 %v4438_v40 }
  0xba   :  { %v673_v41 = vsel %vm517_vm6, %v5446_v39, 0.0 }
  0xbb   :  { %674 = vadd.xlane.f32.xlu2 %v673_v41 }
  0xbf   :  { %v5104_v42 = vpop.eup %5103 }
  0xc0   :  { %v492_v43 = vadd.f32 1.0, %v5104_v42 }
  0xc2   :  { %5105 = vrcp.f32 %v492_v43  ;;  %v504_v47 = vand.u32 2147483648, %v492_v43  ;;  %v502_v49 = vand.u32 2147483647, %v492_v43  ;;  %vm498_vm8 = vweird.f32 %v492_v43 }
  0xc3   :  { %5107 = vrcp.f32 %v5308_v55 }
  0xc4   :  { %v505_v51 = vor.u32 1.1754944e-38, %v504_v47  ;;  %vm503_vm10 = vcmp.eq.f32.partialorder %v502_v49, 8.507059e+37  ;;  %v4976_v49 = vld [vmem:[%s5505_s19 + $0x40] sm:$0xff] }
  0xc8   :  { %v5106_v44 = vpop.eup %5105 }
  0xc9   :  { %v494_v45 = vmul.f32 %v5106_v44, %v492_v43  ;;  %vm499_vm7 = vweird.f32 %v5106_v44  ;;  %v5108_v57 = vpop.eup %5107  ;;  %v4975_v43 = vld [vmem:[%s5505_s19 + $0x8] sm:$0xff] }
  0xca   :  { %vm500_vm9 = vmor %vm498_vm8, %vm499_vm7  ;;  %v680_v58 = vmul.f32 32.0, %v5108_v57  ;;  %vm684_vm11 = vweird.f32 %v5108_v57  ;;  %806 = vmatpush.bf16.msra.mxu0 %v4975_v43 }
  0xcb   :  { %v495_v46 = vsub.f32 1.0, %v494_v45  ;;  %v4979_v45 = vld [vmem:[%s5505_s19 + $0x88] sm:$0xff] }
  0xcc   :  { %v681_v59 = vsub.f32 1.0, %v680_v58  ;;  %886 = vmatpush.bf16.msra.mxu2 %v4979_v45 }
  0xcd   :  { %v496_v48 = vmul.f32 %v5106_v44, %v495_v46 }
  0xce   :  { %v682_v60 = vmul.f32 %v5108_v57, %v681_v59 }
  0xcf   :  { %v497_v50 = vadd.f32 %v5106_v44, %v496_v48  ;;  %v4974_v48 = vld [vmem:[%s5505_s19] sm:$0xff] }
  0xd0   :  { %v683_v61 = vadd.f32 %v5108_v57, %v682_v60  ;;  %807 = vmatpush.bf16.msra.mxu0 %v4974_v48 }
  0xd1   :  { %v501_v52 = vsel %vm500_vm9, %v5106_v44, %v497_v50  ;;  %v4977_v44 = vld [vmem:[%s5505_s19 + $0x48] sm:$0xff]  ;;  %v4978_v50 = vld [vmem:[%s5505_s19 + $0x80] sm:$0xff] }
  0xd2   :  { %v506_v53 = vsel %vm503_vm10, %v505_v51, %v501_v52  ;;  %v5461_v62 = vsel %vm684_vm11, %v5108_v57, %v683_v61  ;;  %846 = vmatpush.bf16.msra.mxu1 %v4977_v44  ;;  %887 = vmatpush.bf16.msra.mxu2 %v4978_v50 }
  0xd3   :  { %v508_v54 = vmul.f32 %v506_v53, %v487_v38 }
  0xd5   :  { %4439 = vmatmul.msk.f32.vlgmr.msrb.gmra.mxu1 %vm517_vm6, %v508_v54 }
  0xd6   :  { %847 = vmatpush.bf16.msra.mxu1 %v4976_v49 }
 0x10c   :  { %v574_v7 = vpop.f32.mrf.mxu2 }
 0x10d   :  { %v644_v11 = vrot.slane %v574_v7, 7 }
 0x124   :  { %v638_v5 = vpop.f32.mrf.mxu3 }
 0x125   :  { %v639_v8 = vadd.f32 %v5081_v4, %v638_v5 }
 0x126   :  { %v669_v63 = vpop.xlane.xlu1 %668 }
 0x127   :  { %v686_v0 = vmul.f32 %v5461_v62, %v669_v63  ;;  %v647_v13 = vrot.slane %v639_v8, 6  ;;  %v659_v17 = vrot.slane %v639_v8, 7 }
 0x129   :  { %v5465_v1 = vsub.f32 %v5436_v26, %v686_v0 }
 0x12b   :  { %v694_v2 = vmul.f32 %v5465_v1, %v5465_v1 }
 0x12d   :  { %v698_v3 = vsel %vm517_vm6, %v694_v2, 0.0 }
 0x12e   :  { %699 = vadd.xlane.f32.xlu0 %v698_v3  ;;  %v675_v10 = vpop.xlane.xlu2 %674 }
 0x12f   :  { %v688_v16 = vmul.f32 %v5461_v62, %v675_v10 }
 0x131   :  { %v5480_v24 = vsub.f32 %v5446_v39, %v688_v16  ;;  %v4982_v16 = vld [vmem:[%s5505_s19 + $0x50] sm:$0xff] }
 0x133   :  { %v696_v27 = vmul.f32 %v5480_v24, %v5480_v24 }
 0x135   :  { %v704_v28 = vsel %vm517_vm6, %v696_v27, 0.0 }
 0x152   :  { %v538_v9 = vpop.f32.mrf.mxu1 }
 0x153   :  { %v539_v12 = vadd.f32 %v5082_v6, %v538_v9 }
 0x155   :  { %v657_v14 = vrot.slane %v539_v12, 1  ;;  %v650_v15 = vsel %vm649_vm12, %v539_v12, %v644_v11  ;;  %v4981_v11 = vld [vmem:[%s5505_s19 + $0x18] sm:$0xff] }
 0x156   :  { %v652_v18 = vsel %vm651_vm13, %v650_v15, %v647_v13  ;;  %v4983_v12 = vld [vmem:[%s5505_s19 + $0x58] sm:$0xff]  ;;  %986 = vmatpush.bf16.msrb.mxu0 %v4981_v11  ;;  %v4980_v15 = vld [vmem:[%s5505_s19 + $0x10] sm:$0xff] }
 0x157   :  { %v5473_v19 = vsel %vm653_vm14, %v652_v18, 0.0  ;;  %v661_v20 = vsel %vm649_vm12, %v657_v14, %v574_v7  ;;  %v4985_v13 = vld [vmem:[%s5505_s19 + $0x98] sm:$0xff]  ;;  %1026 = vmatpush.bf16.msrb.mxu1 %v4983_v12  ;;  %v5083_v18 = vld [vmem:[%s5454_s9] ss:$0 sm:$0xff] }
 0x158   :  { %v670_v21 = vsel %vm517_vm6, %v5473_v19, 0.0  ;;  %v662_v22 = vsel %vm651_vm13, %v661_v20, %v659_v17  ;;  %1066 = vmatpush.bf16.msrb.mxu2 %v4985_v13  ;;  %vm664_vm13 = vcmp.lt.s32.totalorder %v5419_v56, 11 }
 0x159   :  { %671 = vadd.xlane.f32.xlu1 %v670_v21  ;;  %v5477_v23 = vsel %vm653_vm14, %v662_v22, 0.0  ;;  %v4984_v21 = vld [vmem:[%s5505_s19 + $0x90] sm:$0xff]  ;;  %vm1521_vm14 = vcmask 130048  }
 0x15a   :  { %v676_v25 = vsel %vm517_vm6, %v5477_v23, 0.0  ;;  %987 = vmatpush.bf16.msrb.mxu0 %v4980_v15 }
 0x15b   :  { %677 = vadd.xlane.f32.xlu2 %v676_v25  ;;  %1027 = vmatpush.bf16.msrb.mxu1 %v4982_v16 }
 0x15c   :  { %1067 = vmatpush.bf16.msrb.mxu2 %v4984_v21 }
 0x163   :  { %705 = vadd.xlane.f32.xlu2 %v704_v28 }
 0x1a1   :  { %v700_v40 = vpop.xlane.xlu0 %699 }
 0x1a2   :  { %v710_v41 = vmul.f32 %v700_v40, %v5461_v62 }
 0x1a4   :  { %v714_v42 = vadd.f32 1e-05, %v710_v41 }
 0x1a6   :  { %5109 = vrsqrt.f32 %v714_v42  ;;  %vm724_vm1 = vweird.f32 %v714_v42 }
 0x1ac   :  { %v5110_v47 = vpop.eup %5109 }
 0x1ad   :  { %v719_v52 = vmul.f32 %v5110_v47, %v714_v42  ;;  %vm725_vm15 = vweird.f32 %v5110_v47 }
 0x1ae   :  { %vm726_vm2 = vmor %vm724_vm1, %vm725_vm15  ;;  %vm1748_vm15 = vcmask 1043456  }
 0x1af   :  { %v720_v54 = vmul.f32 %v5110_v47, %v719_v52  ;;  %v4987_v52 = vld [vmem:[%s5505_s19 + $0x28] sm:$0xff] }
 0x1b1   :  { %v721_v59 = vmul.f32 0.5, %v720_v54  ;;  %v4991_v54 = vld [vmem:[%s5505_s19 + $0xa8] sm:$0xff] }
 0x1b3   :  { %v722_v60 = vsub.f32 1.5, %v721_v59  ;;  %v4997_v59 = vld [vmem:[%s5505_s19 + $0xb8] sm:$0xff] }
 0x1b5   :  { %v723_v4 = vmul.f32 %v5110_v47, %v722_v60  ;;  %v4992_v60 = vld [vmem:[%s5505_s19 + $0x30] sm:$0xff] }
 0x1b7   :  { %v727_v8 = vsel %vm726_vm2, %v5110_v47, %v723_v4 }
 0x1b8   :  { %v758_v20 = vmul.f32 %v727_v8, %v5465_v1 }
 0x1cc   :  { %v672_v29 = vpop.xlane.xlu1 %671 }
 0x1cd   :  { %v687_v30 = vmul.f32 %v5461_v62, %v672_v29 }
 0x1ce   :  { %v678_v31 = vpop.xlane.xlu2 %677 }
 0x1cf   :  { %v5489_v32 = vsub.f32 %v5473_v19, %v687_v30  ;;  %v689_v33 = vmul.f32 %v5461_v62, %v678_v31  ;;  %v5084_v30 = vld [vmem:[%s5459_s13] ss:$0 sm:$0xff]  ;;  %v765_v31 = vmul.f32 %v5083_v18, %v758_v20 }
 0x1d1   :  { %v695_v34 = vmul.f32 %v5489_v32, %v5489_v32  ;;  %v5495_v35 = vsub.f32 %v5477_v23, %v689_v33 }
 0x1d3   :  { %v701_v36 = vsel %vm517_vm6, %v695_v34, 0.0  ;;  %v697_v37 = vmul.f32 %v5495_v35, %v5495_v35 }
 0x1d4   :  { %702 = vadd.xlane.f32.xlu1 %v701_v36 }
 0x1d5   :  { %v707_v38 = vsel %vm517_vm6, %v697_v37, 0.0 }
 0x1d6   :  { %v706_v46 = vpop.xlane.xlu2 %705 }
 0x1d7   :  { %v712_v51 = vmul.f32 %v706_v46, %v5461_v62 }
 0x1d9   :  { %v5514_v53 = vadd.f32 1e-05, %v712_v51 }
 0x1db   :  { %5111 = vrsqrt.f32 %v5514_v53  ;;  %vm744_vm11 = vweird.f32 %v5514_v53 }
 0x1dc   :  { %708 = vadd.xlane.f32.xlu1 %v707_v38  ;;  %v772_v38 = vadd.f32 %v5084_v30, %v765_v31 }
 0x1e1   :  { %v5518_v63 = vpop.eup %5111 }
 0x1e2   :  { %v739_v5 = vmul.f32 %v5518_v63, %v5514_v53  ;;  %vm745_vm8 = vweird.f32 %v5518_v63  ;;  %v4989_v53 = vld [vmem:[%s5505_s19 + $0x68] sm:$0xff] }
 0x1e3   :  { %vm746_vm12 = vmor %vm744_vm11, %vm745_vm8 }
 0x1e4   :  { %v740_v9 = vmul.f32 %v5518_v63, %v739_v5 }
 0x1e6   :  { %v741_v22 = vmul.f32 0.5, %v740_v9 }
 0x1e8   :  { %v742_v34 = vsub.f32 1.5, %v741_v22 }
 0x1ea   :  { %v743_v41 = vmul.f32 %v5518_v63, %v742_v34 }
 0x247   :  { %v703_v55 = vpop.xlane.xlu1 %702 }
 0x248   :  { %v711_v57 = vmul.f32 %v703_v55, %v5461_v62  ;;  %v4990_v55 = vld [vmem:[%s5505_s19 + $0xa0] sm:$0xff] }
 0x24a   :  { %v715_v58 = vadd.f32 1e-05, %v711_v57  ;;  %v4993_v57 = vld [vmem:[%s5505_s19 + $0x38] sm:$0xff] }
 0x24c   :  { %5113 = vrsqrt.f32 %v715_v58  ;;  %vm734_vm4 = vweird.f32 %v715_v58 }
 0x24f   :  { %v709_v61 = vpop.xlane.xlu1 %708 }
 0x250   :  { %v713_v0 = vmul.f32 %v709_v61, %v5461_v62  ;;  %v4994_v61 = vld [vmem:[%s5505_s19 + $0x70] sm:$0xff] }
 0x252   :  { %v5114_v2 = vpop.eup %5113  ;;  %v717_v3 = vadd.f32 1e-05, %v713_v0 }
 0x253   :  { %v729_v6 = vmul.f32 %v5114_v2, %v715_v58  ;;  %vm735_vm3 = vweird.f32 %v5114_v2  ;;  %v4995_v58 = vld [vmem:[%s5505_s19 + $0x78] sm:$0xff] }
 0x254   :  { %5115 = vrsqrt.f32 %v717_v3  ;;  %vm736_vm5 = vmor %vm734_vm4, %vm735_vm3  ;;  %vm754_vm9 = vweird.f32 %v717_v3 }
 0x255   :  { %v730_v7 = vmul.f32 %v5114_v2, %v729_v6 }
 0x257   :  { %v731_v10 = vmul.f32 0.5, %v730_v7 }
 0x259   :  { %v732_v14 = vsub.f32 1.5, %v731_v10 }
 0x25a   :  { %v5116_v17 = vpop.eup %5115 }
 0x25b   :  { %v733_v25 = vmul.f32 %v5114_v2, %v732_v14  ;;  %v749_v27 = vmul.f32 %v5116_v17, %v717_v3  ;;  %vm755_vm7 = vweird.f32 %v5116_v17 }
 0x25c   :  { %vm756_vm10 = vmor %vm754_vm9, %vm755_vm7 }
 0x25d   :  { %v737_v28 = vsel %vm736_vm5, %v5114_v2, %v733_v25  ;;  %v750_v29 = vmul.f32 %v5116_v17, %v749_v27 }
 0x25e   :  { %v759_v33 = vmul.f32 %v737_v28, %v5489_v32  ;;  %v747_v32 = vsel %vm746_vm12, %v5518_v63, %v743_v41  ;;  %v4996_v63 = vld [vmem:[%s5505_s19 + $0xb0] sm:$0xff] }
 0x25f   :  { %v751_v36 = vmul.f32 0.5, %v750_v29  ;;  %v760_v46 = vmul.f32 %v747_v32, %v5480_v24  ;;  %v4986_v24 = vld [vmem:[%s5505_s19 + $0x20] sm:$0xff] }
 0x260   :  { %v766_v37 = vmul.f32 %v5083_v18, %v759_v33 }
 0x261   :  { %v752_v1 = vsub.f32 1.5, %v751_v36  ;;  %v767_v48 = vmul.f32 %v5083_v18, %v760_v46 }
 0x262   :  { %v773_v40 = vadd.f32 %v5084_v30, %v766_v37 }
 0x263   :  { %v753_v42 = vmul.f32 %v5116_v17, %v752_v1  ;;  %v774_v50 = vadd.f32 %v5084_v30, %v767_v48 }
 0x264   :  { %v776_v43 = vpack.c.bf16 %v773_v40, %v772_v38 }
 0x265   :  { %v757_v44 = vsel %vm756_vm10, %v5116_v17, %v753_v42 }
 0x266   :  { %4452 = vmatmul.msk.bf16.vlgmr.msra.gmra.mxu0 %vm517_vm6, %v776_v43  ;;  %4466 = vmatmul.msk.bf16.vlgmr.msra.gmra.mxu1 %vm517_vm6, %v776_v43  ;;  %v761_v45 = vmul.f32 %v757_v44, %v5495_v35  ;;  %v4988_v35 = vld [vmem:[%s5505_s19 + $0x60] sm:$0xff] }
 0x267   :  { %4480 = vmatmul.msk.bf16.vlgmr.msra.gmra.mxu2 %vm517_vm6, %v776_v43  ;;  %1166 = vmatpush.bf16.msra.mxu0 %v4987_v52 }
 0x268   :  { %v768_v47 = vmul.f32 %v5083_v18, %v761_v45  ;;  %1206 = vmatpush.bf16.msra.mxu1 %v4989_v53  ;;  %1246 = vmatpush.bf16.msra.mxu2 %v4991_v54 }
 0x26a   :  { %v775_v49 = vadd.f32 %v5084_v30, %v768_v47 }
 0x26b   :  { %1167 = vmatpush.bf16.msra.mxu0 %v4986_v24 }
 0x26c   :  { %v777_v51 = vpack.c.bf16 %v775_v49, %v774_v50  ;;  %1207 = vmatpush.bf16.msra.mxu1 %v4988_v35  ;;  %1247 = vmatpush.bf16.msra.mxu2 %v4990_v55 }
 0x276   :  { %4453 = vmatmul.msk.bf16.gmra.mxu0 %vm517_vm6, %v777_v51  ;;  %4467 = vmatmul.msk.bf16.gmra.mxu1 %vm517_vm6, %v777_v51 }
 0x277   :  { %4481 = vmatmul.msk.bf16.gmra.mxu2 %vm517_vm6, %v777_v51 }
 0x286   :  { %4496 = vmatmul.msk.bf16.vlgmr.msrb.gmra.mxu0 %vm517_vm6, %v776_v43  ;;  %4510 = vmatmul.msk.bf16.vlgmr.msrb.gmra.mxu1 %vm517_vm6, %v776_v43 }
 0x287   :  { %4524 = vmatmul.msk.bf16.vlgmr.msrb.gmra.mxu2 %vm517_vm6, %v776_v43  ;;  %1346 = vmatpush.bf16.msrb.mxu0 %v4993_v57 }
 0x288   :  { %1386 = vmatpush.bf16.msrb.mxu1 %v4995_v58  ;;  %1426 = vmatpush.bf16.msrb.mxu2 %v4997_v59 }
 0x28b   :  { %1347 = vmatpush.bf16.msrb.mxu0 %v4992_v60 }
 0x28c   :  { %1387 = vmatpush.bf16.msrb.mxu1 %v4994_v61  ;;  %1427 = vmatpush.bf16.msrb.mxu2 %v4996_v63 }
 0x296   :  { %4497 = vmatmul.msk.bf16.gmra.mxu0 %vm517_vm6, %v777_v51  ;;  %4511 = vmatmul.msk.bf16.gmra.mxu1 %vm517_vm6, %v777_v51 }
 0x297   :  { %4525 = vmatmul.msk.bf16.gmra.mxu2 %vm517_vm6, %v777_v51 }
 0x2a6   :  { %4540 = vmatmul.msk.bf16.vlgmr.msra.gmra.mxu0 %vm517_vm6, %v776_v43  ;;  %4554 = vmatmul.msk.bf16.vlgmr.msra.gmra.mxu1 %vm517_vm6, %v776_v43 }
 0x2a7   :  { %4568 = vmatmul.msk.bf16.vlgmr.msra.gmra.mxu2 %vm517_vm6, %v776_v43 }
 0x2b6   :  { %4541 = vmatmul.msk.bf16.gmra.mxu0 %vm517_vm6, %v777_v51  ;;  %4555 = vmatmul.msk.bf16.gmra.mxu1 %vm517_vm6, %v777_v51 }
 0x2b7   :  { %4569 = vmatmul.msk.bf16.gmra.mxu2 %vm517_vm6, %v777_v51 }
 0x2c6   :  { %4584 = vmatmul.msk.bf16.vlgmr.msrb.gmra.mxu0 %vm517_vm6, %v776_v43  ;;  %4598 = vmatmul.msk.bf16.vlgmr.msrb.gmra.mxu1 %vm517_vm6, %v776_v43 }
 0x2c7   :  { %4612 = vmatmul.msk.bf16.vlgmr.msrb.gmra.mxu2 %vm517_vm6, %v776_v43 }
 0x2d6   :  { %4585 = vmatmul.msk.bf16.gmra.mxu0 %vm517_vm6, %v777_v51  ;;  %4599 = vmatmul.msk.bf16.gmra.mxu1 %vm517_vm6, %v777_v51 }
 0x2d7   :  { %4613 = vmatmul.msk.bf16.gmra.mxu2 %vm517_vm6, %v777_v51 }
 0x2e3   :  { %v809_v0 = vpop.f32.mrf.mxu0  ;;  %v849_v2 = vpop.f32.mrf.mxu1 }
 0x2e4   :  { %v859_v3 = vpack.c.bf16 %v849_v2, %v849_v2  ;;  %v819_v13 = vpack.c.bf16 %v809_v0, %v809_v0 }
 0x2e6   :  { %v910_v8 = vunpack.c.l.b16 %v859_v3  ;;  %v905_v25 = vunpack.c.l.b16 %v819_v13 }
 0x2ea   :  { %v889_v4 = vpop.f32.mrf.mxu2 }
 0x2eb   :  { %v811_v5 = vpop.f32.mrf.mxu0  ;;  %v851_v6 = vpop.f32.mrf.mxu1  ;;  %v899_v12 = vpack.c.bf16 %v889_v4, %v889_v4 }
 0x2ec   :  { %v860_v7 = vpack.c.bf16 %v851_v6, %v851_v6  ;;  %v820_v10 = vpack.c.bf16 %v811_v5, %v811_v5 }
 0x2ed   :  { %v1722_v21 = vunpack.c.l.b16 %v899_v12 }
 0x2ee   :  { %v911_v9 = vunpack.c.l.b16 %v860_v7  ;;  %v906_v20 = vunpack.c.l.b16 %v820_v10 }
 0x2f0   :  { %v912_v11 = vpack.c.b16 %v911_v9, %v910_v8  ;;  %v907_v28 = vpack.c.b16 %v906_v20, %v905_v25 }
 0x2f2   :  { %v891_v14 = vpop.f32.mrf.mxu2  ;;  %v917_v15 = vsel %vm465_vm0, %v912_v11, 0 }
 0x2f3   :  { %v900_v16 = vpack.c.bf16 %v891_v14, %v891_v14  ;;  %v814_v17 = vpop.f32.mrf.mxu0  ;;  %v854_v18 = vpop.f32.mrf.mxu1  ;;  %926 = vmatpush.bf16.xpose.msra.mxu3 %v917_v15 }
 0x2f4   :  { %v861_v29 = vpack.c.bf16 %v854_v18, %v854_v18  ;;  %v821_v40 = vpack.c.bf16 %v814_v17, %v814_v17 }
 0x2f5   :  { %v1723_v22 = vunpack.c.l.b16 %v900_v16 }
 0x2f6   :  { %v940_v36 = vunpack.c.l.b16 %v861_v29  ;;  %v935_v45 = vunpack.c.l.b16 %v821_v40 }
 0x2f7   :  { %v1724_v27 = vpack.c.b16 %v1723_v22, %v1722_v21 }
 0x2f9   :  { %1736 = vmatpush.bf16.msra.mxu0 %v1724_v27 }
 0x2fa   :  { %v5577_v30 = vpop.f32.mrf.mxu2  ;;  %4482 = vmatmul.msk.bf16.vlgmr.msra.gmra.mxu3 %vm465_vm0, %v907_v28 }
 0x2fb   :  { %v816_v31 = vpop.f32.mrf.mxu0  ;;  %v856_v33 = vpop.f32.mrf.mxu1 }
 0x2fc   :  { %v862_v34 = vpack.c.bf16 %v856_v33, %v856_v33  ;;  %v822_v1 = vpack.c.bf16 %v816_v31, %v816_v31 }
 0x2fe   :  { %v941_v37 = vunpack.c.l.b16 %v862_v34  ;;  %v936_v32 = vunpack.c.l.b16 %v822_v1 }
 0x300   :  { %v942_v38 = vpack.c.b16 %v941_v37, %v940_v36  ;;  %v937_v46 = vpack.c.b16 %v936_v32, %v935_v45 }
 0x302   :  { %v5580_v41 = vpop.f32.mrf.mxu2  ;;  %v947_v42 = vsel %vm465_vm0, %v942_v38, 0 }
 0x303   :  { %956 = vmatpush.bf16.xpose.msrb.mxu3 %v947_v42  ;;  %v989_v43 = vpop.f32.mrf.mxu0  ;;  %v1029_v44 = vpop.f32.mrf.mxu1 }
 0x304   :  { %v1039_v47 = vpack.c.bf16 %v1029_v44, %v1029_v44  ;;  %v999_v55 = vpack.c.bf16 %v989_v43, %v989_v43 }
 0x306   :  { %v1090_v52 = vunpack.c.l.b16 %v1039_v47  ;;  %v1085_v3 = vunpack.c.l.b16 %v999_v55 }
 0x30a   :  { %v1069_v48 = vpop.f32.mrf.mxu2  ;;  %4483 = vmatmul.msk.bf16.vlgmr.msrb.gmra.mxu3 %vm465_vm0, %v937_v46 }
 0x30b   :  { %v991_v49 = vpop.f32.mrf.mxu0  ;;  %v1031_v50 = vpop.f32.mrf.mxu1  ;;  %v1079_v35 = vpack.c.bf16 %v1069_v48, %v1069_v48 }
 0x30c   :  { %v1040_v51 = vpack.c.bf16 %v1031_v50, %v1031_v50  ;;  %v1000_v54 = vpack.c.bf16 %v991_v49, %v991_v49 }
 0x30d   :  { %v1778_v0 = vunpack.c.l.b16 %v1079_v35 }
 0x30e   :  { %v1091_v53 = vunpack.c.l.b16 %v1040_v51  ;;  %v1086_v63 = vunpack.c.l.b16 %v1000_v54 }
 0x310   :  { %v1092_v24 = vpack.c.b16 %v1091_v53, %v1090_v52  ;;  %v1087_v5 = vpack.c.b16 %v1086_v63, %v1085_v3 }
 0x312   :  { %v1071_v57 = vpop.f32.mrf.mxu2  ;;  %v1097_v58 = vsel %vm465_vm0, %v1092_v24, 0 }
 0x313   :  { %v1080_v59 = vpack.c.bf16 %v1071_v57, %v1071_v57  ;;  %v994_v60 = vpop.f32.mrf.mxu0  ;;  %v1034_v61 = vpop.f32.mrf.mxu1  ;;  %1106 = vmatpush.bf16.xpose.msra.mxu3 %v1097_v58 }
 0x314   :  { %v1041_v6 = vpack.c.bf16 %v1034_v61, %v1034_v61  ;;  %v1001_v15 = vpack.c.bf16 %v994_v60, %v994_v60 }
 0x315   :  { %v1779_v2 = vunpack.c.l.b16 %v1080_v59 }
 0x316   :  { %v1120_v11 = vunpack.c.l.b16 %v1041_v6  ;;  %v1115_v22 = vunpack.c.l.b16 %v1001_v15 }
 0x317   :  { %v1780_v4 = vpack.c.b16 %v1779_v2, %v1778_v0 }
 0x319   :  { %1792 = vmatpush.bf16.msra.mxu2 %v1780_v4 }
 0x31a   :  { %v5585_v7 = vpop.f32.mrf.mxu2  ;;  %4526 = vmatmul.msk.bf16.vlgmr.msra.gmra.mxu3 %vm465_vm0, %v1087_v5 }
 0x31b   :  { %v996_v8 = vpop.f32.mrf.mxu0  ;;  %v1036_v9 = vpop.f32.mrf.mxu1 }
 0x31c   :  { %v1042_v10 = vpack.c.bf16 %v1036_v9, %v1036_v9  ;;  %v1002_v13 = vpack.c.bf16 %v996_v8, %v996_v8 }
 0x31e   :  { %v1121_v12 = vunpack.c.l.b16 %v1042_v10  ;;  %v1116_v21 = vunpack.c.l.b16 %v1002_v13 }
 0x320   :  { %v1122_v14 = vpack.c.b16 %v1121_v12, %v1120_v11  ;;  %v1117_v25 = vpack.c.b16 %v1116_v21, %v1115_v22 }
 0x322   :  { %v5588_v16 = vpop.f32.mrf.mxu2  ;;  %v1127_v17 = vsel %vm465_vm0, %v1122_v14, 0 }
 0x323   :  { %1136 = vmatpush.bf16.xpose.msrb.mxu3 %v1127_v17  ;;  %v1169_v18 = vpop.f32.mrf.mxu0  ;;  %v1209_v20 = vpop.f32.mrf.mxu1 }
 0x324   :  { %v1219_v27 = vpack.c.bf16 %v1209_v20, %v1209_v20  ;;  %v1179_v40 = vpack.c.bf16 %v1169_v18, %v1169_v18 }
 0x326   :  { %v1270_v34 = vunpack.c.l.b16 %v1219_v27  ;;  %v1265_v49 = vunpack.c.l.b16 %v1179_v40 }
 0x32a   :  { %v1249_v28 = vpop.f32.mrf.mxu2  ;;  %4527 = vmatmul.msk.bf16.vlgmr.msrb.gmra.mxu3 %vm465_vm0, %v1117_v25 }
 0x32b   :  { %v1171_v29 = vpop.f32.mrf.mxu0  ;;  %v1211_v31 = vpop.f32.mrf.mxu1  ;;  %v1259_v38 = vpack.c.bf16 %v1249_v28, %v1249_v28 }
 0x32c   :  { %v1220_v33 = vpack.c.bf16 %v1211_v31, %v1211_v31  ;;  %v1180_v37 = vpack.c.bf16 %v1171_v29, %v1171_v29 }
 0x32d   :  { %v1831_v47 = vunpack.c.l.b16 %v1259_v38 }
 0x32e   :  { %v1271_v36 = vunpack.c.l.b16 %v1220_v33  ;;  %v1266_v46 = vunpack.c.l.b16 %v1180_v37 }
 0x330   :  { %v1272_v1 = vpack.c.b16 %v1271_v36, %v1270_v34  ;;  %v1267_v51 = vpack.c.b16 %v1266_v46, %v1265_v49 }
 0x332   :  { %v1251_v42 = vpop.f32.mrf.mxu2  ;;  %v1277_v43 = vsel %vm465_vm0, %v1272_v1, 0 }
 0x333   :  { %v1260_v44 = vpack.c.bf16 %v1251_v42, %v1251_v42  ;;  %v1174_v32 = vpop.f32.mrf.mxu0  ;;  %v1214_v45 = vpop.f32.mrf.mxu1  ;;  %1286 = vmatpush.bf16.xpose.msra.mxu3 %v1277_v43 }
 0x334   :  { %v1221_v52 = vpack.c.bf16 %v1214_v45, %v1214_v45  ;;  %v1181_v60 = vpack.c.bf16 %v1174_v32, %v1174_v32 }
 0x335   :  { %v1832_v48 = vunpack.c.l.b16 %v1260_v44 }
 0x336   :  { %v1300_v55 = vunpack.c.l.b16 %v1221_v52  ;;  %v1295_v4 = vunpack.c.l.b16 %v1181_v60 }
 0x337   :  { %v1833_v50 = vpack.c.b16 %v1832_v48, %v1831_v47 }
 0x339   :  { %1845 = vmatpush.bf16.msrb.mxu0 %v1833_v50 }
 0x33a   :  { %v5593_v53 = vpop.f32.mrf.mxu2  ;;  %4570 = vmatmul.msk.bf16.vlgmr.msra.gmra.mxu3 %vm465_vm0, %v1267_v51 }
 0x33b   :  { %v1176_v54 = vpop.f32.mrf.mxu0  ;;  %v1216_v24 = vpop.f32.mrf.mxu1 }
 0x33c   :  { %v1222_v35 = vpack.c.bf16 %v1216_v24, %v1216_v24  ;;  %v1182_v58 = vpack.c.bf16 %v1176_v54, %v1176_v54 }
 0x33e   :  { %v1301_v57 = vunpack.c.l.b16 %v1222_v35  ;;  %v1296_v3 = vunpack.c.l.b16 %v1182_v58 }
 0x340   :  { %v1302_v59 = vpack.c.b16 %v1301_v57, %v1300_v55  ;;  %v1297_v5 = vpack.c.b16 %v1296_v3, %v1295_v4 }
 0x342   :  { %v5596_v61 = vpop.f32.mrf.mxu2  ;;  %v1307_v63 = vsel %vm465_vm0, %v1302_v59, 0 }
 0x343   :  { %1316 = vmatpush.bf16.xpose.msrb.mxu3 %v1307_v63  ;;  %v1349_v0 = vpop.f32.mrf.mxu0  ;;  %v1389_v2 = vpop.f32.mrf.mxu1 }
 0x344   :  { %v1399_v6 = vpack.c.bf16 %v1389_v2, %v1389_v2  ;;  %v1359_v18 = vpack.c.bf16 %v1349_v0, %v1349_v0 }
 0x346   :  { %v1450_v12 = vunpack.c.l.b16 %v1399_v6  ;;  %v1445_v33 = vunpack.c.l.b16 %v1359_v18 }
 0x34a   :  { %v1429_v8 = vpop.f32.mrf.mxu2  ;;  %4571 = vmatmul.msk.bf16.vlgmr.msrb.gmra.mxu3 %vm465_vm0, %v1297_v5 }
 0x34b   :  { %v1351_v9 = vpop.f32.mrf.mxu0  ;;  %v1391_v10 = vpop.f32.mrf.mxu1  ;;  %v1439_v17 = vpack.c.bf16 %v1429_v8, %v1429_v8 }
 0x34c   :  { %v1400_v11 = vpack.c.bf16 %v1391_v10, %v1391_v10  ;;  %v1360_v14 = vpack.c.bf16 %v1351_v9, %v1351_v9 }
 0x34d   :  { %v1884_v29 = vunpack.c.l.b16 %v1439_v17 }
 0x34e   :  { %v1451_v13 = vunpack.c.l.b16 %v1400_v11  ;;  %v1446_v28 = vunpack.c.l.b16 %v1360_v14 }
 0x350   :  { %v1452_v15 = vpack.c.b16 %v1451_v13, %v1450_v12  ;;  %v1447_v36 = vpack.c.b16 %v1446_v28, %v1445_v33 }
 0x352   :  { %v1431_v20 = vpop.f32.mrf.mxu2  ;;  %v1457_v21 = vsel %vm465_vm0, %v1452_v15, 0 }
 0x353   :  { %v1440_v22 = vpack.c.bf16 %v1431_v20, %v1431_v20  ;;  %v1354_v25 = vpop.f32.mrf.mxu0  ;;  %v1394_v27 = vpop.f32.mrf.mxu1  ;;  %1466 = vmatpush.bf16.xpose.msra.mxu3 %v1457_v21 }
 0x354   :  { %v1401_v37 = vpack.c.bf16 %v1394_v27, %v1394_v27  ;;  %v1361_v45 = vpack.c.bf16 %v1354_v25, %v1354_v25 }
 0x355   :  { %v1885_v31 = vunpack.c.l.b16 %v1440_v22 }
 0x356   :  { %v1480_v42 = vunpack.c.l.b16 %v1401_v37  ;;  %v1475_v48 = vunpack.c.l.b16 %v1361_v45 }
 0x357   :  { %v1886_v34 = vpack.c.b16 %v1885_v31, %v1884_v29 }
 0x359   :  { %1898 = vmatpush.bf16.msrb.mxu2 %v1886_v34 }
 0x35a   :  { %4614 = vmatmul.msk.bf16.vlgmr.msra.gmra.mxu3 %vm465_vm0, %v1447_v36 }
 0x35b   :  { %v1396_v1 = vpop.f32.mrf.mxu1  ;;  %v1356_v40 = vpop.f32.mrf.mxu0 }
 0x35c   :  { %v1402_v38 = vpack.c.bf16 %v1396_v1, %v1396_v1  ;;  %v1362_v44 = vpack.c.bf16 %v1356_v40, %v1356_v40 }
 0x35e   :  { %v1481_v43 = vunpack.c.l.b16 %v1402_v38  ;;  %v1476_v47 = vunpack.c.l.b16 %v1362_v44 }
 0x360   :  { %v1482_v32 = vpack.c.b16 %v1481_v43, %v1480_v42  ;;  %v1477_v49 = vpack.c.b16 %v1476_v47, %v1475_v48 }
 0x362   :  { %v1487_v46 = vsel %vm465_vm0, %v1482_v32, 0 }
 0x363   :  { %1496 = vmatpush.bf16.xpose.msrb.mxu3 %v1487_v46 }
 0x36a   :  { %4615 = vmatmul.msk.bf16.vlgmr.msrb.gmra.mxu3 %vm465_vm0, %v1477_v49 }
 0x37d   :  { %v928_v50 = vpop.f32.mrf.mxu3 }
 0x37e   :  { %v1505_v57 = vsel %vm664_vm13, %v928_v50, -1e+30 }
 0x37f   :  { %v1522_v60 = vsel %vm1521_vm14, %v1505_v57, -inf }
 0x385   :  { %v930_v51 = vpop.f32.mrf.mxu3 }
 0x386   :  { %v1506_v0 = vsel %vm664_vm13, %v930_v51, -1e+30 }
 0x387   :  { %v1525_v3 = vsel %vm1521_vm14, %v1506_v0, -inf }
 0x38d   :  { %v5604_v52 = vpop.f32.mrf.mxu3 }
 0x395   :  { %v5606_v54 = vpop.f32.mrf.mxu3 }
 0x39d   :  { %v1108_v24 = vpop.f32.mrf.mxu3 }
 0x39e   :  { %v1509_v35 = vsel %vm664_vm13, %v1108_v24, -1e+30 }
 0x39f   :  { %v1534_v55 = vsel %vm1521_vm14, %v1509_v35, -inf }
 0x3a0   :  { %1535 = vmax.xlane.f32.xlu2 %v1534_v55 }
 0x3a5   :  { %v1110_v58 = vpop.f32.mrf.mxu3 }
 0x3a6   :  { %v1510_v59 = vsel %vm664_vm13, %v1110_v58, -1e+30 }
 0x3a7   :  { %v1537_v63 = vsel %vm1521_vm14, %v1510_v59, -inf }
 0x3a8   :  { %1523 = vmax.xlane.f32.xlu2 %v1522_v60  ;;  %1538 = vmax.xlane.f32.xlu1 %v1537_v63 }
 0x3ad   :  { %v5620_v2 = vpop.f32.mrf.mxu3 }
 0x3b0   :  { %1526 = vmax.xlane.f32.xlu1 %v1525_v3 }
 0x3b5   :  { %v5623_v4 = vpop.f32.mrf.mxu3 }
 0x3bd   :  { %v1288_v5 = vpop.f32.mrf.mxu3 }
 0x3be   :  { %v1513_v13 = vsel %vm664_vm13, %v1288_v5, -1e+30 }
 0x3bf   :  { %v1546_v17 = vsel %vm1521_vm14, %v1513_v13, -inf }
 0x3c5   :  { %v1290_v6 = vpop.f32.mrf.mxu3 }
 0x3c6   :  { %v1514_v20 = vsel %vm664_vm13, %v1290_v6, -1e+30 }
 0x3c7   :  { %v1549_v21 = vsel %vm1521_vm14, %v1514_v20, -inf }
 0x3cd   :  { %v5625_v8 = vpop.f32.mrf.mxu3 }
 0x3d5   :  { %v5627_v9 = vpop.f32.mrf.mxu3 }
 0x3dd   :  { %v1468_v10 = vpop.f32.mrf.mxu3 }
 0x3de   :  { %v1517_v11 = vsel %vm664_vm13, %v1468_v10, -1e+30 }
 0x3df   :  { %v1558_v12 = vsel %vm1521_vm14, %v1517_v11, -inf }
 0x3e0   :  { %1559 = vmax.xlane.f32.xlu2 %v1558_v12  ;;  %v5672_v12 = vsel %vm664_vm13, %v5623_v4, -1e+30 }
 0x3e5   :  { %v1470_v14 = vpop.f32.mrf.mxu3 }
 0x3e6   :  { %v1518_v15 = vsel %vm664_vm13, %v1470_v14, -1e+30 }
 0x3e7   :  { %v1561_v18 = vsel %vm1521_vm14, %v1518_v15, -inf }
 0x3e8   :  { %1547 = vmax.xlane.f32.xlu2 %v1546_v17  ;;  %1562 = vmax.xlane.f32.xlu1 %v1561_v18  ;;  %v1543_v17 = vsel %vm1521_vm14, %v5672_v12, -inf }
 0x3f0   :  { %1550 = vmax.xlane.f32.xlu1 %v1549_v21  ;;  %v5699_v21 = vsel %vm664_vm13, %v5606_v54, -1e+30 }
 0x413   :  { %v1536_v22 = vpop.xlane.xlu2 %1535 }
 0x414   :  { %v1574_v25 = vsub.f32 %v1509_v35, %v1536_v22 }
 0x416   :  { %v1594_v27 = vmul.f32 1.442695, %v1574_v25 }
 0x418   :  { %5117 = vpow2.f32 %v1594_v27  ;;  %v1531_v27 = vsel %vm1521_vm14, %v5699_v21, -inf }
 0x41b   :  { %v1524_v28 = vpop.xlane.xlu2 %1523  ;;  %v1539_v29 = vpop.xlane.xlu1 %1538 }
 0x41c   :  { %v1570_v31 = vsub.f32 %v1505_v57, %v1524_v28  ;;  %v1575_v33 = vsub.f32 %v1510_v59, %v1539_v29  ;;  %v5710_v28 = vsel %vm664_vm13, %v5627_v9, -1e+30  ;;  %v5719_v29 = vsel %vm664_vm13, %v5625_v8, -1e+30 }
 0x41e   :  { %v5641_v34 = vpop.eup %5117  ;;  %v1586_v36 = vmul.f32 1.442695, %v1570_v31  ;;  %v1596_v37 = vmul.f32 1.442695, %v1575_v33  ;;  %v1555_v31 = vsel %vm1521_vm14, %v5710_v28, -inf }
 0x41f   :  { %v1630_v1 = vsel %vm1521_vm14, %v5641_v34, 0.0 }
 0x420   :  { %5119 = vpow2.f32 %v1586_v36  ;;  %1631 = vadd.xlane.f32.xlu2 %v1630_v1  ;;  %v1552_v36 = vsel %vm1521_vm14, %v5719_v29, -inf }
 0x421   :  { %5121 = vpow2.f32 %v1596_v37 }
 0x423   :  { %v1527_v38 = vpop.xlane.xlu1 %1526 }
 0x424   :  { %v1571_v40 = vsub.f32 %v1506_v0, %v1527_v38 }
 0x426   :  { %v5645_v42 = vpop.eup %5119  ;;  %v1588_v43 = vmul.f32 1.442695, %v1571_v40 }
 0x427   :  { %v5647_v44 = vpop.eup %5121  ;;  %v1618_v32 = vsel %vm1521_vm14, %v5645_v42, 0.0 }
 0x428   :  { %5123 = vpow2.f32 %v1588_v43  ;;  %v1633_v45 = vsel %vm1521_vm14, %v5647_v44, 0.0  ;;  %1619 = vadd.xlane.f32.xlu1 %v1618_v32  ;;  %v1082_v43 = vpack.c.bf16 %v5588_v16, %v5588_v16  ;;  %v902_v16 = vpack.c.bf16 %v5580_v41, %v5580_v41 }
 0x429   :  { %1634 = vadd.xlane.f32.xlu0 %v1633_v45 }
 0x42e   :  { %v5653_v46 = vpop.eup %5123 }
 0x42f   :  { %v1621_v47 = vsel %vm1521_vm14, %v5653_v46, 0.0 }
 0x430   :  { %1622 = vadd.xlane.f32.xlu2 %v1621_v47 }
 0x453   :  { %v1560_v48 = vpop.xlane.xlu2 %1559 }
 0x454   :  { %v1582_v49 = vsub.f32 %v1517_v11, %v1560_v48 }
 0x456   :  { %v1610_v50 = vmul.f32 1.442695, %v1582_v49  ;;  %v1081_v49 = vpack.c.bf16 %v5585_v7, %v5585_v7 }
 0x458   :  { %5125 = vpow2.f32 %v1610_v50 }
 0x45b   :  { %v1548_v51 = vpop.xlane.xlu2 %1547  ;;  %v1563_v24 = vpop.xlane.xlu1 %1562 }
 0x45c   :  { %v1578_v35 = vsub.f32 %v1513_v13, %v1548_v51  ;;  %v1583_v55 = vsub.f32 %v1518_v15, %v1563_v24  ;;  %v5677_v13 = vsel %vm664_vm13, %v5620_v2, -1e+30  ;;  %v1498_v15 = vpop.f32.mrf.mxu3  ;;  %v5690_v2 = vsel %vm664_vm13, %v5604_v52, -1e+30 }
 0x45d   :  { %v5694_v4 = vsel %vm664_vm13, %v1498_v15, -1e+30  ;;  %v1528_v22 = vsel %vm1521_vm14, %v5690_v2, -inf  ;;  %v1986_v51 = vunpack.c.l.b16 %v1082_v43 }
 0x45e   :  { %v5657_v57 = vpop.eup %5125  ;;  %v1602_v58 = vmul.f32 1.442695, %v1578_v35  ;;  %v1612_v59 = vmul.f32 1.442695, %v1583_v55  ;;  %v1564_v25 = vsel %vm1521_vm14, %v5694_v4, -inf }
 0x45f   :  { %v1654_v60 = vsel %vm1521_vm14, %v5657_v57, 0.0 }
 0x460   :  { %5127 = vpow2.f32 %v1602_v58  ;;  %1655 = vadd.xlane.f32.xlu0 %v1654_v60 }
 0x461   :  { %5129 = vpow2.f32 %v1612_v59 }
 0x463   :  { %v1551_v63 = vpop.xlane.xlu1 %1550 }
 0x464   :  { %v1579_v0 = vsub.f32 %v1514_v20, %v1551_v63  ;;  %v1540_v20 = vsel %vm1521_vm14, %v5677_v13, -inf  ;;  %v1500_v52 = vpop.f32.mrf.mxu3 }
 0x465   :  { %v5714_v54 = vsel %vm664_vm13, %v1500_v52, -1e+30 }
 0x466   :  { %v5661_v3 = vpop.eup %5127  ;;  %v1604_v5 = vmul.f32 1.442695, %v1579_v0  ;;  %v1567_v33 = vsel %vm1521_vm14, %v5714_v54, -inf  ;;  %v901_v0 = vpack.c.bf16 %v5577_v30, %v5577_v30 }
 0x467   :  { %v5663_v6 = vpop.eup %5129  ;;  %v1642_v10 = vsel %vm1521_vm14, %v5661_v3, 0.0 }
 0x468   :  { %5131 = vpow2.f32 %v1604_v5  ;;  %1643 = vadd.xlane.f32.xlu2 %v1642_v10  ;;  %v1657_v11 = vsel %vm1521_vm14, %v5663_v6, 0.0 }
 0x469   :  { %1658 = vadd.xlane.f32.xlu1 %v1657_v11  ;;  %v1937_v11 = vunpack.c.l.b16 %v901_v0 }
 0x46e   :  { %v5679_v14 = vpop.eup %5131 }
 0x46f   :  { %v1645_v18 = vsel %vm1521_vm14, %v5679_v14, 0.0 }
 0x470   :  { %1544 = vmax.xlane.f32.xlu2 %v1543_v17  ;;  %1646 = vadd.xlane.f32.xlu0 %v1645_v18  ;;  %v1434_v18 = vpop.f32.mrf.mxu2 }
 0x471   :  { %1541 = vmax.xlane.f32.xlu1 %v1540_v20 }
 0x478   :  { %1529 = vmax.xlane.f32.xlu0 %v1528_v22  ;;  %1565 = vmax.xlane.f32.xlu2 %v1564_v25  ;;  %v1436_v30 = vpop.f32.mrf.mxu2 }
 0x479   :  { %1532 = vmax.xlane.f32.xlu1 %v1531_v27  ;;  %v1442_v52 = vpack.c.bf16 %v1436_v30, %v1436_v30 }
 0x480   :  { %1556 = vmax.xlane.f32.xlu2 %v1555_v31  ;;  %1568 = vmax.xlane.f32.xlu0 %v1567_v33 }
 0x481   :  { %1553 = vmax.xlane.f32.xlu1 %v1552_v36 }
 0x493   :  { %v1632_v9 = vpop.xlane.xlu2 %1631 }
 0x494   :  { %5133 = vrcp.f32 %v1632_v9 }
 0x49a   :  { %v5134_v38 = vpop.eup %5133 }
 0x49b   :  { %v1620_v37 = vpop.xlane.xlu1 %1619  ;;  %v1686_v8 = vmul.f32 %v5134_v38, %v5641_v34  ;;  %v1985_v34 = vunpack.c.l.b16 %v1081_v49 }
 0x49c   :  { %v1635_v1 = vpop.xlane.xlu0 %1634 }
 0x49d   :  { %5135 = vrcp.f32 %v1635_v1  ;;  %v1702_v47 = vpack.c.bf16 %v1686_v8, %v1686_v8  ;;  %v1987_v60 = vpack.c.b16 %v1986_v51, %v1985_v34  ;;  %v1441_v8 = vpack.c.bf16 %v1434_v18, %v1434_v18 }
 0x49e   :  { %5137 = vrcp.f32 %v1620_v37 }
 0x49f   :  { %v1773_v35 = vunpack.c.l.b16 %v1702_v47 }
 0x4a3   :  { %v5136_v40 = vpop.eup %5135  ;;  %v1623_v32 = vpop.xlane.xlu2 %1622 }
 0x4a4   :  { %v5138_v45 = vpop.eup %5137  ;;  %v1687_v48 = vmul.f32 %v5136_v40, %v5647_v44  ;;  %5139 = vrcp.f32 %v1623_v32 }
 0x4a5   :  { %v1682_v24 = vmul.f32 %v5138_v45, %v5645_v42  ;;  %v1938_v42 = vunpack.c.l.b16 %v902_v16  ;;  %v2082_v45 = vunpack.c.l.b16 %v1442_v52 }
 0x4a6   :  { %v1703_v50 = vpack.c.bf16 %v1687_v48, %v1687_v48 }
 0x4a7   :  { %v1698_v63 = vpack.c.bf16 %v1682_v24, %v1682_v24  ;;  %v1939_v17 = vpack.c.b16 %v1938_v42, %v1937_v11 }
 0x4a8   :  { %v1774_v55 = vunpack.c.l.b16 %v1703_v50  ;;  %v2081_v50 = vunpack.c.l.b16 %v1441_v8  ;;  %v4619_v8 = vld [vmem:[%s5799_s25 + $0x4] sm:$0xf] }
 0x4a9   :  { %v1717_v5 = vunpack.c.l.b16 %v1698_v63 }
 0x4aa   :  { %v5140_v58 = vpop.eup %5139  ;;  %v1775_v59 = vpack.c.b16 %v1774_v55, %v1773_v35  ;;  %v2083_v24 = vpack.c.b16 %v2082_v45, %v2081_v50 }
 0x4ab   :  { %v1683_v44 = vmul.f32 %v5140_v58, %v5653_v46 }
 0x4ac   :  { %4618 = vmatmul.msk.bf16.vlgmr.msra.gmra.mxu2 %vm1521_vm14, %v1775_v59 }
 0x4ad   :  { %v1699_v7 = vpack.c.bf16 %v1683_v44, %v1683_v44  ;;  %1999 = vmatpush.bf16.msra.mxu2 %v1987_v60 }
 0x4af   :  { %v1718_v10 = vunpack.c.l.b16 %v1699_v7 }
 0x4b1   :  { %v1719_v15 = vpack.c.b16 %v1718_v10, %v1717_v5 }
 0x4b3   :  { %4616 = vmatmul.msk.bf16.vlgmr.msra.gmra.mxu0 %vm1521_vm14, %v1719_v15 }
 0x4b4   :  { %1951 = vmatpush.bf16.msra.mxu0 %v1939_v17 }
 0x4d3   :  { %v1656_v41 = vpop.xlane.xlu0 %1655 }
 0x4d4   :  { %5141 = vrcp.f32 %v1656_v41 }
 0x4da   :  { %v5142_v22 = vpop.eup %5141 }
 0x4db   :  { %v1644_v46 = vpop.xlane.xlu2 %1643  ;;  %v1694_v25 = vmul.f32 %v5142_v22, %v5657_v57 }
 0x4dc   :  { %v1659_v20 = vpop.xlane.xlu1 %1658 }
 0x4dd   :  { %5143 = vrcp.f32 %v1659_v20  ;;  %v1710_v9 = vpack.c.bf16 %v1694_v25, %v1694_v25 }
 0x4de   :  { %5145 = vrcp.f32 %v1644_v46 }
 0x4df   :  { %v1879_v48 = vunpack.c.l.b16 %v1710_v9 }
 0x4e3   :  { %v5144_v27 = vpop.eup %5143  ;;  %v1545_v31 = vpop.xlane.xlu2 %1544 }
 0x4e4   :  { %v1647_v33 = vpop.xlane.xlu0 %1646  ;;  %v5146_v36 = vpop.eup %5145  ;;  %v1695_v37 = vmul.f32 %v5144_v27, %v5663_v6  ;;  %v1577_v1 = vsub.f32 %v5672_v12, %v1545_v31  ;;  %v1262_v6 = vpack.c.bf16 %v5596_v61, %v5596_v61 }
 0x4e5   :  { %5147 = vrcp.f32 %v1647_v33  ;;  %v1542_v38 = vpop.xlane.xlu1 %1541  ;;  %v1690_v57 = vmul.f32 %v5146_v36, %v5661_v3  ;;  %v1261_v3 = vpack.c.bf16 %v5593_v53, %v5593_v53 }
 0x4e6   :  { %v1576_v40 = vsub.f32 %v5677_v13, %v1542_v38  ;;  %v1711_v43 = vpack.c.bf16 %v1695_v37, %v1695_v37  ;;  %v1600_v32 = vmul.f32 1.442695, %v1577_v1  ;;  %v2034_v44 = vunpack.c.l.b16 %v1262_v6 }
 0x4e7   :  { %v1706_v35 = vpack.c.bf16 %v1690_v57, %v1690_v57  ;;  %v2033_v10 = vunpack.c.l.b16 %v1261_v3 }
 0x4e8   :  { %v1598_v47 = vmul.f32 1.442695, %v1576_v40  ;;  %v1880_v49 = vunpack.c.l.b16 %v1711_v43  ;;  %5149 = vpow2.f32 %v1600_v32  ;;  %v1806_v40 = vsel %vm1748_vm15, %v4619_v8, 0  ;;  %v1744_v43 = vld [vmem:[%s5799_s25] sm:$0xf] }
 0x4e9   :  { %v1826_v42 = vunpack.c.l.b16 %v1706_v35  ;;  %v2035_v11 = vpack.c.b16 %v2034_v44, %v2033_v10  ;;  %1815 = vmatpush.bf16.msra.mxu3 %v1806_v40  ;;  %v1750_v32 = vsel %vm1748_vm15, %v1744_v43, 0 }
 0x4ea   :  { %5151 = vpow2.f32 %v1598_v47  ;;  %v1881_v12 = vpack.c.b16 %v1880_v49, %v1879_v48  ;;  %1759 = vmatpush.bf16.msra.mxu1 %v1750_v32 }
 0x4eb   :  { %v5148_v51 = vpop.eup %5147  ;;  %v1566_v34 = vpop.xlane.xlu2 %1565 }
 0x4ec   :  { %v1691_v13 = vmul.f32 %v5148_v51, %v5679_v14  ;;  %v1530_v55 = vpop.xlane.xlu0 %1529  ;;  %4624 = vmatmul.msk.bf16.vlgmr.msrb.gmra.mxu2 %vm1521_vm14, %v1881_v12  ;;  %v1584_v59 = vsub.f32 %v5694_v4, %v1566_v34  ;;  %v4625_v51 = vld [vmem:[%s5799_s25 + $0xc] sm:$0xf]  ;;  %v4622_v12 = vld [vmem:[%s5799_s25 + $0x8] sm:$0xf] }
 0x4ed   :  { %v1572_v58 = vsub.f32 %v5690_v2, %v1530_v55  ;;  %v1533_v16 = vpop.xlane.xlu1 %1532  ;;  %2095 = vmatpush.bf16.msrb.mxu2 %v2083_v24  ;;  %v1912_v6 = vsel %vm1748_vm15, %v4625_v51, 0  ;;  %v1859_v24 = vsel %vm1748_vm15, %v4622_v12, 0 }
 0x4ee   :  { %v1707_v60 = vpack.c.bf16 %v1691_v13, %v1691_v13  ;;  %v1573_v61 = vsub.f32 %v5699_v21, %v1533_v16  ;;  %v5755_v63 = vpop.eup %5149  ;;  %v1614_v0 = vmul.f32 1.442695, %v1584_v59  ;;  %1921 = vmatpush.bf16.msrb.mxu3 %v1912_v6  ;;  %1868 = vmatpush.bf16.msrb.mxu1 %v1859_v24 }
 0x4ef   :  { %v1590_v14 = vmul.f32 1.442695, %v1572_v58  ;;  %v1639_v2 = vsel %vm1521_vm14, %v5755_v63, 0.0 }
 0x4f0   :  { %v5757_v7 = vpop.eup %5151  ;;  %v1827_v53 = vunpack.c.l.b16 %v1707_v60  ;;  %v1592_v5 = vmul.f32 1.442695, %v1573_v61  ;;  %1640 = vadd.xlane.f32.xlu1 %v1639_v2 }
 0x4f1   :  { %5153 = vpow2.f32 %v1590_v14  ;;  %v1636_v4 = vsel %vm1521_vm14, %v5757_v7, 0.0 }
 0x4f2   :  { %v1828_v21 = vpack.c.b16 %v1827_v53, %v1826_v42  ;;  %5155 = vpow2.f32 %v1592_v5  ;;  %1637 = vadd.xlane.f32.xlu0 %v1636_v4 }
 0x4f3   :  { %5157 = vpow2.f32 %v1614_v0  ;;  %v1557_v15 = vpop.xlane.xlu2 %1556 }
 0x4f4   :  { %4621 = vmatmul.msk.bf16.vlgmr.msrb.gmra.mxu0 %vm1521_vm14, %v1828_v21  ;;  %v1569_v17 = vpop.xlane.xlu0 %1568  ;;  %v1581_v18 = vsub.f32 %v5710_v28, %v1557_v15 }
 0x4f5   :  { %2047 = vmatpush.bf16.msrb.mxu0 %v2035_v11  ;;  %v1554_v41 = vpop.xlane.xlu1 %1553  ;;  %v1585_v46 = vsub.f32 %v5714_v54, %v1569_v17 }
 0x4f6   :  { %v1580_v20 = vsub.f32 %v5719_v29, %v1554_v41  ;;  %v1608_v30 = vmul.f32 1.442695, %v1581_v18 }
 0x4f7   :  { %v5767_v22 = vpop.eup %5153  ;;  %v1616_v25 = vmul.f32 1.442695, %v1585_v46 }
 0x4f8   :  { %v5769_v27 = vpop.eup %5155  ;;  %v1606_v52 = vmul.f32 1.442695, %v1580_v20  ;;  %v1624_v31 = vsel %vm1521_vm14, %v5767_v22, 0.0  ;;  %5159 = vpow2.f32 %v1608_v30 }
 0x4f9   :  { %v5773_v33 = vpop.eup %5157  ;;  %1625 = vadd.xlane.f32.xlu2 %v1624_v31  ;;  %v1627_v28 = vsel %vm1521_vm14, %v5769_v27, 0.0 }
 0x4fa   :  { %5161 = vpow2.f32 %v1606_v52  ;;  %v1660_v54 = vsel %vm1521_vm14, %v5773_v33, 0.0  ;;  %1628 = vadd.xlane.f32.xlu0 %v1627_v28 }
 0x4fb   :  { %5163 = vpow2.f32 %v1616_v25  ;;  %1661 = vadd.xlane.f32.xlu1 %v1660_v54 }
 0x4fe   :  { %v5779_v29 = vpop.eup %5159 }
 0x4ff   :  { %v1651_v9 = vsel %vm1521_vm14, %v5779_v29, 0.0 }
 0x500   :  { %v5781_v36 = vpop.eup %5161 }
 0x501   :  { %v5785_v37 = vpop.eup %5163  ;;  %v1648_v1 = vsel %vm1521_vm14, %v5781_v36, 0.0 }
 0x502   :  { %1649 = vadd.xlane.f32.xlu0 %v1648_v1  ;;  %v1663_v38 = vsel %vm1521_vm14, %v5785_v37, 0.0 }
 0x503   :  { %1652 = vadd.xlane.f32.xlu1 %v1651_v9  ;;  %1664 = vadd.xlane.f32.xlu2 %v1663_v38 }
 0x52f   :  { %v1794_v45 = vpop.f32.mrf.mxu2 }
 0x530   :  { %v1738_v57 = vpop.f32.mrf.mxu0 }
 0x537   :  { %v1796_v47 = vpop.f32.mrf.mxu2 }
 0x538   :  { %v1799_v48 = vpack.c.bf16 %v1796_v47, %v1794_v45  ;;  %v1740_v49 = vpop.f32.mrf.mxu0 }
 0x539   :  { %v1743_v50 = vpack.c.bf16 %v1740_v49, %v1738_v57 }
 0x53a   :  { %4620 = vmatmul.msk.bf16.vlgmr.msra.gmra.mxu3 %vm465_vm0, %v1799_v48 }
 0x53b   :  { %4617 = vmatmul.msk.bf16.vlgmr.msra.gmra.mxu1 %vm465_vm0, %v1743_v50  ;;  %2017 = vmatpush.bf16.msra.mxu3 %v1806_v40 }
 0x53c   :  { %1969 = vmatpush.bf16.msra.mxu1 %v1750_v32 }
 0x563   :  { %v1641_v35 = vpop.xlane.xlu1 %1640 }
 0x564   :  { %5165 = vrcp.f32 %v1641_v35 }
 0x565   :  { %v1638_v13 = vpop.xlane.xlu0 %1637 }
 0x566   :  { %5167 = vrcp.f32 %v1638_v13 }
 0x56a   :  { %v5166_v55 = vpop.eup %5165 }
 0x56b   :  { %v1689_v3 = vmul.f32 %v5166_v55, %v5755_v63 }
 0x56c   :  { %v5168_v34 = vpop.eup %5167  ;;  %v1626_v58 = vpop.xlane.xlu2 %1625 }
 0x56d   :  { %v1688_v16 = vmul.f32 %v5168_v34, %v5757_v7  ;;  %5169 = vrcp.f32 %v1626_v58  ;;  %v1629_v59 = vpop.xlane.xlu0 %1628  ;;  %v1705_v60 = vpack.c.bf16 %v1689_v3, %v1689_v3 }
 0x56e   :  { %v1662_v61 = vpop.xlane.xlu1 %1661  ;;  %5171 = vrcp.f32 %v1629_v59 }
 0x56f   :  { %v1704_v44 = vpack.c.bf16 %v1688_v16, %v1688_v16  ;;  %v1981_v14 = vunpack.c.l.b16 %v1705_v60  ;;  %v1900_v0 = vpop.f32.mrf.mxu2  ;;  %5173 = vrcp.f32 %v1662_v61 }
 0x571   :  { %v1980_v42 = vunpack.c.l.b16 %v1704_v44  ;;  %v1847_v53 = vpop.f32.mrf.mxu0 }
 0x573   :  { %v5170_v5 = vpop.eup %5169  ;;  %v1982_v2 = vpack.c.b16 %v1981_v14, %v1980_v42 }
 0x574   :  { %v5172_v10 = vpop.eup %5171  ;;  %v1684_v4 = vmul.f32 %v5170_v5, %v5767_v22 }
 0x575   :  { %v1685_v63 = vmul.f32 %v5172_v10, %v5769_v27  ;;  %4629 = vmatmul.msk.bf16.vlgmr.msra.gmra.mxu2 %vm1521_vm14, %v1982_v2  ;;  %v1650_v7 = vpop.xlane.xlu0 %1649  ;;  %v5174_v41 = vpop.eup %5173 }
 0x576   :  { %v1700_v21 = vpack.c.bf16 %v1684_v4, %v1684_v4  ;;  %v1653_v11 = vpop.xlane.xlu1 %1652  ;;  %v1665_v15 = vpop.xlane.xlu2 %1664  ;;  %5175 = vrcp.f32 %v1650_v7  ;;  %v1696_v22 = vmul.f32 %v5174_v41, %v5773_v33 }
 0x577   :  { %v1701_v17 = vpack.c.bf16 %v1685_v63, %v1685_v63  ;;  %5177 = vrcp.f32 %v1653_v11  ;;  %v1902_v46 = vpop.f32.mrf.mxu2 }
 0x578   :  { %v1932_v18 = vunpack.c.l.b16 %v1700_v21  ;;  %5179 = vrcp.f32 %v1665_v15  ;;  %v1905_v30 = vpack.c.bf16 %v1902_v46, %v1900_v0  ;;  %v1712_v9 = vpack.c.bf16 %v1696_v22, %v1696_v22 }
 0x579   :  { %v1933_v20 = vunpack.c.l.b16 %v1701_v17  ;;  %v1849_v25 = vpop.f32.mrf.mxu0 }
 0x57a   :  { %v1852_v52 = vpack.c.bf16 %v1849_v25, %v1847_v53  ;;  %4626 = vmatmul.msk.bf16.vlgmr.msrb.gmra.mxu3 %vm465_vm0, %v1905_v30  ;;  %v2076_v40 = vunpack.c.l.b16 %v1712_v9 }
 0x57b   :  { %v1934_v27 = vpack.c.b16 %v1933_v20, %v1932_v18  ;;  %2113 = vmatpush.bf16.msrb.mxu3 %v1912_v6 }
 0x57c   :  { %v5176_v31 = vpop.eup %5175  ;;  %4623 = vmatmul.msk.bf16.vlgmr.msrb.gmra.mxu1 %vm465_vm0, %v1852_v52 }
 0x57d   :  { %v5178_v28 = vpop.eup %5177  ;;  %4627 = vmatmul.msk.bf16.vlgmr.msra.gmra.mxu0 %vm1521_vm14, %v1934_v27  ;;  %2065 = vmatpush.bf16.msrb.mxu1 %v1859_v24  ;;  %v1692_v33 = vmul.f32 %v5176_v31, %v5781_v36 }
 0x57e   :  { %v5180_v54 = vpop.eup %5179  ;;  %v1693_v1 = vmul.f32 %v5178_v28, %v5779_v29 }
 0x57f   :  { %v1697_v38 = vmul.f32 %v5180_v54, %v5785_v37  ;;  %v1708_v45 = vpack.c.bf16 %v1692_v33, %v1692_v33  ;;  %v5085_v37 = vld [vmem:[%s5794_s18] ss:$0 sm:$0xff] }
 0x580   :  { %v1709_v43 = vpack.c.bf16 %v1693_v1, %v1693_v1 }
 0x581   :  { %v1713_v8 = vpack.c.bf16 %v1697_v38, %v1697_v38  ;;  %v2028_v48 = vunpack.c.l.b16 %v1708_v45 }
 0x582   :  { %v2029_v47 = vunpack.c.l.b16 %v1709_v43 }
 0x583   :  { %v2077_v32 = vunpack.c.l.b16 %v1713_v8 }
 0x584   :  { %v2030_v49 = vpack.c.b16 %v2029_v47, %v2028_v48 }
 0x585   :  { %v2078_v57 = vpack.c.b16 %v2077_v32, %v2076_v40 }
 0x587   :  { %4633 = vmatmul.msk.bf16.vlgmr.msrb.gmra.mxu2 %vm1521_vm14, %v2078_v57 }
 0x58d   :  { %4631 = vmatmul.msk.bf16.vlgmr.msrb.gmra.mxu0 %vm1521_vm14, %v2030_v49 }
 0x5b8   :  { %v1761_v50 = vpop.f32.mrf.mxu1 }
 0x5b9   :  { %v1769_v36 = vadd.f32 %v5085_v37, %v1761_v50 }
 0x5bd   :  { %v1817_v29 = vpop.f32.mrf.mxu3 }
 0x5be   :  { %v1822_v13 = vadd.f32 %v1817_v29, %v1769_v36 }
 0x5c0   :  { %v1763_v51 = vpop.f32.mrf.mxu1 }
 0x5c1   :  { %v1770_v16 = vadd.f32 %v5085_v37, %v1763_v51 }
 0x5c5   :  { %v1819_v6 = vpop.f32.mrf.mxu3 }
 0x5c6   :  { %v1823_v14 = vadd.f32 %v1819_v6, %v1770_v16 }
 0x5f8   :  { %v2001_v12 = vpop.f32.mrf.mxu2 }
 0x5f9   :  { %v1870_v24 = vpop.f32.mrf.mxu1 }
 0x5fa   :  { %v1953_v35 = vpop.f32.mrf.mxu0  ;;  %v1875_v55 = vadd.f32 %v1870_v24, %v1822_v13 }
 0x5fd   :  { %v1923_v34 = vpop.f32.mrf.mxu3 }
 0x5fe   :  { %v1928_v3 = vadd.f32 %v1923_v34, %v1875_v55 }
 0x600   :  { %v2003_v58 = vpop.f32.mrf.mxu2  ;;  %v5827_v59 = vadd.f32 %v1928_v3, %v5436_v26 }
 0x601   :  { %v2006_v60 = vpack.c.bf16 %v2003_v58, %v2001_v12  ;;  %v1872_v61 = vpop.f32.mrf.mxu1 }
 0x602   :  { %v1955_v44 = vpop.f32.mrf.mxu0  ;;  %v2128_v42 = vsel %vm517_vm6, %v5827_v59, 0.0  ;;  %v1876_v53 = vadd.f32 %v1872_v61, %v1823_v14 }
 0x603   :  { %v1958_v0 = vpack.c.bf16 %v1955_v44, %v1953_v35  ;;  %4630 = vmatmul.msk.bf16.vlgmr.msra.gmra.mxu3 %vm465_vm0, %v2006_v60  ;;  %2129 = vadd.xlane.f32.xlu2 %v2128_v42 }
 0x605   :  { %4628 = vmatmul.msk.bf16.vlgmr.msra.gmra.mxu1 %vm465_vm0, %v1958_v0  ;;  %v1925_v5 = vpop.f32.mrf.mxu3 }
 0x606   :  { %v1929_v2 = vadd.f32 %v1925_v5, %v1876_v53  ;;  %v5884_v53 = vld [vmem:[%s5843_s29] ss:$0 sm:$0xff] }
 0x608   :  { %v5834_v10 = vadd.f32 %v1929_v2, %v5473_v19 }
 0x60a   :  { %v2097_v26 = vpop.f32.mrf.mxu2  ;;  %v2049_v4 = vpop.f32.mrf.mxu0  ;;  %v2131_v63 = vsel %vm517_vm6, %v5834_v10, 0.0 }
 0x60b   :  { %2132 = vadd.xlane.f32.xlu0 %v2131_v63 }
 0x612   :  { %v2099_v7 = vpop.f32.mrf.mxu2  ;;  %v2051_v21 = vpop.f32.mrf.mxu0 }
 0x613   :  { %v2102_v11 = vpack.c.bf16 %v2099_v7, %v2097_v26  ;;  %v2054_v15 = vpack.c.bf16 %v2051_v21, %v2049_v4  ;;  %v5888_v4 = vld [vmem:[%s5848_s3] ss:$0 sm:$0xff] }
 0x615   :  { %4634 = vmatmul.msk.bf16.vlgmr.msrb.gmra.mxu3 %vm465_vm0, %v2102_v11  ;;  %4632 = vmatmul.msk.bf16.vlgmr.msrb.gmra.mxu1 %vm465_vm0, %v2054_v15 }
 0x676   :  { %v2130_v19 = vpop.xlane.xlu2 %2129 }
 0x677   :  { %v2140_v17 = vmul.f32 %v2130_v19, %v5461_v62 }
 0x679   :  { %v5852_v41 = vsub.f32 %v5827_v59, %v2140_v17 }
 0x67b   :  { %v2148_v18 = vmul.f32 %v5852_v41, %v5852_v41 }
 0x67d   :  { %v2152_v46 = vsel %vm517_vm6, %v2148_v18, 0.0 }
 0x67e   :  { %2153 = vadd.xlane.f32.xlu1 %v2152_v46  ;;  %v2133_v20 = vpop.xlane.xlu0 %2132 }
 0x67f   :  { %v2141_v30 = vmul.f32 %v2133_v20, %v5461_v62 }
 0x681   :  { %v5859_v25 = vsub.f32 %v5834_v10, %v2141_v30 }
 0x682   :  { %v1971_v52 = vpop.f32.mrf.mxu1 }
 0x683   :  { %v2149_v22 = vmul.f32 %v5859_v25, %v5859_v25  ;;  %v1976_v1 = vadd.f32 %v5085_v37, %v1971_v52 }
 0x685   :  { %v2155_v31 = vsel %vm517_vm6, %v2149_v22, 0.0 }
 0x686   :  { %v2019_v27 = vpop.f32.mrf.mxu3  ;;  %2156 = vadd.xlane.f32.xlu2 %v2155_v31  ;;  %v5003_v31 = vld [vmem:[%s5910_s20 + $0x18] sm:$0xff] }
 0x687   :  { %v2024_v38 = vadd.f32 %v2019_v27, %v1976_v1  ;;  %2362 = vmatpush.bf16.msra.mxu1 %v5003_v31  ;;  %v5002_v1 = vld [vmem:[%s5910_s20 + $0x10] sm:$0xff]  ;;  %v5089_v31 = vld [vmem:[%s5930_s23] ss:$0 sm:$0xff] }
 0x68a   :  { %v1973_v28 = vpop.f32.mrf.mxu1 }
 0x68b   :  { %v1977_v43 = vadd.f32 %v5085_v37, %v1973_v28  ;;  %v4999_v37 = vld [vmem:[%s5877_s7 + $0x8] sm:$0xff]  ;;  %2363 = vmatpush.bf16.msra.mxu1 %v5002_v1 }
 0x68c   :  { %2264 = vmatpush.bf16.msra.mxu0 %v4999_v37 }
 0x68e   :  { %v2021_v54 = vpop.f32.mrf.mxu3 }
 0x68f   :  { %v2025_v57 = vadd.f32 %v2021_v54, %v1977_v43 }
 0x692   :  { %v2067_v9 = vpop.f32.mrf.mxu1 }
 0x693   :  { %v2072_v33 = vadd.f32 %v2067_v9, %v2024_v38  ;;  %v5916_v38 = vld [vmem:[%s5895_s12] ss:$0 sm:$0xff] }
 0x698   :  { %v2115_v8 = vpop.f32.mrf.mxu3 }
 0x699   :  { %v2120_v40 = vadd.f32 %v2115_v8, %v2072_v33  ;;  %v5001_v33 = vld [vmem:[%s5910_s20 + $0x8] sm:$0xff] }
 0x69a   :  { %v2069_v45 = vpop.f32.mrf.mxu1  ;;  %2364 = vmatpush.bf16.msra.mxu1 %v5001_v33 }
 0x69b   :  { %v5865_v32 = vadd.f32 %v2120_v40, %v5446_v39  ;;  %v2073_v48 = vadd.f32 %v2069_v45, %v2025_v57 }
 0x69d   :  { %v2134_v47 = vsel %vm517_vm6, %v5865_v32, 0.0 }
 0x69e   :  { %2135 = vadd.xlane.f32.xlu0 %v2134_v47 }
 0x6a0   :  { %v2117_v49 = vpop.f32.mrf.mxu3 }
 0x6a1   :  { %v2121_v50 = vadd.f32 %v2117_v49, %v2073_v48  ;;  %v5000_v48 = vld [vmem:[%s5910_s20] sm:$0xff] }
 0x6a2   :  { %2365 = vmatpush.bf16.msra.mxu1 %v5000_v48 }
 0x6a3   :  { %v5870_v29 = vadd.f32 %v2121_v50, %v5477_v23  ;;  %v4998_v23 = vld [vmem:[%s5877_s7] sm:$0xff] }
 0x6a4   :  { %2265 = vmatpush.bf16.msra.mxu0 %v4998_v23 }
 0x6a5   :  { %v2137_v51 = vsel %vm517_vm6, %v5870_v29, 0.0 }
 0x6a6   :  { %2138 = vadd.xlane.f32.xlu1 %v2137_v51 }
 0x6f1   :  { %v2154_v39 = vpop.xlane.xlu1 %2153 }
 0x6f2   :  { %v2164_v6 = vmul.f32 %v2154_v39, %v5461_v62 }
 0x6f4   :  { %v2168_v12 = vadd.f32 1e-05, %v2164_v6 }
 0x6f6   :  { %5181 = vrsqrt.f32 %v2168_v12  ;;  %vm2178_vm2 = vweird.f32 %v2168_v12 }
 0x6f9   :  { %v2157_v36 = vpop.xlane.xlu2 %2156 }
 0x6fa   :  { %v2165_v24 = vmul.f32 %v2157_v36, %v5461_v62 }
 0x6fc   :  { %v5182_v35 = vpop.eup %5181  ;;  %v2169_v13 = vadd.f32 1e-05, %v2165_v24 }
 0x6fd   :  { %v2173_v55 = vmul.f32 %v5182_v35, %v2168_v12  ;;  %vm2179_vm1 = vweird.f32 %v5182_v35 }
 0x6fe   :  { %5183 = vrsqrt.f32 %v2169_v13  ;;  %vm2180_vm3 = vmor %vm2178_vm2, %vm2179_vm1  ;;  %vm2188_vm5 = vweird.f32 %v2169_v13  ;;  %vm2351_vm2 = vcmask 523264  }
 0x6ff   :  { %v2174_v34 = vmul.f32 %v5182_v35, %v2173_v55 }
 0x701   :  { %v2175_v3 = vmul.f32 0.5, %v2174_v34 }
 0x703   :  { %v2176_v58 = vsub.f32 1.5, %v2175_v3 }
 0x704   :  { %v5184_v16 = vpop.eup %5183 }
 0x705   :  { %v2177_v60 = vmul.f32 %v5182_v35, %v2176_v58  ;;  %v2183_v61 = vmul.f32 %v5184_v16, %v2169_v13  ;;  %vm2189_vm4 = vweird.f32 %v5184_v16 }
 0x706   :  { %vm2190_vm7 = vmor %vm2188_vm5, %vm2189_vm4 }
 0x707   :  { %v2184_v44 = vmul.f32 %v5184_v16, %v2183_v61  ;;  %v2181_v14 = vsel %vm2180_vm3, %v5182_v35, %v2177_v60 }
 0x708   :  { %v2212_v5 = vmul.f32 %v2181_v14, %v5852_v41 }
 0x709   :  { %v2185_v0 = vmul.f32 0.5, %v2184_v44 }
 0x70a   :  { %v2219_v63 = vmul.f32 %v5884_v53, %v2212_v5 }
 0x70b   :  { %v2186_v42 = vsub.f32 1.5, %v2185_v0 }
 0x70c   :  { %v2226_v17 = vadd.f32 %v5888_v4, %v2219_v63 }
 0x70d   :  { %v2187_v2 = vmul.f32 %v5184_v16, %v2186_v42 }
 0x70f   :  { %v2191_v26 = vsel %vm2190_vm7, %v5184_v16, %v2187_v2 }
 0x710   :  { %v2213_v7 = vmul.f32 %v2191_v26, %v5859_v25 }
 0x711   :  { %v2136_v21 = vpop.xlane.xlu0 %2135 }
 0x712   :  { %v2142_v11 = vmul.f32 %v2136_v21, %v5461_v62  ;;  %v2220_v15 = vmul.f32 %v5884_v53, %v2213_v7 }
 0x714   :  { %v2146_v19 = vsub.f32 %v5865_v32, %v2142_v11  ;;  %v2227_v41 = vadd.f32 %v5888_v4, %v2220_v15 }
 0x716   :  { %v2150_v18 = vmul.f32 %v2146_v19, %v2146_v19  ;;  %v2230_v46 = vpack.c.bf16 %v2227_v41, %v2226_v17 }
 0x718   :  { %v2158_v20 = vsel %vm517_vm6, %v2150_v18, 0.0  ;;  %4643 = vmatmul.msk.bf16.vlgmr.msra.gmra.mxu0 %vm517_vm6, %v2230_v46 }
 0x719   :  { %v2139_v30 = vpop.xlane.xlu1 %2138  ;;  %2159 = vadd.xlane.f32.xlu2 %v2158_v20 }
 0x71a   :  { %v2143_v25 = vmul.f32 %v2139_v30, %v5461_v62 }
 0x71c   :  { %v2147_v52 = vsub.f32 %v5870_v29, %v2143_v25 }
 0x71e   :  { %v2151_v22 = vmul.f32 %v2147_v52, %v2147_v52 }
 0x720   :  { %v2161_v27 = vsel %vm517_vm6, %v2151_v22, 0.0 }
 0x721   :  { %2162 = vadd.xlane.f32.xlu0 %v2161_v27 }
 0x78c   :  { %v2160_v28 = vpop.xlane.xlu2 %2159 }
 0x78d   :  { %v2166_v54 = vmul.f32 %v2160_v28, %v5461_v62 }
 0x78f   :  { %v2170_v9 = vadd.f32 1e-05, %v2166_v54 }
 0x791   :  { %5185 = vrsqrt.f32 %v2170_v9  ;;  %vm2198_vm9 = vweird.f32 %v2170_v9 }
 0x794   :  { %v2163_v8 = vpop.xlane.xlu0 %2162 }
 0x795   :  { %v2167_v40 = vmul.f32 %v2163_v8, %v5461_v62  ;;  %v2267_v43 = vpop.f32.mrf.mxu0 }
 0x796   :  { %v2268_v47 = vadd.f32 %v5916_v38, %v2267_v43 }
 0x797   :  { %v5186_v45 = vpop.eup %5185  ;;  %v2171_v57 = vadd.f32 1e-05, %v2167_v40 }
 0x798   :  { %v2193_v49 = vmul.f32 %v5186_v45, %v2170_v9  ;;  %v2277_v50 = vmul.f32 %v2268_v47, %v2268_v47  ;;  %vm2199_vm8 = vweird.f32 %v5186_v45 }
 0x799   :  { %5187 = vrsqrt.f32 %v2171_v57  ;;  %vm2200_vm10 = vmor %vm2198_vm9, %vm2199_vm8  ;;  %vm2208_vm12 = vweird.f32 %v2171_v57 }
 0x79a   :  { %v2194_v51 = vmul.f32 %v5186_v45, %v2193_v49  ;;  %v2281_v39 = vmul.f32 %v2277_v50, %v2268_v47 }
 0x79c   :  { %v2195_v37 = vmul.f32 0.5, %v2194_v51  ;;  %v2285_v6 = vmul.f32 0.044715, %v2281_v39 }
 0x79d   :  { %v2269_v23 = vpop.f32.mrf.mxu0 }
 0x79e   :  { %v2196_v12 = vsub.f32 1.5, %v2195_v37  ;;  %v2289_v24 = vadd.f32 %v2285_v6, %v2268_v47  ;;  %v2270_v35 = vadd.f32 %v5916_v38, %v2269_v23 }
 0x79f   :  { %v5188_v36 = vpop.eup %5187 }
 0x7a0   :  { %v2197_v13 = vmul.f32 %v5186_v45, %v2196_v12  ;;  %v2203_v55 = vmul.f32 %v5188_v36, %v2171_v57  ;;  %v2293_v34 = vmul.f32 0.7978846, %v2289_v24  ;;  %v2278_v3 = vmul.f32 %v2270_v35, %v2270_v35 }
 0x7a1   :  { %vm2209_vm11 = vweird.f32 %v5188_v36 }
 0x7a2   :  { %v2204_v58 = vmul.f32 %v5188_v36, %v2203_v55  ;;  %v2282_v16 = vmul.f32 %v2278_v3, %v2270_v35  ;;  %v2201_v60 = vsel %vm2200_vm10, %v5186_v45, %v2197_v13  ;;  %5189 = vtanh.f32 %v2293_v34  ;;  %vm2210_vm1 = vmor %vm2208_vm12, %vm2209_vm11 }
 0x7a3   :  { %v2214_v0 = vmul.f32 %v2201_v60, %v2146_v19 }
 0x7a4   :  { %v2205_v61 = vmul.f32 0.5, %v2204_v58  ;;  %v2286_v44 = vmul.f32 0.044715, %v2282_v16 }
 0x7a5   :  { %v2221_v21 = vmul.f32 %v5884_v53, %v2214_v0 }
 0x7a6   :  { %v2206_v14 = vsub.f32 1.5, %v2205_v61  ;;  %v2290_v42 = vadd.f32 %v2286_v44, %v2270_v35 }
 0x7a7   :  { %v2228_v17 = vadd.f32 %v5888_v4, %v2221_v21 }
 0x7a8   :  { %v2207_v5 = vmul.f32 %v5188_v36, %v2206_v14  ;;  %v2294_v2 = vmul.f32 0.7978846, %v2290_v42  ;;  %v5190_v63 = vpop.eup %5189 }
 0x7a9   :  { %v2301_v15 = vadd.f32 1.0, %v5190_v63 }
 0x7aa   :  { %v2211_v26 = vsel %vm2210_vm1, %v5188_v36, %v2207_v5  ;;  %5191 = vtanh.f32 %v2294_v2 }
 0x7ab   :  { %v2215_v7 = vmul.f32 %v2211_v26, %v2147_v52  ;;  %v2305_v46 = vmul.f32 0.5, %v2301_v15 }
 0x7ad   :  { %v2222_v11 = vmul.f32 %v5884_v53, %v2215_v7  ;;  %v2309_v53 = vmul.f32 %v2305_v46, %v2268_v47 }
 0x7af   :  { %v2229_v41 = vadd.f32 %v5888_v4, %v2222_v11 }
 0x7b0   :  { %v5192_v18 = vpop.eup %5191 }
 0x7b1   :  { %v2231_v19 = vpack.c.bf16 %v2229_v41, %v2228_v17  ;;  %v2302_v20 = vadd.f32 1.0, %v5192_v18  ;;  %v5005_v41 = vld [vmem:[%s5505_s19 + $0xc8] sm:$0xff] }
 0x7b2   :  { %v5009_v18 = vld [vmem:[%s5505_s19 + $0x148] sm:$0xff]  ;;  %2518 = vmatpush.bf16.msra.mxu2 %v5005_v41 }
 0x7b3   :  { %4644 = vmatmul.msk.bf16.gmra.mxu0 %vm517_vm6, %v2231_v19  ;;  %v2306_v30 = vmul.f32 0.5, %v2302_v20  ;;  %v5004_v20 = vld [vmem:[%s5505_s19 + $0xc0] sm:$0xff] }
 0x7b4   :  { %2598 = vmatpush.bf16.msrb.mxu0 %v5009_v18 }
 0x7b5   :  { %v2310_v25 = vmul.f32 %v2306_v30, %v2270_v35  ;;  %v5006_v30 = vld [vmem:[%s5505_s19 + $0x100] sm:$0xff] }
 0x7b6   :  { %2519 = vmatpush.bf16.msra.mxu2 %v5004_v20 }
 0x7b7   :  { %v2313_v52 = vpack.c.bf16 %v2310_v25, %v2309_v53  ;;  %v5008_v53 = vld [vmem:[%s5505_s19 + $0x140] sm:$0xff] }
 0x7b8   :  { %2599 = vmatpush.bf16.msrb.mxu0 %v5008_v53 }
 0x7b9   :  { %4661 = vmatmul.msk.bf16.vlgmr.msra.gmra.mxu1 %vm2351_vm2, %v2313_v52 }
 0x830   :  { %v2272_v4 = vpop.f32.mrf.mxu0 }
 0x831   :  { %v2273_v22 = vadd.f32 %v5916_v38, %v2272_v4 }
 0x833   :  { %v2279_v27 = vmul.f32 %v2273_v22, %v2273_v22 }
 0x835   :  { %v2283_v28 = vmul.f32 %v2279_v27, %v2273_v22 }
 0x836   :  { %v2367_v9 = vpop.f32.mrf.mxu1 }
 0x837   :  { %v2287_v54 = vmul.f32 0.044715, %v2283_v28  ;;  %v2368_v33 = vadd.f32 %v5089_v31, %v2367_v9 }
 0x838   :  { %v2274_v1 = vpop.f32.mrf.mxu0 }
 0x839   :  { %v2291_v8 = vadd.f32 %v2287_v54, %v2273_v22  ;;  %v2275_v40 = vadd.f32 %v5916_v38, %v2274_v1  ;;  %v5938_v43 = vadd.f32 %v2368_v33, %v5827_v59 }
 0x83b   :  { %v2295_v45 = vmul.f32 0.7978846, %v2291_v8  ;;  %v2280_v57 = vmul.f32 %v2275_v40, %v2275_v40  ;;  %v2385_v47 = vsel %vm517_vm6, %v5938_v43, 0.0 }
 0x83c   :  { %2386 = vadd.xlane.f32.xlu1 %v2385_v47 }
 0x83d   :  { %v2284_v48 = vmul.f32 %v2280_v57, %v2275_v40  ;;  %5193 = vtanh.f32 %v2295_v45  ;;  %v5973_v57 = vld [vmem:[%s5454_s9 + $0x1] ss:$0 sm:$0xff]  ;;  %s5318_s9 = smov 27  }
 0x83e   :  { %v2369_v50 = vpop.f32.mrf.mxu1 }
 0x83f   :  { %v2288_v49 = vmul.f32 0.044715, %v2284_v48  ;;  %v2370_v51 = vadd.f32 %v5089_v31, %v2369_v50  ;;  %v5976_v50 = vld [vmem:[%s5459_s13 + $0x1] ss:$0 sm:$0xff] }
 0x841   :  { %v2292_v39 = vadd.f32 %v2288_v49, %v2275_v40  ;;  %v5943_v37 = vadd.f32 %v2370_v51, %v5834_v10 }
 0x843   :  { %v2296_v6 = vmul.f32 0.7978846, %v2292_v39  ;;  %v2388_v59 = vsel %vm517_vm6, %v5943_v37, 0.0  ;;  %v5194_v38 = vpop.eup %5193 }
 0x844   :  { %2389 = vadd.xlane.f32.xlu2 %v2388_v59  ;;  %v2303_v12 = vadd.f32 1.0, %v5194_v38 }
 0x845   :  { %5195 = vtanh.f32 %v2296_v6 }
 0x846   :  { %v2307_v36 = vmul.f32 0.5, %v2303_v12 }
 0x848   :  { %v2311_v13 = vmul.f32 %v2307_v36, %v2273_v22 }
 0x84b   :  { %v5196_v23 = vpop.eup %5195 }
 0x84c   :  { %v2304_v24 = vadd.f32 1.0, %v5196_v23 }
 0x84e   :  { %v2308_v35 = vmul.f32 0.5, %v2304_v24 }
 0x850   :  { %v2312_v55 = vmul.f32 %v2308_v35, %v2275_v40 }
 0x852   :  { %v2314_v34 = vpack.c.bf16 %v2312_v55, %v2311_v13 }
 0x854   :  { %4662 = vmatmul.msk.bf16.gmra.mxu1 %vm2351_vm2, %v2314_v34 }
 0x8af   :  { %v2387_v3 = vpop.xlane.xlu1 %2386 }
 0x8b0   :  { %v2397_v10 = vmul.f32 %v2387_v3, %v5461_v62 }
 0x8b2   :  { %v2401_v58 = vsub.f32 %v5938_v43, %v2397_v10 }
 0x8b4   :  { %v2405_v16 = vmul.f32 %v2401_v58, %v2401_v58 }
 0x8b6   :  { %v2409_v60 = vsel %vm517_vm6, %v2405_v16, 0.0 }
 0x8b7   :  { %2410 = vadd.xlane.f32.xlu0 %v2409_v60  ;;  %v2390_v61 = vpop.xlane.xlu2 %2389 }
 0x8b8   :  { %v2398_v44 = vmul.f32 %v2390_v61, %v5461_v62 }
 0x8ba   :  { %v2402_v14 = vsub.f32 %v5943_v37, %v2398_v44 }
 0x8bc   :  { %v2406_v0 = vmul.f32 %v2402_v14, %v2402_v14 }
 0x8be   :  { %v2412_v42 = vsel %vm517_vm6, %v2406_v0, 0.0 }
 0x8bf   :  { %2413 = vadd.xlane.f32.xlu1 %v2412_v42  ;;  %v5010_v42 = vld [vmem:[%s5505_s19 + $0xd0] sm:$0xff] }
 0x8d1   :  { %v2372_v5 = vpop.f32.mrf.mxu1 }
 0x8d2   :  { %v2373_v2 = vadd.f32 %v5089_v31, %v2372_v5 }
 0x8d4   :  { %v5955_v26 = vadd.f32 %v2373_v2, %v5865_v32  ;;  %v5007_v32 = vld [vmem:[%s5505_s19 + $0x108] sm:$0xff] }
 0x8d5   :  { %2558 = vmatpush.bf16.msra.mxu3 %v5007_v32 }
 0x8d6   :  { %v2391_v63 = vsel %vm517_vm6, %v5955_v26, 0.0 }
 0x8d7   :  { %2392 = vadd.xlane.f32.xlu2 %v2391_v63 }
 0x8d9   :  { %v2374_v7 = vpop.f32.mrf.mxu1  ;;  %2559 = vmatpush.bf16.msra.mxu3 %v5006_v30 }
 0x8da   :  { %v2375_v21 = vadd.f32 %v5089_v31, %v2374_v7 }
 0x8dc   :  { %v5960_v11 = vadd.f32 %v2375_v21, %v5870_v29 }
 0x8de   :  { %v2394_v15 = vsel %vm517_vm6, %v5960_v11, 0.0 }
 0x8df   :  { %2395 = vadd.xlane.f32.xlu0 %v2394_v15 }
 0x92a   :  { %v2411_v17 = vpop.xlane.xlu0 %2410 }
 0x92b   :  { %v2421_v19 = vmul.f32 %v2411_v17, %v5461_v62 }
 0x92d   :  { %v2425_v46 = vadd.f32 1e-05, %v2421_v19 }
 0x92f   :  { %5197 = vrsqrt.f32 %v2425_v46  ;;  %vm2435_vm4 = vweird.f32 %v2425_v46 }
 0x932   :  { %v2414_v29 = vpop.xlane.xlu1 %2413 }
 0x933   :  { %v2422_v25 = vmul.f32 %v2414_v29, %v5461_v62 }
 0x935   :  { %v5198_v52 = vpop.eup %5197  ;;  %v2426_v4 = vadd.f32 1e-05, %v2422_v25 }
 0x936   :  { %v2430_v22 = vmul.f32 %v5198_v52, %v2425_v46  ;;  %vm2436_vm3 = vweird.f32 %v5198_v52 }
 0x937   :  { %5199 = vrsqrt.f32 %v2426_v4  ;;  %vm2437_vm5 = vmor %vm2435_vm4, %vm2436_vm3  ;;  %vm2445_vm8 = vweird.f32 %v2426_v4 }
 0x938   :  { %v2431_v27 = vmul.f32 %v5198_v52, %v2430_v22 }
 0x93a   :  { %v2432_v31 = vmul.f32 0.5, %v2431_v27 }
 0x93c   :  { %v2433_v28 = vsub.f32 1.5, %v2432_v31 }
 0x93d   :  { %v5200_v54 = vpop.eup %5199 }
 0x93e   :  { %v2434_v9 = vmul.f32 %v5198_v52, %v2433_v28  ;;  %v2440_v1 = vmul.f32 %v5200_v54, %v2426_v4  ;;  %vm2446_vm7 = vweird.f32 %v5200_v54 }
 0x93f   :  { %vm2447_vm9 = vmor %vm2445_vm8, %vm2446_vm7 }
 0x940   :  { %v2441_v33 = vmul.f32 %v5200_v54, %v2440_v1  ;;  %v2438_v8 = vsel %vm2437_vm5, %v5198_v52, %v2434_v9 }
 0x941   :  { %v2469_v47 = vmul.f32 %v2438_v8, %v2401_v58 }
 0x942   :  { %v2442_v40 = vmul.f32 0.5, %v2441_v33  ;;  %v5013_v33 = vld [vmem:[%s5505_s19 + $0x118] sm:$0xff] }
 0x943   :  { %v2476_v51 = vmul.f32 %v5973_v57, %v2469_v47 }
 0x944   :  { %v2443_v45 = vsub.f32 1.5, %v2442_v40 }
 0x945   :  { %v2483_v23 = vadd.f32 %v5976_v50, %v2476_v51  ;;  %v5012_v51 = vld [vmem:[%s5505_s19 + $0x110] sm:$0xff] }
 0x946   :  { %v2444_v48 = vmul.f32 %v5200_v54, %v2443_v45 }
 0x948   :  { %v2448_v49 = vsel %vm2447_vm9, %v5200_v54, %v2444_v48 }
 0x949   :  { %v2470_v39 = vmul.f32 %v2448_v49, %v2402_v14  ;;  %v5011_v14 = vld [vmem:[%s5505_s19 + $0xd8] sm:$0xff] }
 0x94a   :  { %v2393_v6 = vpop.xlane.xlu2 %2392  ;;  %2698 = vmatpush.bf16.msrb.mxu3 %v5011_v14 }
 0x94b   :  { %v2399_v59 = vmul.f32 %v2393_v6, %v5461_v62  ;;  %v2477_v38 = vmul.f32 %v5973_v57, %v2470_v39 }
 0x94d   :  { %v2403_v12 = vsub.f32 %v5955_v26, %v2399_v59  ;;  %v2484_v36 = vadd.f32 %v5976_v50, %v2477_v38 }
 0x94e   :  { %2699 = vmatpush.bf16.msrb.mxu3 %v5010_v42 }
 0x94f   :  { %v2407_v24 = vmul.f32 %v2403_v12, %v2403_v12  ;;  %v5984_v35 = vpack.c.bf16 %v2484_v36, %v2483_v23  ;;  %v5025_v23 = vld [vmem:[%s5505_s19 + $0x138] sm:$0xff]  ;;  %v5024_v36 = vld [vmem:[%s5505_s19 + $0x130] sm:$0xff] }
 0x951   :  { %v2415_v13 = vsel %vm517_vm6, %v2407_v24, 0.0  ;;  %4677 = vmatmul.msk.bf16.vlgmr.msra.gmra.mxu2 %vm517_vm6, %v5984_v35  ;;  %4691 = vmatmul.msk.bf16.vlgmr.msra.gmra.mxu3 %vm517_vm6, %v5984_v35 }
 0x952   :  { %2416 = vadd.xlane.f32.xlu1 %v2415_v13  ;;  %v2396_v55 = vpop.xlane.xlu0 %2395  ;;  %4705 = vmatmul.msk.bf16.vlgmr.msrb.gmra.mxu0 %vm517_vm6, %v5984_v35 }
 0x953   :  { %v2400_v34 = vmul.f32 %v2396_v55, %v5461_v62 }
 0x955   :  { %v2404_v3 = vsub.f32 %v5960_v11, %v2400_v34 }
 0x957   :  { %v2408_v10 = vmul.f32 %v2404_v3, %v2404_v3 }
 0x959   :  { %v2418_v58 = vsel %vm517_vm6, %v2408_v10, 0.0 }
 0x95a   :  { %2419 = vadd.xlane.f32.xlu2 %v2418_v58 }
 0x9c5   :  { %v2417_v16 = vpop.xlane.xlu1 %2416 }
 0x9c6   :  { %v2423_v60 = vmul.f32 %v2417_v16, %v5461_v62 }
 0x9c8   :  { %v2427_v61 = vadd.f32 1e-05, %v2423_v60 }
 0x9ca   :  { %5201 = vrsqrt.f32 %v2427_v61  ;;  %vm2455_vm11 = vweird.f32 %v2427_v61 }
 0x9cd   :  { %v2420_v44 = vpop.xlane.xlu2 %2419 }
 0x9ce   :  { %v2424_v0 = vmul.f32 %v2420_v44, %v5461_v62 }
 0x9d0   :  { %v5202_v5 = vpop.eup %5201  ;;  %v2428_v2 = vadd.f32 1e-05, %v2424_v0 }
 0x9d1   :  { %v2450_v63 = vmul.f32 %v5202_v5, %v2427_v61  ;;  %vm2456_vm10 = vweird.f32 %v5202_v5 }
 0x9d2   :  { %5203 = vrsqrt.f32 %v2428_v2  ;;  %vm2457_vm12 = vmor %vm2455_vm11, %vm2456_vm10  ;;  %vm2465_vm3 = vweird.f32 %v2428_v2 }
 0x9d3   :  { %v2451_v7 = vmul.f32 %v5202_v5, %v2450_v63 }
 0x9d4   :  { %v2521_v15 = vpop.f32.mrf.mxu2  ;;  %v2561_v17 = vpop.f32.mrf.mxu3 }
 0x9d5   :  { %v2452_v21 = vmul.f32 0.5, %v2451_v7  ;;  %v2571_v53 = vpack.c.bf16 %v2561_v17, %v2561_v17  ;;  %v2531_v45 = vpack.c.bf16 %v2521_v15, %v2521_v15  ;;  %v5014_v17 = vld [vmem:[%s5505_s19 + $0x150] sm:$0xff] }
 0x9d7   :  { %v2453_v41 = vsub.f32 1.5, %v2452_v21  ;;  %v2622_v31 = vunpack.c.l.b16 %v2571_v53  ;;  %v2617_v59 = vunpack.c.l.b16 %v2531_v45 }
 0x9d8   :  { %v5204_v32 = vpop.eup %5203 }
 0x9d9   :  { %v2454_v18 = vmul.f32 %v5202_v5, %v2453_v41  ;;  %v2460_v19 = vmul.f32 %v5204_v32, %v2428_v2  ;;  %vm2466_vm1 = vweird.f32 %v5204_v32  ;;  %v5015_v2 = vld [vmem:[%s5505_s19 + $0x158] sm:$0xff] }
 0x9da   :  { %vm2467_vm4 = vmor %vm2465_vm3, %vm2466_vm1 }
 0x9db   :  { %v2461_v46 = vmul.f32 %v5204_v32, %v2460_v19  ;;  %v2458_v20 = vsel %vm2457_vm12, %v5202_v5, %v2454_v18 }
 0x9dc   :  { %v2563_v29 = vpop.f32.mrf.mxu3  ;;  %v2471_v4 = vmul.f32 %v2458_v20, %v2403_v12  ;;  %v2523_v22 = vpop.f32.mrf.mxu2 }
 0x9dd   :  { %v2462_v30 = vmul.f32 0.5, %v2461_v46  ;;  %v2572_v52 = vpack.c.bf16 %v2563_v29, %v2563_v29  ;;  %v2532_v9 = vpack.c.bf16 %v2523_v22, %v2523_v22 }
 0x9de   :  { %v2478_v8 = vmul.f32 %v5973_v57, %v2471_v4 }
 0x9df   :  { %v2463_v25 = vsub.f32 1.5, %v2462_v30  ;;  %v2623_v28 = vunpack.c.l.b16 %v2572_v52  ;;  %v2618_v49 = vunpack.c.l.b16 %v2532_v9 }
 0x9e0   :  { %v2485_v39 = vadd.f32 %v5976_v50, %v2478_v8 }
 0x9e1   :  { %v2464_v27 = vmul.f32 %v5204_v32, %v2463_v25  ;;  %v2624_v1 = vpack.c.b16 %v2623_v28, %v2622_v31  ;;  %v2619_v12 = vpack.c.b16 %v2618_v49, %v2617_v59  ;;  %v5017_v25 = vld [vmem:[%s5505_s19 + $0xe8] sm:$0xff]  ;;  %v2601_v31 = vpop.f32.mrf.mxu0  ;;  %v5020_v49 = vld [vmem:[%s5505_s19 + $0x160] sm:$0xff] }
 0x9e3   :  { %v2468_v54 = vsel %vm2467_vm4, %v5204_v32, %v2464_v27  ;;  %v2629_v47 = vsel %vm465_vm0, %v2624_v1, 0  ;;  %v5021_v1 = vld [vmem:[%s5505_s19 + $0x168] sm:$0xff] }
 0x9e4   :  { %v2472_v40 = vmul.f32 %v2468_v54, %v2404_v3  ;;  %2638 = vmatpush.bf16.xpose.msrb.mxu1 %v2629_v47  ;;  %v5016_v54 = vld [vmem:[%s5505_s19 + $0xe0] sm:$0xff] }
 0x9e6   :  { %v2479_v48 = vmul.f32 %v5973_v57, %v2472_v40  ;;  %v5019_v57 = vld [vmem:[%s5505_s19 + $0x128] sm:$0xff] }
 0x9e8   :  { %v2486_v6 = vadd.f32 %v5976_v50, %v2479_v48  ;;  %v5018_v50 = vld [vmem:[%s5505_s19 + $0x120] sm:$0xff]  ;;  %v5022_v48 = vld [vmem:[%s5505_s19 + $0xf0] sm:$0xff] }
 0x9ea   :  { %v6007_v38 = vpack.c.bf16 %v2486_v6, %v2485_v39  ;;  %v2603_v39 = vpop.f32.mrf.mxu0 }
 0x9eb   :  { %4707 = vmatmul.msk.bf16.vlgmr.msrb.gmra.mxu1 %vm465_vm0, %v2619_v12 }
 0x9ec   :  { %2738 = vmatpush.bf16.msra.mxu1 %v5013_v33  ;;  %4678 = vmatmul.msk.bf16.gmra.mxu2 %vm517_vm6, %v6007_v38  ;;  %v5023_v33 = vld [vmem:[%s5505_s19 + $0xf8] sm:$0xff] }
 0x9ed   :  { %4692 = vmatmul.msk.bf16.gmra.mxu3 %vm517_vm6, %v6007_v38  ;;  %4706 = vmatmul.msk.bf16.gmra.mxu0 %vm517_vm6, %v6007_v38 }
 0x9f0   :  { %2739 = vmatpush.bf16.msra.mxu1 %v5012_v51 }
 0x9f4   :  { %2918 = vmatpush.bf16.msrb.mxu1 %v5019_v57 }
 0x9f8   :  { %2919 = vmatpush.bf16.msrb.mxu1 %v5018_v50  ;;  %v2612_v50 = vpack.c.bf16 %v2603_v39, %v2603_v39 }
 0x9fb   :  { %4735 = vmatmul.msk.bf16.vlgmr.msra.gmra.mxu1 %vm517_vm6, %v5984_v35 }
 0x9fc   :  { %3098 = vmatpush.bf16.msra.mxu1 %v5025_v23 }
 0x9fd   :  { %4721 = vmatmul.msk.bf16.vlgmr.msrb.gmra.mxu3 %vm517_vm6, %v5984_v35 }
 0xa00   :  { %3099 = vmatpush.bf16.msra.mxu1 %v5024_v36 }
 0xa0b   :  { %4736 = vmatmul.msk.bf16.gmra.mxu1 %vm517_vm6, %v6007_v38 }
 0xa0d   :  { %4722 = vmatmul.msk.bf16.gmra.mxu3 %vm517_vm6, %v6007_v38 }
 0xa1b   :  { %4779 = vmatmul.msk.bf16.vlgmr.msrb.gmra.mxu1 %vm517_vm6, %v5984_v35 }
 0xa2b   :  { %4780 = vmatmul.msk.bf16.gmra.mxu1 %vm517_vm6, %v6007_v38 }
 0xa3b   :  { %4823 = vmatmul.msk.bf16.vlgmr.msra.gmra.mxu1 %vm517_vm6, %v5984_v35 }
 0xa4b   :  { %4824 = vmatmul.msk.bf16.gmra.mxu1 %vm517_vm6, %v6007_v38 }
 0xa68   :  { %v2640_v24 = vpop.f32.mrf.mxu1 }
 0xa69   :  { %v6038_v13 = vsel %vm664_vm13, %v2640_v24, -1e+30 }
 0xa6a   :  { %v3231_v55 = vsel %vm1521_vm14, %v6038_v13, -inf }
 0xa6b   :  { %3232 = vmax.xlane.f32.xlu2 %v3231_v55  ;;  %v2611_v55 = vpack.c.bf16 %v2601_v31, %v2601_v31 }
 0xa6f   :  { %v2526_v34 = vpop.f32.mrf.mxu2 }
 0xa70   :  { %v2566_v3 = vpop.f32.mrf.mxu3  ;;  %v6042_v10 = vpop.f32.mrf.mxu1  ;;  %v2533_v63 = vpack.c.bf16 %v2526_v34, %v2526_v34 }
 0xa71   :  { %v2573_v58 = vpack.c.bf16 %v2566_v3, %v2566_v3 }
 0xa72   :  { %v2647_v32 = vunpack.c.l.b16 %v2533_v63 }
 0xa73   :  { %v2652_v44 = vunpack.c.l.b16 %v2573_v58  ;;  %v3433_v58 = vunpack.c.l.b16 %v2612_v50 }
 0xa77   :  { %v2528_v61 = vpop.f32.mrf.mxu2 }
 0xa78   :  { %v2568_v16 = vpop.f32.mrf.mxu3  ;;  %v2741_v0 = vpop.f32.mrf.mxu1  ;;  %v2534_v42 = vpack.c.bf16 %v2528_v61, %v2528_v61 }
 0xa79   :  { %v2574_v60 = vpack.c.bf16 %v2568_v16, %v2568_v16  ;;  %v2751_v41 = vpack.c.bf16 %v2741_v0, %v2741_v0 }
 0xa7a   :  { %v2648_v15 = vunpack.c.l.b16 %v2534_v42 }
 0xa7b   :  { %v2653_v14 = vunpack.c.l.b16 %v2574_v60  ;;  %v2802_v20 = vunpack.c.l.b16 %v2751_v41  ;;  %v3432_v60 = vunpack.c.l.b16 %v2611_v55 }
 0xa7c   :  { %v2649_v46 = vpack.c.b16 %v2648_v15, %v2647_v32  ;;  %v5027_v15 = vld [vmem:[%s5505_s19 + $0x178] sm:$0xff]  ;;  %v5026_v32 = vld [vmem:[%s5505_s19 + $0x170] sm:$0xff] }
 0xa7d   :  { %v2654_v5 = vpack.c.b16 %v2653_v14, %v2652_v44  ;;  %v3434_v44 = vpack.c.b16 %v3433_v58, %v3432_v60 }
 0xa7f   :  { %v2659_v7 = vsel %vm465_vm0, %v2654_v5, 0 }
 0xa80   :  { %2668 = vmatpush.bf16.xpose.msrb.mxu2 %v2659_v7  ;;  %v2701_v21 = vpop.f32.mrf.mxu3  ;;  %v2743_v18 = vpop.f32.mrf.mxu1 }
 0xa81   :  { %v2752_v19 = vpack.c.bf16 %v2743_v18, %v2743_v18  ;;  %v2711_v4 = vpack.c.bf16 %v2701_v21, %v2701_v21 }
 0xa83   :  { %v2803_v30 = vunpack.c.l.b16 %v2752_v19  ;;  %v2797_v9 = vunpack.c.l.b16 %v2711_v4 }
 0xa85   :  { %v2804_v53 = vpack.c.b16 %v2803_v30, %v2802_v20 }
 0xa87   :  { %4708 = vmatmul.msk.bf16.vlgmr.msrb.gmra.mxu2 %vm465_vm0, %v2649_v46  ;;  %v2809_v22 = vsel %vm465_vm0, %v2804_v53, 0  ;;  %v6082_v53 = vpop.f32.mrf.mxu0 }
 0xa88   :  { %2778 = vmatpush.bf16.msra.mxu2 %v5015_v2  ;;  %v2703_v29 = vpop.f32.mrf.mxu3  ;;  %v2746_v27 = vpop.f32.mrf.mxu1  ;;  %2818 = vmatpush.bf16.xpose.msra.mxu0 %v2809_v22 }
 0xa89   :  { %v2712_v52 = vpack.c.bf16 %v2703_v29, %v2703_v29  ;;  %v2753_v45 = vpack.c.bf16 %v2746_v27, %v2746_v27 }
 0xa8b   :  { %v2798_v28 = vunpack.c.l.b16 %v2712_v52  ;;  %v2832_v6 = vunpack.c.l.b16 %v2753_v45 }
 0xa8c   :  { %2779 = vmatpush.bf16.msra.mxu2 %v5014_v17 }
 0xa8d   :  { %v2799_v8 = vpack.c.b16 %v2798_v28, %v2797_v9 }
 0xa8f   :  { %4751 = vmatmul.msk.bf16.vlgmr.msra.gmra.mxu0 %vm465_vm0, %v2799_v8  ;;  %v6084_v29 = vpop.f32.mrf.mxu0 }
 0xa90   :  { %2878 = vmatpush.bf16.msrb.mxu0 %v5017_v25  ;;  %v2706_v40 = vpop.f32.mrf.mxu3  ;;  %2958 = vmatpush.bf16.msrb.mxu2 %v5021_v1  ;;  %v2748_v47 = vpop.f32.mrf.mxu1 }
 0xa91   :  { %v2754_v51 = vpack.c.bf16 %v2748_v47, %v2748_v47  ;;  %v2713_v36 = vpack.c.bf16 %v2706_v40, %v2706_v40 }
 0xa93   :  { %v2833_v59 = vunpack.c.l.b16 %v2754_v51  ;;  %v2827_v16 = vunpack.c.l.b16 %v2713_v36 }
 0xa94   :  { %2879 = vmatpush.bf16.msrb.mxu0 %v5016_v54  ;;  %2959 = vmatpush.bf16.msrb.mxu2 %v5020_v49 }
 0xa95   :  { %v2834_v12 = vpack.c.b16 %v2833_v59, %v2832_v6 }
 0xa97   :  { %4749 = vmatmul.msk.bf16.vlgmr.msra.gmra.mxu2 %vm517_vm6, %v5984_v35  ;;  %v2839_v24 = vsel %vm465_vm0, %v2834_v12, 0 }
 0xa98   :  { %3058 = vmatpush.bf16.msra.mxu0 %v5023_v33  ;;  %v2708_v57 = vpop.f32.mrf.mxu3  ;;  %2848 = vmatpush.bf16.xpose.msra.mxu3 %v2839_v24  ;;  %v2921_v34 = vpop.f32.mrf.mxu1 }
 0xa99   :  { %v2714_v23 = vpack.c.bf16 %v2708_v57, %v2708_v57  ;;  %v2931_v14 = vpack.c.bf16 %v2921_v34, %v2921_v34  ;;  %3138 = vmatpush.bf16.msra.mxu2 %v5027_v15 }
 0xa9b   :  { %v2828_v3 = vunpack.c.l.b16 %v2714_v23  ;;  %v2982_v5 = vunpack.c.l.b16 %v2931_v14 }
 0xa9c   :  { %3059 = vmatpush.bf16.msra.mxu0 %v5022_v48 }
 0xa9d   :  { %v2829_v61 = vpack.c.b16 %v2828_v3, %v2827_v16  ;;  %3139 = vmatpush.bf16.msra.mxu2 %v5026_v32 }
 0xa9f   :  { %4752 = vmatmul.msk.bf16.vlgmr.msra.gmra.mxu3 %vm465_vm0, %v2829_v61  ;;  %4765 = vmatmul.msk.bf16.vlgmr.msrb.gmra.mxu0 %vm517_vm6, %v5984_v35 }
 0xaa0   :  { %3446 = vmatpush.bf16.msrb.mxu0 %v3434_v44  ;;  %v2923_v0 = vpop.f32.mrf.mxu1 }
 0xaa1   :  { %v2932_v42 = vpack.c.bf16 %v2923_v0, %v2923_v0 }
 0xaa3   :  { %v2983_v2 = vunpack.c.l.b16 %v2932_v42 }
 0xaa5   :  { %v2984_v63 = vpack.c.b16 %v2983_v2, %v2982_v5 }
 0xaa7   :  { %4750 = vmatmul.msk.bf16.gmra.mxu2 %vm517_vm6, %v6007_v38  ;;  %v2989_v7 = vsel %vm465_vm0, %v2984_v63, 0 }
 0xaa8   :  { %v2926_v21 = vpop.f32.mrf.mxu1  ;;  %2998 = vmatpush.bf16.xpose.msrb.mxu3 %v2989_v7 }
 0xaa9   :  { %v2933_v17 = vpack.c.bf16 %v2926_v21, %v2926_v21 }
 0xaab   :  { %v3012_v19 = vunpack.c.l.b16 %v2933_v17 }
 0xaaf   :  { %4766 = vmatmul.msk.bf16.gmra.mxu0 %vm517_vm6, %v6007_v38 }
 0xab0   :  { %v2928_v41 = vpop.f32.mrf.mxu1 }
 0xab1   :  { %v2934_v18 = vpack.c.bf16 %v2928_v41, %v2928_v41 }
 0xab3   :  { %v3013_v46 = vunpack.c.l.b16 %v2934_v18 }
 0xab5   :  { %v3014_v20 = vpack.c.b16 %v3013_v46, %v3012_v19 }
 0xab7   :  { %4793 = vmatmul.msk.bf16.vlgmr.msrb.gmra.mxu2 %vm517_vm6, %v5984_v35  ;;  %v3019_v30 = vsel %vm465_vm0, %v3014_v20, 0 }
 0xab8   :  { %3028 = vmatpush.bf16.xpose.msra.mxu3 %v3019_v30  ;;  %v3101_v22 = vpop.f32.mrf.mxu1 }
 0xab9   :  { %v3111_v48 = vpack.c.bf16 %v3101_v22, %v3101_v22 }
 0xabb   :  { %v3162_v50 = vunpack.c.l.b16 %v3111_v48 }
 0xabf   :  { %4809 = vmatmul.msk.bf16.vlgmr.msra.gmra.mxu0 %vm517_vm6, %v5984_v35 }
 0xac0   :  { %v3103_v33 = vpop.f32.mrf.mxu1 }
 0xac1   :  { %v3112_v45 = vpack.c.bf16 %v3103_v33, %v3103_v33 }
 0xac3   :  { %v3163_v6 = vunpack.c.l.b16 %v3112_v45 }
 0xac5   :  { %v3164_v36 = vpack.c.b16 %v3163_v6, %v3162_v50 }
 0xac7   :  { %4794 = vmatmul.msk.bf16.gmra.mxu2 %vm517_vm6, %v6007_v38  ;;  %v3169_v58 = vsel %vm465_vm0, %v3164_v36, 0 }
 0xac8   :  { %v3106_v49 = vpop.f32.mrf.mxu1 }
 0xac9   :  { %v3113_v42 = vpack.c.bf16 %v3106_v49, %v3106_v49 }
 0xacb   :  { %v3192_v17 = vunpack.c.l.b16 %v3113_v42 }
 0xacf   :  { %4810 = vmatmul.msk.bf16.gmra.mxu0 %vm517_vm6, %v6007_v38 }
 0xad0   :  { %v3108_v16 = vpop.f32.mrf.mxu1 }
 0xad1   :  { %v3114_v44 = vpack.c.bf16 %v3108_v16, %v3108_v16 }
 0xad3   :  { %v3193_v63 = vunpack.c.l.b16 %v3114_v44 }
 0xad5   :  { %v3194_v32 = vpack.c.b16 %v3193_v63, %v3192_v17 }
 0xad7   :  { %4837 = vmatmul.msk.bf16.vlgmr.msra.gmra.mxu2 %vm517_vm6, %v5984_v35  ;;  %v6099_v35 = vsel %vm664_vm13, %v6042_v10, -1e+30  ;;  %v3199_v30 = vsel %vm465_vm0, %v3194_v32, 0 }
 0xad8   :  { %v3234_v54 = vsel %vm1521_vm14, %v6099_v35, -inf }
 0xae7   :  { %4838 = vmatmul.msk.bf16.gmra.mxu2 %vm517_vm6, %v6007_v38 }
 0xb0a   :  { %v6086_v25 = vpop.f32.mrf.mxu2 }
 0xb0c   :  { %v2820_v52 = vpop.f32.mrf.mxu0 }
 0xb0d   :  { %v6090_v4 = vsel %vm664_vm13, %v2820_v52, -1e+30 }
 0xb0e   :  { %v3243_v27 = vsel %vm1521_vm14, %v6090_v4, -inf }
 0xb0f   :  { %3244 = vmax.xlane.f32.xlu0 %v3243_v27 }
 0xb12   :  { %v6094_v31 = vpop.f32.mrf.mxu2 }
 0xb14   :  { %v2822_v38 = vpop.f32.mrf.mxu0 }
 0xb15   :  { %v6103_v28 = vsel %vm664_vm13, %v2822_v38, -1e+30 }
 0xb16   :  { %v3246_v9 = vsel %vm1521_vm14, %v6103_v28, -inf }
 0xb17   :  { %3235 = vmax.xlane.f32.xlu0 %v3234_v54  ;;  %3247 = vmax.xlane.f32.xlu1 %v3246_v9 }
 0xb1a   :  { %v2781_v1 = vpop.f32.mrf.mxu2 }
 0xb1b   :  { %v2791_v40 = vpack.c.bf16 %v2781_v1, %v2781_v1 }
 0xb1c   :  { %v2881_v8 = vpop.f32.mrf.mxu0 }
 0xb1d   :  { %v3488_v51 = vunpack.c.l.b16 %v2791_v40  ;;  %v2891_v59 = vpack.c.bf16 %v2881_v8, %v2881_v8 }
 0xb1f   :  { %v2977_v24 = vunpack.c.l.b16 %v2891_v59 }
 0xb22   :  { %v2783_v10 = vpop.f32.mrf.mxu2 }
 0xb23   :  { %v2792_v47 = vpack.c.bf16 %v2783_v10, %v2783_v10 }
 0xb24   :  { %v2883_v57 = vpop.f32.mrf.mxu0 }
 0xb25   :  { %v3489_v39 = vunpack.c.l.b16 %v2792_v47  ;;  %v2892_v23 = vpack.c.bf16 %v2883_v57, %v2883_v57 }
 0xb27   :  { %v3490_v12 = vpack.c.b16 %v3489_v39, %v3488_v51  ;;  %v2978_v55 = vunpack.c.l.b16 %v2892_v23 }
 0xb29   :  { %3502 = vmatpush.bf16.msrb.mxu2 %v3490_v12  ;;  %v2979_v3 = vpack.c.b16 %v2978_v55, %v2977_v24 }
 0xb2a   :  { %v2786_v34 = vpop.f32.mrf.mxu2 }
 0xb2b   :  { %4795 = vmatmul.msk.bf16.vlgmr.msrb.gmra.mxu3 %vm465_vm0, %v2979_v3  ;;  %v2793_v61 = vpack.c.bf16 %v2786_v34, %v2786_v34 }
 0xb2c   :  { %3178 = vmatpush.bf16.xpose.msrb.mxu3 %v3169_v58  ;;  %v2886_v60 = vpop.f32.mrf.mxu0 }
 0xb2d   :  { %v6111_v5 = vunpack.c.l.b16 %v2793_v61  ;;  %v2893_v7 = vpack.c.bf16 %v2886_v60, %v2886_v60 }
 0xb2f   :  { %v3007_v18 = vunpack.c.l.b16 %v2893_v7 }
 0xb32   :  { %v2788_v14 = vpop.f32.mrf.mxu2 }
 0xb33   :  { %v2794_v0 = vpack.c.bf16 %v2788_v14, %v2788_v14 }
 0xb34   :  { %v2888_v15 = vpop.f32.mrf.mxu0 }
 0xb35   :  { %v6113_v2 = vunpack.c.l.b16 %v2794_v0  ;;  %v2894_v41 = vpack.c.bf16 %v2888_v15, %v2888_v15  ;;  %v2850_v0 = vpop.f32.mrf.mxu3 }
 0xb37   :  { %v3697_v21 = vpack.c.b16 %v6113_v2, %v6111_v5  ;;  %v3008_v19 = vunpack.c.l.b16 %v2894_v41 }
 0xb39   :  { %v3009_v20 = vpack.c.b16 %v3008_v19, %v3007_v18 }
 0xb3a   :  { %v2961_v46 = vpop.f32.mrf.mxu2 }
 0xb3b   :  { %4796 = vmatmul.msk.bf16.vlgmr.msra.gmra.mxu3 %vm465_vm0, %v3009_v20  ;;  %v2971_v22 = vpack.c.bf16 %v2961_v46, %v2961_v46 }
 0xb3c   :  { %3208 = vmatpush.bf16.xpose.msra.mxu3 %v3199_v30  ;;  %v3061_v52 = vpop.f32.mrf.mxu0 }
 0xb3d   :  { %v3541_v54 = vunpack.c.l.b16 %v2971_v22  ;;  %v3071_v1 = vpack.c.bf16 %v3061_v52, %v3061_v52  ;;  %v2852_v42 = vpop.f32.mrf.mxu3 }
 0xb3e   :  { %v6135_v17 = vsel %vm664_vm13, %v2852_v42, -1e+30 }
 0xb3f   :  { %v3157_v45 = vunpack.c.l.b16 %v3071_v1  ;;  %v3252_v32 = vsel %vm1521_vm14, %v6135_v17, -inf }
 0xb42   :  { %v2963_v27 = vpop.f32.mrf.mxu2 }
 0xb43   :  { %v2972_v38 = vpack.c.bf16 %v2963_v27, %v2963_v27 }
 0xb44   :  { %v3063_v8 = vpop.f32.mrf.mxu0 }
 0xb45   :  { %v3542_v9 = vunpack.c.l.b16 %v2972_v38  ;;  %v3072_v40 = vpack.c.bf16 %v3063_v8, %v3063_v8 }
 0xb47   :  { %v3543_v33 = vpack.c.b16 %v3542_v9, %v3541_v54  ;;  %v3158_v10 = vunpack.c.l.b16 %v3072_v40 }
 0xb49   :  { %3555 = vmatpush.bf16.msra.mxu0 %v3543_v33  ;;  %v3159_v48 = vpack.c.b16 %v3158_v10, %v3157_v45  ;;  %v3233_v33 = vpop.xlane.xlu2 %3232  ;;  %v6160_v45 = vsel %vm664_vm13, %v2850_v0, -1e+30  ;;  %v6166_v10 = vsel %vm664_vm13, %v6086_v25, -1e+30 }
 0xb4a   :  { %v2966_v47 = vpop.f32.mrf.mxu2 }
 0xb4b   :  { %4839 = vmatmul.msk.bf16.vlgmr.msrb.gmra.mxu3 %vm465_vm0, %v3159_v48  ;;  %v2973_v51 = vpack.c.bf16 %v2966_v47, %v2966_v47 }
 0xb4c   :  { %v3066_v49 = vpop.f32.mrf.mxu0 }
 0xb4d   :  { %v6120_v59 = vunpack.c.l.b16 %v2973_v51  ;;  %v3073_v57 = vpack.c.bf16 %v3066_v49, %v3066_v49  ;;  %v3249_v51 = vsel %vm1521_vm14, %v6160_v45, -inf }
 0xb4f   :  { %v3187_v24 = vunpack.c.l.b16 %v3073_v57 }
 0xb52   :  { %v2968_v39 = vpop.f32.mrf.mxu2 }
 0xb53   :  { %v2974_v6 = vpack.c.bf16 %v2968_v39, %v2968_v39 }
 0xb54   :  { %v3068_v23 = vpop.f32.mrf.mxu0 }
 0xb55   :  { %v6122_v12 = vunpack.c.l.b16 %v2974_v6  ;;  %v3074_v36 = vpack.c.bf16 %v3068_v23, %v3068_v23  ;;  %v6184_v23 = vsel %vm664_vm13, %v6094_v31, -1e+30 }
 0xb57   :  { %v3745_v50 = vpack.c.b16 %v6122_v12, %v6120_v59  ;;  %v3188_v55 = vunpack.c.l.b16 %v3074_v36 }
 0xb59   :  { %v3189_v3 = vpack.c.b16 %v3188_v55, %v3187_v24 }
 0xb5a   :  { %v3141_v34 = vpop.f32.mrf.mxu2 }
 0xb5b   :  { %4840 = vmatmul.msk.bf16.vlgmr.msra.gmra.mxu3 %vm465_vm0, %v3189_v3  ;;  %v3151_v58 = vpack.c.bf16 %v3141_v34, %v3141_v34 }
 0xb5d   :  { %v3594_v61 = vunpack.c.l.b16 %v3151_v58  ;;  %v3240_v58 = vsel %vm1521_vm14, %v6184_v23, -inf }
 0xb62   :  { %v3143_v16 = vpop.f32.mrf.mxu2 }
 0xb63   :  { %v3152_v60 = vpack.c.bf16 %v3143_v16, %v3143_v16 }
 0xb65   :  { %v3595_v44 = vunpack.c.l.b16 %v3152_v60 }
 0xb67   :  { %v3596_v14 = vpack.c.b16 %v3595_v44, %v3594_v61 }
 0xb69   :  { %3608 = vmatpush.bf16.msra.mxu2 %v3596_v14 }
 0xb6a   :  { %v3146_v5 = vpop.f32.mrf.mxu2 }
 0xb82   :  { %v3245_v8 = vpop.xlane.xlu0 %3244 }
 0xb83   :  { %v3283_v48 = vsub.f32 %v6090_v4, %v3245_v8 }
 0xb85   :  { %v3303_v6 = vmul.f32 1.442695, %v3283_v48 }
 0xb8a   :  { %v3248_v52 = vpop.xlane.xlu1 %3247  ;;  %v3236_v57 = vpop.xlane.xlu0 %3235 }
 0xb8b   :  { %v3284_v38 = vsub.f32 %v6103_v28, %v3248_v52  ;;  %v3279_v28 = vsub.f32 %v6038_v13, %v3233_v33  ;;  %v3237_v13 = vsel %vm1521_vm14, %v6166_v10, -inf  ;;  %v3280_v55 = vsub.f32 %v6099_v35, %v3236_v57 }
 0xb8d   :  { %v3305_v40 = vmul.f32 1.442695, %v3284_v38  ;;  %v3295_v25 = vmul.f32 1.442695, %v3279_v28  ;;  %v3297_v16 = vmul.f32 1.442695, %v3280_v55 }
 0xb8f   :  { %5205 = vpow2.f32 %v3305_v40 }
 0xb90   :  { %5207 = vpow2.f32 %v3295_v25 }
 0xb91   :  { %5209 = vpow2.f32 %v3303_v6 }
 0xb92   :  { %5211 = vpow2.f32 %v3297_v16 }
 0xb95   :  { %v6179_v4 = vpop.eup %5205 }
 0xb96   :  { %v3342_v34 = vsel %vm1521_vm14, %v6179_v4, 0.0  ;;  %v6197_v31 = vpop.eup %5207 }
 0xb97   :  { %v6199_v60 = vpop.eup %5209  ;;  %v3327_v44 = vsel %vm1521_vm14, %v6197_v31, 0.0 }
 0xb98   :  { %v3339_v61 = vsel %vm1521_vm14, %v6199_v60, 0.0  ;;  %v6215_v42 = vpop.eup %5211 }
 0xbae   :  { %v3000_v63 = vpop.f32.mrf.mxu3 }
 0xbaf   :  { %v6129_v7 = vsel %vm664_vm13, %v3000_v63, -1e+30 }
 0xbb0   :  { %v3255_v15 = vsel %vm1521_vm14, %v6129_v7, -inf }
 0xbb1   :  { %3256 = vmax.xlane.f32.xlu0 %v3255_v15  ;;  %v3330_v15 = vsel %vm1521_vm14, %v6215_v42, 0.0 }
 0xbb6   :  { %v3002_v41 = vpop.f32.mrf.mxu3 }
 0xbb7   :  { %v6147_v22 = vsel %vm664_vm13, %v3002_v41, -1e+30 }
 0xbb8   :  { %v3258_v9 = vsel %vm1521_vm14, %v6147_v22, -inf }
 0xbb9   :  { %3253 = vmax.xlane.f32.xlu0 %v3252_v32 }
 0xbbe   :  { %v3030_v18 = vpop.f32.mrf.mxu3 }
 0xbbf   :  { %v6203_v35 = vsel %vm664_vm13, %v3030_v18, -1e+30 }
 0xbc0   :  { %v3261_v14 = vsel %vm1521_vm14, %v6203_v35, -inf }
 0xbc6   :  { %v3032_v19 = vpop.f32.mrf.mxu3 }
 0xbc7   :  { %v6213_v0 = vsel %vm664_vm13, %v3032_v19, -1e+30 }
 0xbc8   :  { %v3264_v63 = vsel %vm1521_vm14, %v6213_v0, -inf }
 0xbce   :  { %v3180_v46 = vpop.f32.mrf.mxu3 }
 0xbcf   :  { %v6141_v20 = vsel %vm664_vm13, %v3180_v46, -1e+30 }
 0xbd0   :  { %v3267_v30 = vsel %vm1521_vm14, %v6141_v20, -inf }
 0xbd1   :  { %3268 = vmax.xlane.f32.xlu1 %v3267_v30 }
 0xbd6   :  { %v3182_v27 = vpop.f32.mrf.mxu3 }
 0xbd7   :  { %v6152_v54 = vsel %vm664_vm13, %v3182_v27, -1e+30 }
 0xbd8   :  { %v3270_v1 = vsel %vm1521_vm14, %v6152_v54, -inf }
 0xbd9   :  { %3259 = vmax.xlane.f32.xlu1 %v3258_v9  ;;  %3271 = vmax.xlane.f32.xlu2 %v3270_v1 }
 0xbde   :  { %v3210_v47 = vpop.f32.mrf.mxu3 }
 0xbdf   :  { %v6171_v49 = vsel %vm664_vm13, %v3210_v47, -1e+30 }
 0xbe0   :  { %v3273_v39 = vsel %vm1521_vm14, %v6171_v49, -inf }
 0xbe1   :  { %3250 = vmax.xlane.f32.xlu2 %v3249_v51  ;;  %3274 = vmax.xlane.f32.xlu0 %v3273_v39 }
 0xbe2   :  { %3238 = vmax.xlane.f32.xlu1 %v3237_v13 }
 0xbe6   :  { %v3212_v36 = vpop.f32.mrf.mxu3 }
 0xbe7   :  { %v6188_v24 = vsel %vm664_vm13, %v3212_v36, -1e+30 }
 0xbe8   :  { %v3276_v3 = vsel %vm1521_vm14, %v6188_v24, -inf }
 0xbe9   :  { %3343 = vadd.xlane.f32.xlu0 %v3342_v34  ;;  %3241 = vmax.xlane.f32.xlu2 %v3240_v58 }
 0xbea   :  { %3277 = vmax.xlane.f32.xlu1 %v3276_v3 }
 0xbf1   :  { %3340 = vadd.xlane.f32.xlu2 %v3339_v61  ;;  %3328 = vadd.xlane.f32.xlu0 %v3327_v44 }
 0xbf2   :  { %3262 = vmax.xlane.f32.xlu1 %v3261_v14 }
 0xbf9   :  { %3265 = vmax.xlane.f32.xlu2 %v3264_v63 }
 0xbfa   :  { %3331 = vadd.xlane.f32.xlu1 %v3330_v15 }
 0xc24   :  { %v3257_v41 = vpop.xlane.xlu0 %3256 }
 0xc25   :  { %v3287_v32 = vsub.f32 %v6129_v7, %v3257_v41 }
 0xc27   :  { %v3311_v18 = vmul.f32 1.442695, %v3287_v32 }
 0xc29   :  { %5213 = vpow2.f32 %v3311_v18 }
 0xc2c   :  { %v3254_v46 = vpop.xlane.xlu0 %3253 }
 0xc2d   :  { %v3286_v56 = vsub.f32 %v6135_v17, %v3254_v46 }
 0xc2f   :  { %v6223_v19 = vpop.eup %5213  ;;  %v3309_v30 = vmul.f32 1.442695, %v3286_v56 }
 0xc30   :  { %v3351_v52 = vsel %vm1521_vm14, %v6223_v19, 0.0 }
 0xc31   :  { %5215 = vpow2.f32 %v3309_v30  ;;  %3352 = vadd.xlane.f32.xlu1 %v3351_v52 }
 0xc37   :  { %v6227_v27 = vpop.eup %5215 }
 0xc38   :  { %v3348_v38 = vsel %vm1521_vm14, %v6227_v27, 0.0 }
 0xc39   :  { %3349 = vadd.xlane.f32.xlu1 %v3348_v38 }
 0xc44   :  { %v3269_v7 = vpop.xlane.xlu1 %3268 }
 0xc45   :  { %v3291_v9 = vsub.f32 %v6141_v20, %v3269_v7 }
 0xc47   :  { %v3319_v1 = vmul.f32 1.442695, %v3291_v9 }
 0xc49   :  { %5217 = vpow2.f32 %v3319_v1 }
 0xc4c   :  { %v3260_v17 = vpop.xlane.xlu1 %3259  ;;  %v3272_v33 = vpop.xlane.xlu2 %3271 }
 0xc4d   :  { %v3288_v8 = vsub.f32 %v6147_v22, %v3260_v17  ;;  %v3292_v40 = vsub.f32 %v6152_v54, %v3272_v33 }
 0xc4f   :  { %v6234_v28 = vpop.eup %5217  ;;  %v3313_v47 = vmul.f32 1.442695, %v3288_v8  ;;  %v3321_v48 = vmul.f32 1.442695, %v3292_v40 }
 0xc50   :  { %v3363_v51 = vsel %vm1521_vm14, %v6234_v28, 0.0 }
 0xc51   :  { %5219 = vpow2.f32 %v3313_v47  ;;  %3364 = vadd.xlane.f32.xlu2 %v3363_v51 }
 0xc52   :  { %5221 = vpow2.f32 %v3321_v48 }
 0xc54   :  { %v3275_v39 = vpop.xlane.xlu0 %3274  ;;  %v3251_v20 = vpop.xlane.xlu2 %3250 }
 0xc55   :  { %v3293_v13 = vsub.f32 %v6171_v49, %v3275_v39  ;;  %v3239_v25 = vpop.xlane.xlu1 %3238  ;;  %v3285_v6 = vsub.f32 %v6160_v45, %v3251_v20 }
 0xc56   :  { %v3281_v22 = vsub.f32 %v6166_v10, %v3239_v25 }
 0xc57   :  { %v6241_v54 = vpop.eup %5219  ;;  %v3323_v57 = vmul.f32 1.442695, %v3293_v13  ;;  %v3307_v36 = vmul.f32 1.442695, %v3285_v6 }
 0xc58   :  { %v6243_v55 = vpop.eup %5221  ;;  %v3299_v34 = vmul.f32 1.442695, %v3281_v22  ;;  %v3354_v3 = vsel %vm1521_vm14, %v6241_v54, 0.0 }
 0xc59   :  { %5223 = vpow2.f32 %v3323_v57  ;;  %3355 = vadd.xlane.f32.xlu2 %v3354_v3  ;;  %v3366_v49 = vsel %vm1521_vm14, %v6243_v55, 0.0 }
 0xc5a   :  { %5225 = vpow2.f32 %v3299_v34  ;;  %3367 = vadd.xlane.f32.xlu0 %v3366_v49  ;;  %v2613_v49 = vpack.c.bf16 %v6082_v53, %v6082_v53 }
 0xc5b   :  { %5227 = vpow2.f32 %v3307_v36 }
 0xc5c   :  { %v3344_v45 = vpop.xlane.xlu0 %3343  ;;  %v3242_v10 = vpop.xlane.xlu2 %3241 }
 0xc5d   :  { %v3278_v58 = vpop.xlane.xlu1 %3277  ;;  %v3282_v16 = vsub.f32 %v6184_v23, %v3242_v10  ;;  %5229 = vrcp.f32 %v3344_v45 }
 0xc5e   :  { %v3294_v61 = vsub.f32 %v6188_v24, %v3278_v58 }
 0xc5f   :  { %v6251_v44 = vpop.eup %5223  ;;  %v3301_v14 = vmul.f32 1.442695, %v3282_v16 }
 0xc60   :  { %v6253_v63 = vpop.eup %5225  ;;  %v3325_v15 = vmul.f32 1.442695, %v3294_v61  ;;  %v3369_v41 = vsel %vm1521_vm14, %v6251_v44, 0.0 }
 0xc61   :  { %v6257_v32 = vpop.eup %5227  ;;  %5231 = vpow2.f32 %v3301_v14  ;;  %3370 = vadd.xlane.f32.xlu1 %v3369_v41  ;;  %v3333_v18 = vsel %vm1521_vm14, %v6253_v63, 0.0 }
 0xc62   :  { %5233 = vpow2.f32 %v3325_v15  ;;  %3334 = vadd.xlane.f32.xlu2 %v3333_v18  ;;  %v3345_v23 = vsel %vm1521_vm14, %v6257_v32, 0.0 }
 0xc63   :  { %3346 = vadd.xlane.f32.xlu0 %v3345_v23  ;;  %v5230_v46 = vpop.eup %5229 }
 0xc64   :  { %v3341_v24 = vpop.xlane.xlu2 %3340  ;;  %v3329_v30 = vpop.xlane.xlu0 %3328  ;;  %v3396_v9 = vmul.f32 %v5230_v46, %v6179_v4 }
 0xc65   :  { %v3263_v56 = vpop.xlane.xlu1 %3262  ;;  %5235 = vrcp.f32 %v3341_v24  ;;  %v3148_v24 = vpop.f32.mrf.mxu2 }
 0xc66   :  { %v3289_v52 = vsub.f32 %v6203_v35, %v3263_v56  ;;  %5237 = vrcp.f32 %v3329_v30  ;;  %v3412_v35 = vpack.c.bf16 %v3396_v9, %v3396_v9 }
 0xc67   :  { %v6264_v38 = vpop.eup %5231 }
 0xc68   :  { %v6266_v7 = vpop.eup %5233  ;;  %v3315_v1 = vmul.f32 1.442695, %v3289_v52  ;;  %v3336_v17 = vsel %vm1521_vm14, %v6264_v38, 0.0  ;;  %v3484_v25 = vunpack.c.l.b16 %v3412_v35  ;;  %v3154_v52 = vpack.c.bf16 %v3148_v24, %v3148_v24 }
 0xc69   :  { %v3372_v33 = vsel %vm1521_vm14, %v6266_v7, 0.0  ;;  %v3153_v35 = vpack.c.bf16 %v3146_v5, %v3146_v5 }
 0xc6a   :  { %5239 = vpow2.f32 %v3315_v1  ;;  %3373 = vadd.xlane.f32.xlu2 %v3372_v33 }
 0xc6b   :  { %3337 = vadd.xlane.f32.xlu0 %v3336_v17  ;;  %v5236_v8 = vpop.eup %5235 }
 0xc6c   :  { %v3266_v40 = vpop.xlane.xlu2 %3265  ;;  %v3395_v47 = vmul.f32 %v5236_v8, %v6199_v60  ;;  %v5238_v4 = vpop.eup %5237 }
 0xc6d   :  { %v3332_v48 = vpop.xlane.xlu1 %3331  ;;  %v3290_v51 = vsub.f32 %v6213_v0, %v3266_v40  ;;  %v3391_v6 = vmul.f32 %v5238_v4, %v6197_v31  ;;  %v2614_v0 = vpack.c.bf16 %v6084_v29, %v6084_v29 }
 0xc6e   :  { %5241 = vrcp.f32 %v3332_v48  ;;  %v3411_v39 = vpack.c.bf16 %v3395_v47, %v3395_v47 }
 0xc6f   :  { %v3317_v20 = vmul.f32 1.442695, %v3290_v51  ;;  %v3407_v34 = vpack.c.bf16 %v3391_v6, %v3391_v6  ;;  %v3648_v10 = vunpack.c.l.b16 %v2614_v0 }
 0xc70   :  { %v6275_v13 = vpop.eup %5239  ;;  %v3483_v22 = vunpack.c.l.b16 %v3411_v39 }
 0xc71   :  { %5243 = vpow2.f32 %v3317_v20  ;;  %v3357_v57 = vsel %vm1521_vm14, %v6275_v13, 0.0  ;;  %v3427_v29 = vunpack.c.l.b16 %v3407_v34  ;;  %v4846_v34 = vld [vmem:[%s5799_s25 + $0x14] sm:$0xf] }
 0xc72   :  { %v3485_v36 = vpack.c.b16 %v3484_v25, %v3483_v22  ;;  %v3791_v25 = vunpack.c.l.b16 %v3153_v35 }
 0xc73   :  { %3358 = vadd.xlane.f32.xlu0 %v3357_v57 }
 0xc74   :  { %v5242_v60 = vpop.eup %5241  ;;  %4845 = vmatmul.msk.bf16.vlgmr.msrb.gmra.mxu2 %vm1521_vm14, %v3485_v36 }
 0xc75   :  { %v3392_v3 = vmul.f32 %v5242_v60, %v6215_v42  ;;  %3709 = vmatpush.bf16.msrb.mxu2 %v3697_v21  ;;  %v3647_v42 = vunpack.c.l.b16 %v2613_v49 }
 0xc77   :  { %v6289_v31 = vpop.eup %5243  ;;  %v3408_v45 = vpack.c.bf16 %v3392_v3, %v3392_v3  ;;  %v3649_v14 = vpack.c.b16 %v3648_v10, %v3647_v42  ;;  %v6306_v3 = vsel %vm1748_vm15, %v4846_v34, 0 }
 0xc78   :  { %v3360_v58 = vsel %vm1521_vm14, %v6289_v31, 0.0  ;;  %3525 = vmatpush.bf16.msrb.mxu3 %v6306_v3 }
 0xc79   :  { %v3428_v16 = vunpack.c.l.b16 %v3408_v45  ;;  %3361 = vadd.xlane.f32.xlu1 %v3360_v58  ;;  %v4843_v45 = vld [vmem:[%s5799_s25 + $0x10] sm:$0xf] }
 0xc7a   :  { %v3460_v59 = vsel %vm1748_vm15, %v4843_v45, 0 }
 0xc7b   :  { %v3429_v61 = vpack.c.b16 %v3428_v16, %v3427_v29  ;;  %3469 = vmatpush.bf16.msrb.mxu1 %v3460_v59 }
 0xc7d   :  { %4842 = vmatmul.msk.bf16.vlgmr.msrb.gmra.mxu0 %vm1521_vm14, %v3429_v61 }
 0xc7e   :  { %3661 = vmatpush.bf16.msrb.mxu0 %v3649_v14 }
 0xca4   :  { %v3353_v53 = vpop.xlane.xlu1 %3352 }
 0xca5   :  { %5245 = vrcp.f32 %v3353_v53 }
 0xcab   :  { %v5246_v21 = vpop.eup %5245 }
 0xcac   :  { %v3399_v23 = vmul.f32 %v5246_v21, %v6223_v19  ;;  %v3350_v17 = vpop.xlane.xlu1 %3349  ;;  %v3792_v19 = vunpack.c.l.b16 %v3154_v52 }
 0xcae   :  { %v3415_v9 = vpack.c.bf16 %v3399_v23, %v3399_v23  ;;  %v3793_v22 = vpack.c.b16 %v3792_v19, %v3791_v25 }
 0xcb0   :  { %v3536_v4 = vunpack.c.l.b16 %v3415_v9 }
 0xcc4   :  { %v3365_v15 = vpop.xlane.xlu2 %3364 }
 0xcc5   :  { %5247 = vrcp.f32 %v3365_v15 }
 0xccb   :  { %v5248_v18 = vpop.eup %5247 }
 0xccc   :  { %v3356_v2 = vpop.xlane.xlu2 %3355  ;;  %v3403_v46 = vmul.f32 %v5248_v18, %v6234_v28 }
 0xccd   :  { %v3368_v41 = vpop.xlane.xlu0 %3367  ;;  %5249 = vrcp.f32 %v3356_v2 }
 0xcce   :  { %5251 = vrcp.f32 %v3368_v41  ;;  %v3419_v33 = vpack.c.bf16 %v3403_v46, %v3403_v46 }
 0xcd0   :  { %v3589_v39 = vunpack.c.l.b16 %v3419_v33 }
 0xcd3   :  { %v5250_v56 = vpop.eup %5249 }
 0xcd4   :  { %v5252_v30 = vpop.eup %5251  ;;  %v3400_v1 = vmul.f32 %v5250_v56, %v6241_v54  ;;  %v3371_v58 = vpop.xlane.xlu1 %3370 }
 0xcd5   :  { %v3404_v8 = vmul.f32 %v5252_v30, %v6243_v55  ;;  %v3335_v48 = vpop.xlane.xlu2 %3334 }
 0xcd6   :  { %v3416_v40 = vpack.c.bf16 %v3400_v1, %v3400_v1  ;;  %v3347_v47 = vpop.xlane.xlu0 %3346 }
 0xcd7   :  { %v3420_v51 = vpack.c.bf16 %v3404_v8, %v3404_v8  ;;  %5253 = vrcp.f32 %v3347_v47 }
 0xcd8   :  { %5255 = vrcp.f32 %v3350_v17  ;;  %v3537_v28 = vunpack.c.l.b16 %v3416_v40 }
 0xcd9   :  { %v3590_v20 = vunpack.c.l.b16 %v3420_v51  ;;  %5257 = vrcp.f32 %v3335_v48 }
 0xcda   :  { %v3538_v54 = vpack.c.b16 %v3537_v28, %v3536_v4  ;;  %v4849_v4 = vld [vmem:[%s5799_s25 + $0x18] sm:$0xf] }
 0xcdb   :  { %v3591_v6 = vpack.c.b16 %v3590_v20, %v3589_v39  ;;  %v3569_v28 = vsel %vm1748_vm15, %v4849_v4, 0  ;;  %v4852_v39 = vld [vmem:[%s5799_s25 + $0x1c] sm:$0xf] }
 0xcdc   :  { %4848 = vmatmul.msk.bf16.vlgmr.msra.gmra.mxu0 %vm1521_vm14, %v3538_v54  ;;  %3578 = vmatpush.bf16.msra.mxu1 %v3569_v28  ;;  %v3622_v20 = vsel %vm1748_vm15, %v4852_v39, 0 }
 0xcdd   :  { %v5254_v55 = vpop.eup %5253  ;;  %4851 = vmatmul.msk.bf16.vlgmr.msra.gmra.mxu2 %vm1521_vm14, %v3591_v6  ;;  %3757 = vmatpush.bf16.msra.mxu0 %v3745_v50  ;;  %v3374_v50 = vpop.xlane.xlu2 %3373 }
 0xcde   :  { %v5256_v57 = vpop.eup %5255  ;;  %v3338_v36 = vpop.xlane.xlu0 %3337  ;;  %3805 = vmatpush.bf16.msra.mxu2 %v3793_v22  ;;  %v3397_v0 = vmul.f32 %v5254_v55, %v6257_v32  ;;  %3631 = vmatpush.bf16.msra.mxu3 %v3622_v20 }
 0xcdf   :  { %v5258_v60 = vpop.eup %5257  ;;  %5259 = vrcp.f32 %v3338_v36  ;;  %v3398_v49 = vmul.f32 %v5256_v57, %v6227_v27 }
 0xce0   :  { %v3393_v10 = vmul.f32 %v5258_v60, %v6253_v63  ;;  %v3413_v12 = vpack.c.bf16 %v3397_v0, %v3397_v0  ;;  %5261 = vrcp.f32 %v3374_v50 }
 0xce1   :  { %v3414_v32 = vpack.c.bf16 %v3398_v49, %v3398_v49 }
 0xce2   :  { %v3409_v16 = vpack.c.bf16 %v3393_v10, %v3393_v10  ;;  %v3690_v14 = vunpack.c.l.b16 %v3413_v12 }
 0xce3   :  { %v3691_v53 = vunpack.c.l.b16 %v3414_v32 }
 0xce4   :  { %v3642_v15 = vunpack.c.l.b16 %v3409_v16 }
 0xce5   :  { %v5260_v29 = vpop.eup %5259  ;;  %v3692_v5 = vpack.c.b16 %v3691_v53, %v3690_v14 }
 0xce6   :  { %v3394_v42 = vmul.f32 %v5260_v29, %v6264_v38  ;;  %v3359_v61 = vpop.xlane.xlu0 %3358  ;;  %v5262_v2 = vpop.eup %5261 }
 0xce7   :  { %5263 = vrcp.f32 %v3359_v61  ;;  %v3406_v38 = vmul.f32 %v5262_v2, %v6266_v7  ;;  %v5092_v61 = vld [vmem:[%s5794_s18 + $0x1] ss:$0 sm:$0xff]  ;;  %s6393_s18 = sld [smem:[%s6451_s0 + %s5318_s9]]  }
 0xce8   :  { %5265 = vrcp.f32 %v3371_v58  ;;  %v3410_v27 = vpack.c.bf16 %v3394_v42, %v3394_v42 }
 0xce9   :  { %v3422_v30 = vpack.c.bf16 %v3406_v38, %v3406_v38 }
 0xcea   :  { %v3643_v63 = vunpack.c.l.b16 %v3410_v27 }
 0xceb   :  { %v3787_v33 = vunpack.c.l.b16 %v3422_v30 }
 0xcec   :  { %v3644_v21 = vpack.c.b16 %v3643_v63, %v3642_v15  ;;  %v3362_v41 = vpop.xlane.xlu1 %3361 }
 0xced   :  { %v5264_v18 = vpop.eup %5263  ;;  %5267 = vrcp.f32 %v3362_v41  ;;  %4856 = vmatmul.msk.bf16.vlgmr.msrb.gmra.mxu2 %vm1521_vm14, %v3692_v5 }
 0xcee   :  { %v5266_v23 = vpop.eup %5265  ;;  %4854 = vmatmul.msk.bf16.vlgmr.msrb.gmra.mxu0 %vm1521_vm14, %v3644_v21  ;;  %v3401_v24 = vmul.f32 %v5264_v18, %v6275_v13 }
 0xcef   :  { %v3405_v46 = vmul.f32 %v5266_v23, %v6251_v44 }
 0xcf0   :  { %v3417_v52 = vpack.c.bf16 %v3401_v24, %v3401_v24 }
 0xcf1   :  { %v3421_v1 = vpack.c.bf16 %v3405_v46, %v3405_v46 }
 0xcf2   :  { %v3738_v8 = vunpack.c.l.b16 %v3417_v52 }
 0xcf3   :  { %v5268_v56 = vpop.eup %5267  ;;  %v3786_v47 = vunpack.c.l.b16 %v3421_v1 }
 0xcf4   :  { %v3402_v9 = vmul.f32 %v5268_v56, %v6289_v31 }
 0xcf5   :  { %v3788_v51 = vpack.c.b16 %v3787_v33, %v3786_v47 }
 0xcf6   :  { %v3418_v17 = vpack.c.bf16 %v3402_v9, %v3402_v9 }
 0xcf7   :  { %v3504_v40 = vpop.f32.mrf.mxu2 }
 0xcf8   :  { %v3739_v35 = vunpack.c.l.b16 %v3418_v17 }
 0xcfa   :  { %v3740_v48 = vpack.c.b16 %v3739_v35, %v3738_v8  ;;  %v3448_v7 = vpop.f32.mrf.mxu0 }
 0xcfd   :  { %4860 = vmatmul.msk.bf16.vlgmr.msra.gmra.mxu2 %vm1521_vm14, %v3788_v51 }
 0xcfe   :  { %4858 = vmatmul.msk.bf16.vlgmr.msra.gmra.mxu0 %vm1521_vm14, %v3740_v48 }
 0xcff   :  { %v3506_v44 = vpop.f32.mrf.mxu2 }
 0xd00   :  { %v3509_v13 = vpack.c.bf16 %v3506_v44, %v3504_v40 }
 0xd02   :  { %v3450_v19 = vpop.f32.mrf.mxu0  ;;  %4847 = vmatmul.msk.bf16.vlgmr.msrb.gmra.mxu3 %vm465_vm0, %v3509_v13 }
 0xd03   :  { %v3453_v31 = vpack.c.bf16 %v3450_v19, %v3448_v7  ;;  %3727 = vmatpush.bf16.msrb.mxu3 %v6306_v3 }
 0xd05   :  { %4844 = vmatmul.msk.bf16.vlgmr.msrb.gmra.mxu1 %vm465_vm0, %v3453_v31 }
 0xd06   :  { %3679 = vmatpush.bf16.msrb.mxu1 %v3460_v59 }
 0xd59   :  { %v3557_v25 = vpop.f32.mrf.mxu0 }
 0xd60   :  { %v3610_v54 = vpop.f32.mrf.mxu2 }
 0xd61   :  { %v3559_v6 = vpop.f32.mrf.mxu0 }
 0xd62   :  { %v3562_v22 = vpack.c.bf16 %v3559_v6, %v3557_v25 }
 0xd64   :  { %4850 = vmatmul.msk.bf16.vlgmr.msra.gmra.mxu1 %vm465_vm0, %v3562_v22 }
 0xd65   :  { %3775 = vmatpush.bf16.msra.mxu1 %v3569_v28 }
 0xd68   :  { %v3612_v55 = vpop.f32.mrf.mxu2 }
 0xd69   :  { %v3615_v57 = vpack.c.bf16 %v3612_v55, %v3610_v54 }
 0xd6b   :  { %v3663_v36 = vpop.f32.mrf.mxu0  ;;  %4853 = vmatmul.msk.bf16.vlgmr.msra.gmra.mxu3 %vm465_vm0, %v3615_v57 }
 0xd6c   :  { %3823 = vmatpush.bf16.msra.mxu3 %v3622_v20 }
 0xd70   :  { %v3711_v60 = vpop.f32.mrf.mxu2 }
 0xd73   :  { %v3665_v0 = vpop.f32.mrf.mxu0 }
 0xd74   :  { %v3668_v34 = vpack.c.bf16 %v3665_v0, %v3663_v36 }
 0xd76   :  { %4855 = vmatmul.msk.bf16.vlgmr.msrb.gmra.mxu1 %vm465_vm0, %v3668_v34 }
 0xd78   :  { %v3713_v3 = vpop.f32.mrf.mxu2 }
 0xd79   :  { %v3716_v49 = vpack.c.bf16 %v3713_v3, %v3711_v60 }
 0xd7b   :  { %v3759_v45 = vpop.f32.mrf.mxu0  ;;  %4857 = vmatmul.msk.bf16.vlgmr.msrb.gmra.mxu3 %vm465_vm0, %v3716_v49 }
 0xd80   :  { %v3807_v10 = vpop.f32.mrf.mxu2 }
 0xd82   :  { %v3471_v29 = vpop.f32.mrf.mxu1 }
 0xd83   :  { %v3761_v59 = vpop.f32.mrf.mxu0  ;;  %v3479_v27 = vadd.f32 %v5092_v61, %v3471_v29 }
 0xd84   :  { %v3764_v12 = vpack.c.bf16 %v3761_v59, %v3759_v45 }
 0xd85   :  { %v3527_v16 = vpop.f32.mrf.mxu3 }
 0xd86   :  { %4859 = vmatmul.msk.bf16.vlgmr.msra.gmra.mxu1 %vm465_vm0, %v3764_v12  ;;  %v3532_v15 = vadd.f32 %v3527_v16, %v3479_v27  ;;  %v5028_v16 = vld [vmem:[%s5877_s7 + $0x10] sm:$0xff] }
 0xd88   :  { %v3809_v50 = vpop.f32.mrf.mxu2 }
 0xd89   :  { %v3812_v58 = vpack.c.bf16 %v3809_v50, %v3807_v10  ;;  %v5029_v50 = vld [vmem:[%s5877_s7 + $0x18] sm:$0xff] }
 0xd8a   :  { %v3473_v32 = vpop.f32.mrf.mxu1  ;;  %3978 = vmatpush.bf16.msrb.mxu0 %v5029_v50  ;;  %v5032_v50 = vld [vmem:[%s5910_s20 + $0x30] sm:$0xff] }
 0xd8b   :  { %4861 = vmatmul.msk.bf16.vlgmr.msra.gmra.mxu3 %vm465_vm0, %v3812_v58  ;;  %v3480_v21 = vadd.f32 %v5092_v61, %v3473_v32 }
 0xd8d   :  { %v3529_v14 = vpop.f32.mrf.mxu3 }
 0xd8e   :  { %v3533_v18 = vadd.f32 %v3529_v14, %v3480_v21  ;;  %3979 = vmatpush.bf16.msrb.mxu0 %v5028_v16 }
 0xde1   :  { %v3580_v42 = vpop.f32.mrf.mxu1 }
 0xde2   :  { %v3585_v63 = vadd.f32 %v3580_v42, %v3532_v15 }
 0xde9   :  { %v3582_v53 = vpop.f32.mrf.mxu1 }
 0xdea   :  { %v3586_v24 = vadd.f32 %v3582_v53, %v3533_v18 }
 0xdee   :  { %v3633_v5 = vpop.f32.mrf.mxu3 }
 0xdef   :  { %v3638_v2 = vadd.f32 %v3633_v5, %v3585_v63 }
 0xdf1   :  { %v6337_v41 = vadd.f32 %v3638_v2, %v5938_v43 }
 0xdf3   :  { %v3840_v23 = vsel %vm517_vm6, %v6337_v41, 0.0  ;;  %v3681_v38 = vpop.f32.mrf.mxu1 }
 0xdf4   :  { %3841 = vadd.xlane.f32.xlu2 %v3840_v23  ;;  %v3686_v43 = vadd.f32 %v5092_v61, %v3681_v38 }
 0xdf6   :  { %v3635_v46 = vpop.f32.mrf.mxu3 }
 0xdf7   :  { %v3639_v56 = vadd.f32 %v3635_v46, %v3586_v24 }
 0xdf9   :  { %v3833_v30 = vadd.f32 %v3639_v56, %v5943_v37  ;;  %v5093_v56 = vld [vmem:[%s5843_s29 + $0x1] ss:$0 sm:$0xff] }
 0xdfb   :  { %v3843_v52 = vsel %vm517_vm6, %v3833_v30, 0.0  ;;  %v3683_v9 = vpop.f32.mrf.mxu1 }
 0xdfc   :  { %3844 = vadd.xlane.f32.xlu0 %v3843_v52  ;;  %v3687_v48 = vadd.f32 %v5092_v61, %v3683_v9 }
 0xdfe   :  { %v3729_v1 = vpop.f32.mrf.mxu3 }
 0xdff   :  { %v3734_v8 = vadd.f32 %v3729_v1, %v3686_v43  ;;  %v5094_v1 = vld [vmem:[%s5848_s3 + $0x1] ss:$0 sm:$0xff] }
 0xe03   :  { %v3777_v33 = vpop.f32.mrf.mxu1 }
 0xe04   :  { %v3782_v35 = vadd.f32 %v3777_v33, %v3734_v8 }
 0xe06   :  { %v3731_v17 = vpop.f32.mrf.mxu3 }
 0xe07   :  { %v3735_v44 = vadd.f32 %v3731_v17, %v3687_v48 }
 0xe0b   :  { %v3779_v51 = vpop.f32.mrf.mxu1 }
 0xe0c   :  { %v3783_v13 = vadd.f32 %v3779_v51, %v3735_v44 }
 0xe0e   :  { %v3825_v40 = vpop.f32.mrf.mxu3 }
 0xe0f   :  { %v3830_v47 = vadd.f32 %v3825_v40, %v3782_v35 }
 0xe11   :  { %v6344_v7 = vadd.f32 %v3830_v47, %v5955_v26 }
 0xe13   :  { %v3846_v37 = vsel %vm517_vm6, %v6344_v7, 0.0 }
 0xe14   :  { %3847 = vadd.xlane.f32.xlu1 %v3846_v37 }
 0xe16   :  { %v3827_v19 = vpop.f32.mrf.mxu3 }
 0xe17   :  { %v3831_v31 = vadd.f32 %v3827_v19, %v3783_v13 }
 0xe19   :  { %v3835_v4 = vadd.f32 %v3831_v31, %v5960_v11 }
 0xe1b   :  { %v3849_v28 = vsel %vm517_vm6, %v3835_v4, 0.0 }
 0xe1c   :  { %3850 = vadd.xlane.f32.xlu2 %v3849_v28 }
 0xe67   :  { %v3842_v39 = vpop.xlane.xlu2 %3841 }
 0xe68   :  { %v3852_v20 = vmul.f32 %v3842_v39, %v5461_v62 }
 0xe6a   :  { %v3856_v26 = vsub.f32 %v6337_v41, %v3852_v20 }
 0xe6c   :  { %v3860_v25 = vmul.f32 %v3856_v26, %v3856_v26 }
 0xe6e   :  { %v3864_v54 = vsel %vm517_vm6, %v3860_v25, 0.0 }
 0xe6f   :  { %v3845_v6 = vpop.xlane.xlu0 %3844  ;;  %3865 = vadd.xlane.f32.xlu0 %v3864_v54 }
 0xe70   :  { %v3853_v22 = vmul.f32 %v3845_v6, %v5461_v62 }
 0xe72   :  { %v3857_v55 = vsub.f32 %v3833_v30, %v3853_v22 }
 0xe74   :  { %v3861_v57 = vmul.f32 %v3857_v55, %v3857_v55 }
 0xe76   :  { %v3867_v11 = vsel %vm517_vm6, %v3861_v57, 0.0 }
 0xe77   :  { %3868 = vadd.xlane.f32.xlu1 %v3867_v11 }
 0xe87   :  { %v3848_v36 = vpop.xlane.xlu1 %3847 }
 0xe88   :  { %v3854_v60 = vmul.f32 %v3848_v36, %v5461_v62 }
 0xe8a   :  { %v6357_v0 = vsub.f32 %v6344_v7, %v3854_v60 }
 0xe8c   :  { %v3862_v34 = vmul.f32 %v6357_v0, %v6357_v0 }
 0xe8e   :  { %v3870_v3 = vsel %vm517_vm6, %v3862_v34, 0.0 }
 0xe8f   :  { %3871 = vadd.xlane.f32.xlu2 %v3870_v3  ;;  %v3851_v49 = vpop.xlane.xlu2 %3850 }
 0xe90   :  { %v3855_v45 = vmul.f32 %v3851_v49, %v5461_v62 }
 0xe92   :  { %v6363_v10 = vsub.f32 %v3835_v4, %v3855_v45 }
 0xe94   :  { %v3863_v59 = vmul.f32 %v6363_v10, %v6363_v10 }
 0xe96   :  { %v3873_v12 = vsel %vm517_vm6, %v3863_v59, 0.0 }
 0xe97   :  { %3874 = vadd.xlane.f32.xlu0 %v3873_v12  ;;  %v5033_v12 = vld [vmem:[%s5910_s20 + $0x38] sm:$0xff] }
 0xe98   :  { %4077 = vmatpush.bf16.msrb.mxu1 %v5033_v12 }
 0xe9c   :  { %4078 = vmatpush.bf16.msrb.mxu1 %v5032_v50 }
 0xee2   :  { %v3866_v58 = vpop.xlane.xlu0 %3865 }
 0xee3   :  { %v3876_v29 = vmul.f32 %v3866_v58, %v5461_v62  ;;  %v5095_v58 = vld [vmem:[%s5895_s12 + $0x1] ss:$0 sm:$0xff] }
 0xee5   :  { %v3880_v32 = vadd.f32 1e-05, %v3876_v29 }
 0xee7   :  { %5269 = vrsqrt.f32 %v3880_v32  ;;  %vm3890_vm13 = vweird.f32 %v3880_v32 }
 0xeea   :  { %v3869_v42 = vpop.xlane.xlu1 %3868 }
 0xeeb   :  { %v3877_v61 = vmul.f32 %v3869_v42, %v5461_v62 }
 0xeed   :  { %v5270_v14 = vpop.eup %5269  ;;  %v3881_v27 = vadd.f32 1e-05, %v3877_v61 }
 0xeee   :  { %v3885_v53 = vmul.f32 %v5270_v14, %v3880_v32  ;;  %vm3891_vm0 = vweird.f32 %v5270_v14  ;;  %v5030_v32 = vld [vmem:[%s5910_s20 + $0x20] sm:$0xff] }
 0xeef   :  { %5271 = vrsqrt.f32 %v3881_v27  ;;  %vm3892_vm14 = vmor %vm3890_vm13, %vm3891_vm0  ;;  %vm3900_vm5 = vweird.f32 %v3881_v27 }
 0xef0   :  { %v3886_v15 = vmul.f32 %v5270_v14, %v3885_v53 }
 0xef2   :  { %v3887_v63 = vmul.f32 0.5, %v3886_v15 }
 0xef4   :  { %v3888_v5 = vsub.f32 1.5, %v3887_v63 }
 0xef5   :  { %v5272_v2 = vpop.eup %5271 }
 0xef6   :  { %v3889_v21 = vmul.f32 %v5270_v14, %v3888_v5  ;;  %v3895_v18 = vmul.f32 %v5272_v2, %v3881_v27  ;;  %vm3901_vm15 = vweird.f32 %v5272_v2 }
 0xef7   :  { %vm3902_vm7 = vmor %vm3900_vm5, %vm3901_vm15 }
 0xef8   :  { %v3896_v23 = vmul.f32 %v5272_v2, %v3895_v18  ;;  %v3893_v38 = vsel %vm3892_vm14, %v5270_v14, %v3889_v21 }
 0xef9   :  { %v3924_v30 = vmul.f32 %v3893_v38, %v3856_v26 }
 0xefa   :  { %v3897_v24 = vmul.f32 0.5, %v3896_v23 }
 0xefb   :  { %v3931_v17 = vmul.f32 %v5093_v56, %v3924_v30 }
 0xefc   :  { %v3898_v46 = vsub.f32 1.5, %v3897_v24 }
 0xefd   :  { %v3938_v40 = vadd.f32 %v5094_v1, %v3931_v17 }
 0xefe   :  { %v3899_v52 = vmul.f32 %v5272_v2, %v3898_v46 }
 0xf00   :  { %v3903_v9 = vsel %vm3902_vm7, %v5272_v2, %v3899_v52 }
 0xf01   :  { %v3925_v33 = vmul.f32 %v3903_v9, %v3857_v55 }
 0xf02   :  { %v3872_v43 = vpop.xlane.xlu2 %3871 }
 0xf03   :  { %v3932_v8 = vmul.f32 %v5093_v56, %v3925_v33  ;;  %v3878_v35 = vmul.f32 %v3872_v43, %v5461_v62 }
 0xf05   :  { %v3939_v47 = vadd.f32 %v5094_v1, %v3932_v8  ;;  %v3882_v48 = vadd.f32 1e-05, %v3878_v35 }
 0xf07   :  { %v3942_v51 = vpack.c.bf16 %v3939_v47, %v3938_v40  ;;  %5273 = vrsqrt.f32 %v3882_v48  ;;  %vm3910_vm9 = vweird.f32 %v3882_v48 }
 0xf09   :  { %4877 = vmatmul.msk.bf16.vlgmr.msrb.gmra.mxu0 %vm517_vm6, %v3942_v51 }
 0xf0a   :  { %v3875_v44 = vpop.xlane.xlu0 %3874 }
 0xf0b   :  { %v3879_v37 = vmul.f32 %v3875_v44, %v5461_v62 }
 0xf0d   :  { %v5274_v13 = vpop.eup %5273  ;;  %v3883_v19 = vadd.f32 1e-05, %v3879_v37 }
 0xf0e   :  { %v3905_v31 = vmul.f32 %v5274_v13, %v3882_v48  ;;  %vm3911_vm8 = vweird.f32 %v5274_v13 }
 0xf0f   :  { %5275 = vrsqrt.f32 %v3883_v19  ;;  %vm3912_vm10 = vmor %vm3910_vm9, %vm3911_vm8  ;;  %vm3920_vm12 = vweird.f32 %v3883_v19 }
 0xf10   :  { %v3906_v4 = vmul.f32 %v5274_v13, %v3905_v31 }
 0xf12   :  { %v3907_v28 = vmul.f32 0.5, %v3906_v4 }
 0xf14   :  { %v3908_v39 = vsub.f32 1.5, %v3907_v28 }
 0xf15   :  { %v5276_v20 = vpop.eup %5275 }
 0xf16   :  { %v3909_v26 = vmul.f32 %v5274_v13, %v3908_v39  ;;  %v3915_v25 = vmul.f32 %v5276_v20, %v3883_v19  ;;  %vm3921_vm11 = vweird.f32 %v5276_v20 }
 0xf17   :  { %vm3922_vm1 = vmor %vm3920_vm12, %vm3921_vm11 }
 0xf18   :  { %v3916_v54 = vmul.f32 %v5276_v20, %v3915_v25  ;;  %v3913_v6 = vsel %vm3912_vm10, %v5274_v13, %v3909_v26 }
 0xf19   :  { %v3926_v57 = vmul.f32 %v3913_v6, %v6357_v0  ;;  %v5031_v0 = vld [vmem:[%s5910_s20 + $0x28] sm:$0xff] }
 0xf1a   :  { %v3917_v22 = vmul.f32 0.5, %v3916_v54  ;;  %4079 = vmatpush.bf16.msrb.mxu1 %v5031_v0 }
 0xf1b   :  { %v3933_v34 = vmul.f32 %v5093_v56, %v3926_v57 }
 0xf1c   :  { %v3918_v55 = vsub.f32 1.5, %v3917_v22 }
 0xf1d   :  { %v3940_v49 = vadd.f32 %v5094_v1, %v3933_v34 }
 0xf1e   :  { %v3919_v11 = vmul.f32 %v5276_v20, %v3918_v55  ;;  %4080 = vmatpush.bf16.msrb.mxu1 %v5030_v32  ;;  %v5096_v55 = vld [vmem:[%s5930_s23 + $0x1] ss:$0 sm:$0xff] }
 0xf20   :  { %v3923_v36 = vsel %vm3922_vm1, %v5276_v20, %v3919_v11 }
 0xf21   :  { %v3927_v60 = vmul.f32 %v3923_v36, %v6363_v10 }
 0xf23   :  { %v3934_v3 = vmul.f32 %v5093_v56, %v3927_v60 }
 0xf25   :  { %v3941_v45 = vadd.f32 %v5094_v1, %v3934_v3 }
 0xf27   :  { %v3943_v59 = vpack.c.bf16 %v3941_v45, %v3940_v49 }
 0xf29   :  { %4878 = vmatmul.msk.bf16.gmra.mxu0 %vm517_vm6, %v3943_v59 }
 0xf86   :  { %v3981_v29 = vpop.f32.mrf.mxu0 }
 0xf87   :  { %v3982_v16 = vadd.f32 %v5095_v58, %v3981_v29 }
 0xf89   :  { %v3991_v42 = vmul.f32 %v3982_v16, %v3982_v16 }
 0xf8b   :  { %v3995_v10 = vmul.f32 %v3991_v42, %v3982_v16 }
 0xf8d   :  { %v3999_v61 = vmul.f32 0.044715, %v3995_v10 }
 0xf8e   :  { %v3983_v14 = vpop.f32.mrf.mxu0 }
 0xf8f   :  { %v4003_v27 = vadd.f32 %v3999_v61, %v3982_v16  ;;  %v3984_v53 = vadd.f32 %v5095_v58, %v3983_v14 }
 0xf91   :  { %v4007_v15 = vmul.f32 0.7978846, %v4003_v27  ;;  %v3992_v63 = vmul.f32 %v3984_v53, %v3984_v53 }
 0xf93   :  { %v3996_v5 = vmul.f32 %v3992_v63, %v3984_v53  ;;  %5277 = vtanh.f32 %v4007_v15  ;;  %v5040_v15 = vld [vmem:[%s6418_s1 + $0x2c] sm:$0xf0]  ;;  %v5038_v63 = vld [vmem:[%s6418_s1 + $0x24] sm:$0xf] }
 0xf95   :  { %v4000_v2 = vmul.f32 0.044715, %v3996_v5 }
 0xf97   :  { %v4004_v21 = vadd.f32 %v4000_v2, %v3984_v53  ;;  %v4926_v2 = vld [vmem:[%s6418_s1 + $0x30] sm:$0xf0] }
 0xf99   :  { %v4008_v18 = vmul.f32 0.7978846, %v4004_v21  ;;  %v5278_v23 = vpop.eup %5277  ;;  %v4929_v21 = vor.u32 %v5038_v63, %v4926_v2 }
 0xf9a   :  { %v4015_v38 = vadd.f32 1.0, %v5278_v23  ;;  %v4908_v23 = vld [vmem:[%s6418_s1] sm:$0xf] }
 0xf9b   :  { %5279 = vtanh.f32 %v4008_v18  ;;  %4230 = vmatpush.bf16.msrb.mxu3 %v4929_v21 }
 0xf9c   :  { %v4019_v46 = vmul.f32 0.5, %v4015_v38  ;;  %v5036_v38 = vld [vmem:[%s6418_s1 + $0xc] sm:$0xf0] }
 0xf9e   :  { %v4023_v52 = vmul.f32 %v4019_v46, %v3982_v16  ;;  %v4909_v46 = vor.u32 %v5036_v38, %v4908_v23 }
 0xfa1   :  { %v5280_v24 = vpop.eup %5279 }
 0xfa2   :  { %v4016_v56 = vadd.f32 1.0, %v5280_v24  ;;  %v5034_v24 = vld [vmem:[%s6418_s1 + $0x4] sm:$0xf] }
 0xfa4   :  { %v4020_v30 = vmul.f32 0.5, %v4016_v56  ;;  %v4910_v56 = vld [vmem:[%s6418_s1 + $0x10] sm:$0xf0] }
 0xfa6   :  { %v4024_v9 = vmul.f32 %v4020_v30, %v3984_v53  ;;  %v3986_v1 = vpop.f32.mrf.mxu0  ;;  %v4924_v53 = vld [vmem:[%s6418_s1 + $0x20] sm:$0xf] }
 0xfa7   :  { %v3987_v17 = vadd.f32 %v5095_v58, %v3986_v1  ;;  %v4925_v5 = vor.u32 %v5040_v15, %v4924_v53  ;;  %v5041_v1 = vld [vmem:[%s6418_s1 + $0x34] sm:$0xf0] }
 0xfa8   :  { %v4027_v33 = vpack.c.bf16 %v4024_v9, %v4023_v52  ;;  %v4913_v52 = vor.u32 %v5034_v24, %v4910_v56  ;;  %v4932_v9 = vld [vmem:[%s6418_s1 + $0x28] sm:$0xf] }
 0xfa9   :  { %v3993_v43 = vmul.f32 %v3987_v17, %v3987_v17  ;;  %4216 = vmatpush.bf16.msrb.mxu2 %v4925_v5 }
 0xfaa   :  { %4904 = vmatmul.msk.bf16.vlgmr.msrb.gmra.mxu1 %vm2351_vm2, %v4027_v33  ;;  %4231 = vmatpush.bf16.msrb.mxu3 %v4913_v52 }
 0xfab   :  { %v3997_v8 = vmul.f32 %v3993_v43, %v3987_v17 }
 0xfad   :  { %v4001_v35 = vmul.f32 0.044715, %v3997_v8  ;;  %4217 = vmatpush.bf16.msrb.mxu2 %v4909_v46  ;;  %v4933_v8 = vor.u32 %v5041_v1, %v4932_v9 }
 0xfae   :  { %v3988_v40 = vpop.f32.mrf.mxu0 }
 0xfaf   :  { %v4005_v47 = vadd.f32 %v4001_v35, %v3987_v17  ;;  %v3989_v48 = vadd.f32 %v5095_v58, %v3988_v40  ;;  %v4934_v35 = vld [vmem:[%s6418_s1 + $0x38] sm:$0xf0]  ;;  %v4916_v40 = vld [vmem:[%s6418_s1 + $0x8] sm:$0xf] }
 0xfb1   :  { %v4009_v51 = vmul.f32 0.7978846, %v4005_v47  ;;  %v3994_v44 = vmul.f32 %v3989_v48, %v3989_v48  ;;  %v5037_v47 = vld [vmem:[%s6418_s1 + $0x14] sm:$0xf0]  ;;  %4244 = vmatpush.bf16.msra.mxu2 %v4933_v8 }
 0xfb3   :  { %v3998_v37 = vmul.f32 %v3994_v44, %v3989_v48  ;;  %5281 = vtanh.f32 %v4009_v51  ;;  %v5035_v44 = vld [vmem:[%s6418_s1 + $0xc] sm:$0xf] }
 0xfb5   :  { %v4002_v13 = vmul.f32 0.044715, %v3998_v37  ;;  %v4918_v37 = vld [vmem:[%s6418_s1 + $0x18] sm:$0xf0] }
 0xfb7   :  { %v4006_v19 = vadd.f32 %v4002_v13, %v3989_v48  ;;  %v4917_v13 = vor.u32 %v5037_v47, %v4916_v40 }
 0xfb9   :  { %v4010_v31 = vmul.f32 0.7978846, %v4006_v19  ;;  %v5282_v4 = vpop.eup %5281  ;;  %4245 = vmatpush.bf16.msra.mxu2 %v4917_v13 }
 0xfba   :  { %v4017_v28 = vadd.f32 1.0, %v5282_v4 }
 0xfbb   :  { %5283 = vtanh.f32 %v4010_v31  ;;  %v4921_v31 = vor.u32 %v5035_v44, %v4918_v37 }
 0xfbc   :  { %v4021_v20 = vmul.f32 0.5, %v4017_v28 }
 0xfbe   :  { %v4025_v54 = vmul.f32 %v4021_v20, %v3987_v17  ;;  %v5039_v17 = vld [vmem:[%s6418_s1 + $0x2c] sm:$0xf] }
 0xfbf   :  { %v4937_v51 = vor.u32 %v5039_v17, %v4934_v35 }
 0xfc1   :  { %v5284_v39 = vpop.eup %5283  ;;  %4258 = vmatpush.bf16.msra.mxu3 %v4937_v51 }
 0xfc2   :  { %v4018_v26 = vadd.f32 1.0, %v5284_v39 }
 0xfc4   :  { %v4022_v25 = vmul.f32 0.5, %v4018_v26 }
 0xfc5   :  { %4259 = vmatpush.bf16.msra.mxu3 %v4921_v31 }
 0xfc6   :  { %v4026_v6 = vmul.f32 %v4022_v25, %v3989_v48 }
 0xfc8   :  { %v4028_v22 = vpack.c.bf16 %v4026_v6, %v4025_v54 }
 0xfca   :  { %4905 = vmatmul.msk.bf16.gmra.mxu1 %vm2351_vm2, %v4028_v22  ;;  %v5097_v22 = vld [vmem:[%s6393_s18] ss:$0 sm:$0xff] }
0x1027   :  { %v4082_v57 = vpop.f32.mrf.mxu1 }
0x1028   :  { %v4083_v11 = vadd.f32 %v5096_v55, %v4082_v57 }
0x102a   :  { %v4090_v36 = vadd.f32 %v4083_v11, %v6337_v41 }
0x102c   :  { %v4094_v60 = vsel %vm517_vm6, %v4090_v36, 0.0 }
0x102d   :  { %4095 = vadd.xlane.f32.xlu1 %v4094_v60 }
0x102f   :  { %v4084_v34 = vpop.f32.mrf.mxu1 }
0x1047   :  { %v4086_v3 = vpop.f32.mrf.mxu1 }
0x1048   :  { %v4087_v49 = vadd.f32 %v5096_v55, %v4086_v3 }
0x104a   :  { %v4091_v45 = vadd.f32 %v4087_v49, %v6344_v7 }
0x104c   :  { %v4097_v41 = vsel %vm517_vm6, %v4091_v45, 0.0 }
0x104d   :  { %4098 = vadd.xlane.f32.xlu2 %v4097_v41 }
0x104f   :  { %v4088_v59 = vpop.f32.mrf.mxu1 }
0x1050   :  { %v4157_v59 = vld [vmem:[%s4307_s5] sm:$0xf] }
0x10a0   :  { %v4096_v12 = vpop.xlane.xlu1 %4095 }
0x10a1   :  { %v4100_v50 = vmul.f32 %v4096_v12, %v5461_v62  ;;  %v4159_v12 = vperm.slane %v4157_v59, 0 }
0x10a3   :  { %v6403_v0 = vsub.f32 %v4090_v36, %v4100_v50  ;;  %v5098_v36 = vld [vmem:[%s6399_s27] ss:$0 sm:$0xff]  ;;  %v4160_v50 = vperm.slane %v4157_v59, 1 }
0x10a5   :  { %v4104_v58 = vmul.f32 %v6403_v0, %v6403_v0 }
0x10a7   :  { %v4106_v7 = vsel %vm517_vm6, %v4104_v58, 0.0 }
0x10a8   :  { %4107 = vadd.xlane.f32.xlu0 %v4106_v7 }
0x10c0   :  { %v4099_v29 = vpop.xlane.xlu2 %4098 }
0x10c1   :  { %v4101_v32 = vmul.f32 %v4099_v29, %v5461_v62 }
0x10c3   :  { %v6409_v16 = vsub.f32 %v4091_v45, %v4101_v32 }
0x10c5   :  { %v4105_v42 = vmul.f32 %v6409_v16, %v6409_v16 }
0x10c7   :  { %v4109_v10 = vsel %vm517_vm6, %v4105_v42, 0.0 }
0x10c8   :  { %4110 = vadd.xlane.f32.xlu1 %v4109_v10 }
0x111b   :  { %v4108_v61 = vpop.xlane.xlu0 %4107 }
0x111c   :  { %v4112_v14 = vmul.f32 %v4108_v61, %v5461_v62  ;;  %v4161_v61 = vperm.slane %v4157_v59, 2 }
0x111e   :  { %v4114_v27 = vadd.f32 1e-05, %v4112_v14  ;;  %v4162_v14 = vperm.slane %v4157_v59, 3 }
0x1120   :  { %5285 = vrsqrt.f32 %v4114_v27  ;;  %vm4122_vm3 = vweird.f32 %v4114_v27 }
0x1126   :  { %v5286_v18 = vpop.eup %5285 }
0x1127   :  { %v4117_v30 = vmul.f32 %v5286_v18, %v4114_v27  ;;  %vm4123_vm2 = vweird.f32 %v5286_v18 }
0x1128   :  { %vm4124_vm4 = vmor %vm4122_vm3, %vm4123_vm2 }
0x1129   :  { %v4118_v33 = vmul.f32 %v5286_v18, %v4117_v30 }
0x112b   :  { %v4119_v4 = vmul.f32 0.5, %v4118_v33 }
0x112d   :  { %v4120_v28 = vsub.f32 1.5, %v4119_v4 }
0x112f   :  { %v4121_v20 = vmul.f32 %v5286_v18, %v4120_v28 }
0x1131   :  { %v4125_v25 = vsel %vm4124_vm4, %v5286_v18, %v4121_v20 }
0x1132   :  { %v4136_v55 = vmul.f32 %v4125_v25, %v6403_v0 }
0x1134   :  { %v4141_v60 = vmul.f32 %v5097_v22, %v4136_v55 }
0x1136   :  { %v4146_v49 = vadd.f32 %v5098_v36, %v4141_v60 }
0x113b   :  { %v4111_v43 = vpop.xlane.xlu1 %4110 }
0x113c   :  { %v4113_v48 = vmul.f32 %v4111_v43, %v5461_v62 }
0x113e   :  { %v4115_v19 = vadd.f32 1e-05, %v4113_v48 }
0x1140   :  { %5287 = vrsqrt.f32 %v4115_v19  ;;  %vm4132_vm13 = vweird.f32 %v4115_v19 }
0x1146   :  { %v5288_v39 = vpop.eup %5287 }
0x1147   :  { %v4127_v26 = vmul.f32 %v5288_v39, %v4115_v19  ;;  %vm4133_vm0 = vweird.f32 %v5288_v39 }
0x1148   :  { %vm4134_vm14 = vmor %vm4132_vm13, %vm4133_vm0 }
0x1149   :  { %v4128_v62 = vmul.f32 %v5288_v39, %v4127_v26 }
0x114b   :  { %v4129_v54 = vmul.f32 0.5, %v4128_v62 }
0x114d   :  { %v4130_v6 = vsub.f32 1.5, %v4129_v54 }
0x114f   :  { %v4131_v57 = vmul.f32 %v5288_v39, %v4130_v6 }
0x1151   :  { %v4135_v11 = vsel %vm4134_vm14, %v5288_v39, %v4131_v57 }
0x1152   :  { %v4137_v34 = vmul.f32 %v4135_v11, %v6409_v16 }
0x1154   :  { %v4142_v3 = vmul.f32 %v5097_v22, %v4137_v34 }
0x1156   :  { %v4147_v45 = vadd.f32 %v5098_v36, %v4142_v3 }
0x1158   :  { %v4148_v41 = vpack.c.bf16 %v4147_v45, %v4146_v49 }
0x115a   :  { %4938 = vmatmul.msk.bf16.vlgmr.msrb.gmra.mxu2 %vm517_vm6, %v4148_v41  ;;  %4939 = vmatmul.msk.bf16.vlgmr.msrb.gmra.mxu3 %vm517_vm6, %v4148_v41 }
0x116a   :  { %4940 = vmatmul.msk.bf16.vlgmr.msra.gmra.mxu2 %vm517_vm6, %v4148_v41  ;;  %4941 = vmatmul.msk.bf16.vlgmr.msra.gmra.mxu3 %vm517_vm6, %v4148_v41 }
0x11dd   :  { %v4219_v0 = vpop.f32.mrf.mxu2  ;;  %v4233_v58 = vpop.f32.mrf.mxu3 }
0x11de   :  { %v4220_v7 = vadd.f32 %v4219_v0, %v4159_v12  ;;  %v4234_v29 = vadd.f32 %v4233_v58, %v4160_v50 }
0x11e0   :  { %4266 = vst [vmem:[%s4308_s10] sm:$0xff] %v4220_v7 }
0x11e1   :  { %4267 = vst [vmem:[%s4308_s10 + $0x8] sm:$0xff] %v4234_v29 }
0x11e5   :  { %v4221_v32 = vpop.f32.mrf.mxu2  ;;  %v4235_v16 = vpop.f32.mrf.mxu3 }
0x11e6   :  { %v4222_v42 = vadd.f32 %v4221_v32, %v4159_v12  ;;  %v4236_v10 = vadd.f32 %v4235_v16, %v4160_v50 }
0x11e8   :  { %4270 = vst [vmem:[%s4308_s10 + $0x20] sm:$0xff] %v4222_v42 }
0x11e9   :  { %4271 = vst [vmem:[%s4308_s10 + $0x28] sm:$0xff] %v4236_v10 }
0x11ed   :  { %v4247_v27 = vpop.f32.mrf.mxu2  ;;  %v4261_v53 = vpop.f32.mrf.mxu3 }
0x11ee   :  { %v4248_v15 = vadd.f32 %v4247_v27, %v4161_v61  ;;  %v4262_v63 = vadd.f32 %v4261_v53, %v4162_v14 }
0x11f0   :  { %4268 = vst [vmem:[%s4308_s10 + $0x10] sm:$0xff] %v4248_v15 }
0x11f1   :  { %4269 = vst [vmem:[%s4308_s10 + $0x18] sm:$0xff] %v4262_v63 }
0x11f5   :  { %v4249_v5 = vpop.f32.mrf.mxu2  ;;  %v4263_v2 = vpop.f32.mrf.mxu3 }
0x11f6   :  { %v4250_v21 = vadd.f32 %v4249_v5, %v4161_v61  ;;  %v4264_v18 = vadd.f32 %v4263_v2, %v4162_v14 }
0x11f8   :  { %4272 = vst [vmem:[%s4308_s10 + $0x30] sm:$0xff] %v4250_v21 }
0x11f9   :  { %4273 = vst [vmem:[%s4308_s10 + $0x38] sm:$0xff] %v4264_v18 }

</bundles_post_ra>
